<compile_context>
chip_gen: v6e
topology: v6e:2x2x1
jax: 0.10.0
libtpu: 0.0.40
codegen_flags: <defaults>
</compile_context>

<pallas_src>
import jax
import jax.numpy as jnp
from jax.experimental import pallas as pl
from jax.experimental.pallas import tpu as pltpu

HIDDEN_DIM = 128
IN_DIM = 12
N_CLASS = 4
N_LAYER = 2


# ----------------------------- Pallas kernel --------------------------------


def fused_lstm_kernel(x_ref, w0ih_ref, w0hh_ref, b0_ref,
                      w1ih_ref, w1hh_ref, b1_ref, wl_ref, bl_ref, out_ref):
    """Fused 2-layer LSTM + linear head.

    x_ref:    (T*B, H)  time-major input, features zero-padded 12 -> H, f32
    w0ih_ref: (H, 4H)   layer-0 W_ih^T (rows zero-padded 12 -> H), bf16,
                        gate columns ordered [i|f|o|g]
    w0hh_ref: (H, 4H)   layer-0 W_hh^T, bf16, [i|f|o|g]
    b0_ref:   (1, 4H)   layer-0 combined bias (b_ih + b_hh), f32, [i|f|o|g]
    w1ih_ref: (H, 4H)   layer-1 W_ih^T, bf16, [i|f|o|g]
    w1hh_ref: (H, 4H)   layer-1 W_hh^T, bf16, [i|f|o|g]
    b1_ref:   (1, 4H)   layer-1 combined bias, f32, [i|f|o|g]
    wl_ref:   (H, H)    linear weight^T, columns zero-padded 4 -> H, bf16
    bl_ref:   (1, H)    linear bias zero-padded 4 -> H, f32
    out_ref:  (B, H)    lane-dense logits slab (first N_CLASS columns valid)
    """
    H = HIDDEN_DIM
    TB = x_ref.shape[0]
    B = out_ref.shape[0]
    T = TB // B

    # Layer-0 input projection: no recurrent dependency, so do it once, off
    # the serial critical path (one M=T*B matmul + one bias add).
    xproj = jnp.dot(x_ref[...].astype(jnp.bfloat16), w0ih_ref[...],
                    preferred_element_type=jnp.float32) + b0_ref[...]

    # Hoist the layer-1 bias broadcast out of the unrolled loop (no CSE).
    b1 = jnp.broadcast_to(b1_ref[...], (B, 4 * H))

    def cell(gates, c_prev):
        # Gate columns are [i | f | o | g]: one sigmoid over 3H contiguous
        # lanes, one tanh over the last H lanes. All slices on 128-lane
        # vreg boundaries.
        ifo = jax.nn.sigmoid(gates[:, :3 * H])
        g_g = jnp.tanh(gates[:, 3 * H:])
        i_g = ifo[:, 0 * H:1 * H]
        f_g = ifo[:, 1 * H:2 * H]
        o_g = ifo[:, 2 * H:3 * H]
        c_new = f_g * c_prev + i_g * g_g
        h_new = o_g * jnp.tanh(c_new)
        return h_new, c_new

    zeros = jnp.zeros((B, H), jnp.float32)
    h0 = c0 = h1 = c1 = zeros

    # T is static and tiny: a plain Python loop == full unroll.
    for t in range(T):
        # Layer 0: only the K=128 recurrent matmul sits on the serial path.
        g0 = xproj[t * B:(t + 1) * B, :] + jnp.dot(
            h0.astype(jnp.bfloat16), w0hh_ref[...],
            preferred_element_type=jnp.float32)
        h0, c0 = cell(g0, c0)

        # Layer 1: two K=128 matmuls, no per-step concat copy.
        g1 = (jnp.dot(h0.astype(jnp.bfloat16), w1ih_ref[...],
                      preferred_element_type=jnp.float32)
              + jnp.dot(h1.astype(jnp.bfloat16), w1hh_ref[...],
                        preferred_element_type=jnp.float32)
              + b1)
        h1, c1 = cell(g1, c1)

    # Classifier head, lane-dense (B, H) output; wrapper slices to (B, C).
    out_ref[...] = (jnp.dot(h1.astype(jnp.bfloat16), wl_ref[...],
                            preferred_element_type=jnp.float32)
                    + bl_ref[...]).astype(out_ref.dtype)


# ------------------------------ Wrappers -------------------------------------


def _fused_call(x2d, packed, batch):
    """x2d: (T*B, H) padded time-major input -> (B, H) lane-dense logits."""
    TB, H = x2d.shape
    return pl.pallas_call(
        fused_lstm_kernel,
        out_shape=jax.ShapeDtypeStruct((batch, H), jnp.float32),
        grid_spec=pltpu.PrefetchScalarGridSpec(
            num_scalar_prefetch=0,
            grid=(1,),
            in_specs=[
                pl.BlockSpec((TB, H), lambda i: (0, 0)),
                pl.BlockSpec((H, 4 * H), lambda i: (0, 0)),
                pl.BlockSpec((H, 4 * H), lambda i: (0, 0)),
                pl.BlockSpec((1, 4 * H), lambda i: (0, 0)),
                pl.BlockSpec((H, 4 * H), lambda i: (0, 0)),
                pl.BlockSpec((H, 4 * H), lambda i: (0, 0)),
                pl.BlockSpec((1, 4 * H), lambda i: (0, 0)),
                pl.BlockSpec((H, H), lambda i: (0, 0)),
                pl.BlockSpec((1, H), lambda i: (0, 0)),
            ],
            out_specs=pl.BlockSpec((batch, H), lambda i: (0, 0)),
        ),
        compiler_params=pltpu.CompilerParams(
            dimension_semantics=("arbitrary",)),
    )(x2d, packed["w0_ih"], packed["w0_hh"], packed["b0"],
      packed["w1_ih"], packed["w1_hh"], packed["b1"],
      packed["wl"], packed["bl"])


@jax.jit
def lstm_forward(x, packed):
    """x: (B, T, IN_DIM) -> logits (B, N_CLASS). Matches the PyTorch forward."""
    B, T, D = x.shape
    xs = jnp.transpose(x, (1, 0, 2))                          # (T, B, D)
    xs = jnp.pad(xs, ((0, 0), (0, 0), (0, HIDDEN_DIM - D)))   # (T, B, H)
    x2d = xs.reshape(T * B, HIDDEN_DIM)                       # (T*B, H)
    out_pad = _fused_call(x2d, packed, B)                     # (B, H)
    return out_pad[:, :N_CLASS]


# --------------------------- Parameter handling -------------------------------


def init_params(key):
    """Raw PyTorch-layout parameters (for the reference and for packing)."""
    raw = {"lstm": []}
    k = 1.0 / jnp.sqrt(HIDDEN_DIM)
    for layer in range(N_LAYER):
        d_in = IN_DIM if layer == 0 else HIDDEN_DIM
        key, k1, k2, k3, k4 = jax.random.split(key, 5)
        raw["lstm"].append({
            "w_ih": jax.random.uniform(k1, (4 * HIDDEN_DIM, d_in), jnp.float32, -k, k),
            "w_hh": jax.random.uniform(k2, (4 * HIDDEN_DIM, HIDDEN_DIM), jnp.float32, -k, k),
            "b_ih": jax.random.uniform(k3, (4 * HIDDEN_DIM,), jnp.float32, -k, k),
            "b_hh": jax.random.uniform(k4, (4 * HIDDEN_DIM,), jnp.float32, -k, k),
        })
    key, k5, k6 = jax.random.split(key, 3)
    raw["lin_w"] = jax.random.uniform(k5, (N_CLASS, HIDDEN_DIM), jnp.float32, -k, k)
    raw["lin_b"] = jax.random.uniform(k6, (N_CLASS,), jnp.float32, -k, k)
    return raw


def _reorder_ifgo_to_ifog(w):
    """Permute last-axis gate blocks from PyTorch [i,f,g,o] to [i,f,o,g]."""
    H = HIDDEN_DIM
    return jnp.concatenate(
        [w[..., 0:H], w[..., H:2 * H], w[..., 3 * H:4 * H], w[..., 2 * H:3 * H]],
        axis=-1)


def pack_params(raw):
    """Transpose / pad / reorder / cast weights once at init time."""
    H = HIDDEN_DIM
    packed = {}
    for idx, layer in enumerate(raw["lstm"]):
        wih_t = _reorder_ifgo_to_ifog(layer["w_ih"].T)          # (d_in, 4H)
        d_in = wih_t.shape[0]
        wih_t = jnp.pad(wih_t, ((0, H - d_in), (0, 0)))         # (H, 4H), zero rows
        whh_t = _reorder_ifgo_to_ifog(layer["w_hh"].T)          # (H, 4H)
        packed[f"w{idx}_ih"] = wih_t.astype(jnp.bfloat16)
        packed[f"w{idx}_hh"] = whh_t.astype(jnp.bfloat16)
        packed[f"b{idx}"] = _reorder_ifgo_to_ifog(
            (layer["b_ih"] + layer["b_hh"]).reshape(1, -1))     # (1, 4H), f32
    wl_t = raw["lin_w"].T                                       # (H, C)
    packed["wl"] = jnp.pad(
        wl_t, ((0, 0), (0, H - N_CLASS))).astype(jnp.bfloat16)  # (H, H)
    packed["bl"] = jnp.pad(raw["lin_b"], (0, H - N_CLASS)).reshape(1, -1)
    return packed


# ----------------------- Pure-JAX reference (for check) ----------------------


def lstm_forward_ref(x, raw):
    """f32 reference faithful to PyTorch nn.LSTM + nn.Linear."""
    xs = jnp.transpose(x, (1, 0, 2))                            # (T, B, D)
    B = xs.shape[1]
    H = HIDDEN_DIM
    for layer in raw["lstm"]:
        h0 = jnp.zeros((B, H), jnp.float32)
        c0 = jnp.zeros((B, H), jnp.float32)

        def step(carry, x_t, layer=layer):
            h, c = carry
            g = (x_t @ layer["w_ih"].T + h @ layer["w_hh"].T
                 + layer["b_ih"] + layer["b_hh"])
            i = jax.nn.sigmoid(g[:, :H])
            f = jax.nn.sigmoid(g[:, H:2 * H])
            gg = jnp.tanh(g[:, 2 * H:3 * H])
            o = jax.nn.sigmoid(g[:, 3 * H:])
            c = f * c + i * gg
            h = o * jnp.tanh(c)
            return (h, c), h

        _, hs = jax.lax.scan(step, (h0, c0), xs)
        xs = hs
    return xs[-1] @ raw["lin_w"].T + raw["lin_b"]


# --------------------------------- Main ---------------------------------------

if __name__ == "__main__":
    key = jax.random.PRNGKey(0)
    key, kx, kp = jax.random.split(key, 3)

    B, T = 2, 8
    x = jax.random.normal(kx, (B, T, IN_DIM), jnp.float32)     # (batch, seq, feat)
    raw = init_params(kp)
    packed = pack_params(raw)

    out = lstm_forward(x, packed)
    out = jax.block_until_ready(out)

    ref = lstm_forward_ref(x, raw)
    assert out.shape == (B, N_CLASS)
    # bf16 matmul operands (f32 accumulate) -> tolerance loosened vs pure f32.
    assert jnp.allclose(out, ref, rtol=1e-2, atol=1e-2)

    print("KERNEL_OK")
</pallas_src>

<mosaic_0001>
module attributes {stable_mosaic.version = 11 : i64} {
  func.func @fused_lstm_kernel(%arg0: i32, %arg1: memref<16x128xf32, #tpu.memory_space<vmem>>, %arg2: memref<128x512xbf16, #tpu.memory_space<vmem>>, %arg3: memref<128x512xbf16, #tpu.memory_space<vmem>>, %arg4: memref<1x512xf32, #tpu.memory_space<vmem>>, %arg5: memref<128x512xbf16, #tpu.memory_space<vmem>>, %arg6: memref<128x512xbf16, #tpu.memory_space<vmem>>, %arg7: memref<1x512xf32, #tpu.memory_space<vmem>>, %arg8: memref<128x128xbf16, #tpu.memory_space<vmem>>, %arg9: memref<1x128xf32, #tpu.memory_space<vmem>>, %arg10: memref<2x128xf32, #tpu.memory_space<vmem>>) attributes {dimension_semantics = [#tpu.dimension_semantics<arbitrary>], iteration_bounds = array<i64: 1>, scalar_prefetch = 0 : i64, scratch_operands = 0 : i64, tpu.core_type = #tpu.core_type<tc>, window_params = [{pipeline_mode = #tpu.pipeline_mode<synchronous>, transform_indices = @transform_0, window_bounds = array<i64: 16, 128>}, {pipeline_mode = #tpu.pipeline_mode<synchronous>, transform_indices = @transform_1, window_bounds = array<i64: 128, 512>}, {pipeline_mode = #tpu.pipeline_mode<synchronous>, transform_indices = @transform_2, window_bounds = array<i64: 128, 512>}, {pipeline_mode = #tpu.pipeline_mode<synchronous>, transform_indices = @transform_3, window_bounds = array<i64: 1, 512>}, {pipeline_mode = #tpu.pipeline_mode<synchronous>, transform_indices = @transform_4, window_bounds = array<i64: 128, 512>}, {pipeline_mode = #tpu.pipeline_mode<synchronous>, transform_indices = @transform_5, window_bounds = array<i64: 128, 512>}, {pipeline_mode = #tpu.pipeline_mode<synchronous>, transform_indices = @transform_6, window_bounds = array<i64: 1, 512>}, {pipeline_mode = #tpu.pipeline_mode<synchronous>, transform_indices = @transform_7, window_bounds = array<i64: 128, 128>}, {pipeline_mode = #tpu.pipeline_mode<synchronous>, transform_indices = @transform_8, window_bounds = array<i64: 1, 128>}, {pipeline_mode = #tpu.pipeline_mode<synchronous>, transform_indices = @transform_9, window_bounds = array<i64: 2, 128>}]} {
    %c0 = arith.constant 0 : index
    %c0_0 = arith.constant 0 : index
    %0 = vector.load %arg1[%c0, %c0_0] : memref<16x128xf32, #tpu.memory_space<vmem>>, vector<16x128xf32>
    %1 = arith.truncf %0 : vector<16x128xf32> to vector<16x128xbf16>
    %c0_1 = arith.constant 0 : index
    %c0_2 = arith.constant 0 : index
    %2 = vector.load %arg2[%c0_1, %c0_2] : memref<128x512xbf16, #tpu.memory_space<vmem>>, vector<128x512xbf16>
    %cst = arith.constant dense<0.000000e+00> : vector<16x512xf32>
    %3 = tpu.matmul %1, %2, %cst {dimension_numbers = #tpu.dot_dimension_numbers<[1], [0], [0], [1], [0, 0, 1, 1], [], []>} : vector<16x128xbf16>, vector<128x512xbf16>, vector<16x512xf32> -> vector<16x512xf32>
    %c0_3 = arith.constant 0 : index
    %c0_4 = arith.constant 0 : index
    %4 = vector.load %arg4[%c0_3, %c0_4] : memref<1x512xf32, #tpu.memory_space<vmem>>, vector<1x512xf32>
    %5 = vector.broadcast %4 : vector<1x512xf32> to vector<16x512xf32>
    %6 = arith.addf %3, %5 : vector<16x512xf32>
    %c0_5 = arith.constant 0 : index
    %c0_6 = arith.constant 0 : index
    %7 = vector.load %arg7[%c0_5, %c0_6] : memref<1x512xf32, #tpu.memory_space<vmem>>, vector<1x512xf32>
    %8 = vector.shape_cast %7 : vector<1x512xf32> to vector<1x512xf32>
    %9 = vector.broadcast %8 : vector<1x512xf32> to vector<2x512xf32>
    %cst_7 = arith.constant 0.000000e+00 : f32
    %10 = vector.broadcast %cst_7 : f32 to vector<2x128xf32>
    %11 = vector.extract_strided_slice %6 {offsets = [0, 0], sizes = [2, 512], strides = [1, 1]} : vector<16x512xf32> to vector<2x512xf32>
    %12 = arith.truncf %10 : vector<2x128xf32> to vector<2x128xbf16>
    %c0_8 = arith.constant 0 : index
    %c0_9 = arith.constant 0 : index
    %13 = vector.load %arg3[%c0_8, %c0_9] : memref<128x512xbf16, #tpu.memory_space<vmem>>, vector<128x512xbf16>
    %cst_10 = arith.constant dense<0.000000e+00> : vector<2x512xf32>
    %14 = tpu.matmul %12, %13, %cst_10 {dimension_numbers = #tpu.dot_dimension_numbers<[1], [0], [0], [1], [0, 0, 1, 1], [], []>} : vector<2x128xbf16>, vector<128x512xbf16>, vector<2x512xf32> -> vector<2x512xf32>
    %15 = arith.addf %11, %14 : vector<2x512xf32>
    %16 = vector.extract_strided_slice %15 {offsets = [0, 0], sizes = [2, 384], strides = [1, 1]} : vector<2x512xf32> to vector<2x384xf32>
    %17 = arith.negf %16 : vector<2x384xf32>
    %18 = math.exp %17 : vector<2x384xf32>
    %cst_11 = arith.constant 1.000000e+00 : f32
    %19 = vector.broadcast %cst_11 : f32 to vector<2x384xf32>
    %20 = arith.addf %19, %18 : vector<2x384xf32>
    %21 = arith.divf %19, %20 : vector<2x384xf32>
    %22 = vector.extract_strided_slice %15 {offsets = [0, 384], sizes = [2, 128], strides = [1, 1]} : vector<2x512xf32> to vector<2x128xf32>
    %23 = math.tanh %22 : vector<2x128xf32>
    %24 = vector.extract_strided_slice %21 {offsets = [0, 0], sizes = [2, 128], strides = [1, 1]} : vector<2x384xf32> to vector<2x128xf32>
    %25 = vector.extract_strided_slice %21 {offsets = [0, 128], sizes = [2, 128], strides = [1, 1]} : vector<2x384xf32> to vector<2x128xf32>
    %26 = vector.extract_strided_slice %21 {offsets = [0, 256], sizes = [2, 128], strides = [1, 1]} : vector<2x384xf32> to vector<2x128xf32>
    %27 = arith.mulf %25, %10 : vector<2x128xf32>
    %28 = arith.mulf %24, %23 : vector<2x128xf32>
    %29 = arith.addf %27, %28 : vector<2x128xf32>
    %30 = math.tanh %29 : vector<2x128xf32>
    %31 = arith.mulf %26, %30 : vector<2x128xf32>
    %32 = arith.truncf %31 : vector<2x128xf32> to vector<2x128xbf16>
    %c0_12 = arith.constant 0 : index
    %c0_13 = arith.constant 0 : index
    %33 = vector.load %arg5[%c0_12, %c0_13] : memref<128x512xbf16, #tpu.memory_space<vmem>>, vector<128x512xbf16>
    %cst_14 = arith.constant dense<0.000000e+00> : vector<2x512xf32>
    %34 = tpu.matmul %32, %33, %cst_14 {dimension_numbers = #tpu.dot_dimension_numbers<[1], [0], [0], [1], [0, 0, 1, 1], [], []>} : vector<2x128xbf16>, vector<128x512xbf16>, vector<2x512xf32> -> vector<2x512xf32>
    %35 = arith.truncf %10 : vector<2x128xf32> to vector<2x128xbf16>
    %c0_15 = arith.constant 0 : index
    %c0_16 = arith.constant 0 : index
    %36 = vector.load %arg6[%c0_15, %c0_16] : memref<128x512xbf16, #tpu.memory_space<vmem>>, vector<128x512xbf16>
    %cst_17 = arith.constant dense<0.000000e+00> : vector<2x512xf32>
    %37 = tpu.matmul %35, %36, %cst_17 {dimension_numbers = #tpu.dot_dimension_numbers<[1], [0], [0], [1], [0, 0, 1, 1], [], []>} : vector<2x128xbf16>, vector<128x512xbf16>, vector<2x512xf32> -> vector<2x512xf32>
    %38 = arith.addf %34, %37 : vector<2x512xf32>
    %39 = arith.addf %38, %9 : vector<2x512xf32>
    %40 = vector.extract_strided_slice %39 {offsets = [0, 0], sizes = [2, 384], strides = [1, 1]} : vector<2x512xf32> to vector<2x384xf32>
    %41 = arith.negf %40 : vector<2x384xf32>
    %42 = math.exp %41 : vector<2x384xf32>
    %cst_18 = arith.constant 1.000000e+00 : f32
    %43 = vector.broadcast %cst_18 : f32 to vector<2x384xf32>
    %44 = arith.addf %43, %42 : vector<2x384xf32>
    %45 = arith.divf %43, %44 : vector<2x384xf32>
    %46 = vector.extract_strided_slice %39 {offsets = [0, 384], sizes = [2, 128], strides = [1, 1]} : vector<2x512xf32> to vector<2x128xf32>
    %47 = math.tanh %46 : vector<2x128xf32>
    %48 = vector.extract_strided_slice %45 {offsets = [0, 0], sizes = [2, 128], strides = [1, 1]} : vector<2x384xf32> to vector<2x128xf32>
    %49 = vector.extract_strided_slice %45 {offsets = [0, 128], sizes = [2, 128], strides = [1, 1]} : vector<2x384xf32> to vector<2x128xf32>
    %50 = vector.extract_strided_slice %45 {offsets = [0, 256], sizes = [2, 128], strides = [1, 1]} : vector<2x384xf32> to vector<2x128xf32>
    %51 = arith.mulf %49, %10 : vector<2x128xf32>
    %52 = arith.mulf %48, %47 : vector<2x128xf32>
    %53 = arith.addf %51, %52 : vector<2x128xf32>
    %54 = math.tanh %53 : vector<2x128xf32>
    %55 = arith.mulf %50, %54 : vector<2x128xf32>
    %56 = vector.extract_strided_slice %6 {offsets = [2, 0], sizes = [2, 512], strides = [1, 1]} : vector<16x512xf32> to vector<2x512xf32>
    %57 = arith.truncf %31 : vector<2x128xf32> to vector<2x128xbf16>
    %c0_19 = arith.constant 0 : index
    %c0_20 = arith.constant 0 : index
    %58 = vector.load %arg3[%c0_19, %c0_20] : memref<128x512xbf16, #tpu.memory_space<vmem>>, vector<128x512xbf16>
    %cst_21 = arith.constant dense<0.000000e+00> : vector<2x512xf32>
    %59 = tpu.matmul %57, %58, %cst_21 {dimension_numbers = #tpu.dot_dimension_numbers<[1], [0], [0], [1], [0, 0, 1, 1], [], []>} : vector<2x128xbf16>, vector<128x512xbf16>, vector<2x512xf32> -> vector<2x512xf32>
    %60 = arith.addf %56, %59 : vector<2x512xf32>
    %61 = vector.extract_strided_slice %60 {offsets = [0, 0], sizes = [2, 384], strides = [1, 1]} : vector<2x512xf32> to vector<2x384xf32>
    %62 = arith.negf %61 : vector<2x384xf32>
    %63 = math.exp %62 : vector<2x384xf32>
    %cst_22 = arith.constant 1.000000e+00 : f32
    %64 = vector.broadcast %cst_22 : f32 to vector<2x384xf32>
    %65 = arith.addf %64, %63 : vector<2x384xf32>
    %66 = arith.divf %64, %65 : vector<2x384xf32>
    %67 = vector.extract_strided_slice %60 {offsets = [0, 384], sizes = [2, 128], strides = [1, 1]} : vector<2x512xf32> to vector<2x128xf32>
    %68 = math.tanh %67 : vector<2x128xf32>
    %69 = vector.extract_strided_slice %66 {offsets = [0, 0], sizes = [2, 128], strides = [1, 1]} : vector<2x384xf32> to vector<2x128xf32>
    %70 = vector.extract_strided_slice %66 {offsets = [0, 128], sizes = [2, 128], strides = [1, 1]} : vector<2x384xf32> to vector<2x128xf32>
    %71 = vector.extract_strided_slice %66 {offsets = [0, 256], sizes = [2, 128], strides = [1, 1]} : vector<2x384xf32> to vector<2x128xf32>
    %72 = arith.mulf %70, %29 : vector<2x128xf32>
    %73 = arith.mulf %69, %68 : vector<2x128xf32>
    %74 = arith.addf %72, %73 : vector<2x128xf32>
    %75 = math.tanh %74 : vector<2x128xf32>
    %76 = arith.mulf %71, %75 : vector<2x128xf32>
    %77 = arith.truncf %76 : vector<2x128xf32> to vector<2x128xbf16>
    %c0_23 = arith.constant 0 : index
    %c0_24 = arith.constant 0 : index
    %78 = vector.load %arg5[%c0_23, %c0_24] : memref<128x512xbf16, #tpu.memory_space<vmem>>, vector<128x512xbf16>
    %cst_25 = arith.constant dense<0.000000e+00> : vector<2x512xf32>
    %79 = tpu.matmul %77, %78, %cst_25 {dimension_numbers = #tpu.dot_dimension_numbers<[1], [0], [0], [1], [0, 0, 1, 1], [], []>} : vector<2x128xbf16>, vector<128x512xbf16>, vector<2x512xf32> -> vector<2x512xf32>
    %80 = arith.truncf %55 : vector<2x128xf32> to vector<2x128xbf16>
    %c0_26 = arith.constant 0 : index
    %c0_27 = arith.constant 0 : index
    %81 = vector.load %arg6[%c0_26, %c0_27] : memref<128x512xbf16, #tpu.memory_space<vmem>>, vector<128x512xbf16>
    %cst_28 = arith.constant dense<0.000000e+00> : vector<2x512xf32>
    %82 = tpu.matmul %80, %81, %cst_28 {dimension_numbers = #tpu.dot_dimension_numbers<[1], [0], [0], [1], [0, 0, 1, 1], [], []>} : vector<2x128xbf16>, vector<128x512xbf16>, vector<2x512xf32> -> vector<2x512xf32>
    %83 = arith.addf %79, %82 : vector<2x512xf32>
    %84 = arith.addf %83, %9 : vector<2x512xf32>
    %85 = vector.extract_strided_slice %84 {offsets = [0, 0], sizes = [2, 384], strides = [1, 1]} : vector<2x512xf32> to vector<2x384xf32>
    %86 = arith.negf %85 : vector<2x384xf32>
    %87 = math.exp %86 : vector<2x384xf32>
    %cst_29 = arith.constant 1.000000e+00 : f32
    %88 = vector.broadcast %cst_29 : f32 to vector<2x384xf32>
    %89 = arith.addf %88, %87 : vector<2x384xf32>
    %90 = arith.divf %88, %89 : vector<2x384xf32>
    %91 = vector.extract_strided_slice %84 {offsets = [0, 384], sizes = [2, 128], strides = [1, 1]} : vector<2x512xf32> to vector<2x128xf32>
    %92 = math.tanh %91 : vector<2x128xf32>
    %93 = vector.extract_strided_slice %90 {offsets = [0, 0], sizes = [2, 128], strides = [1, 1]} : vector<2x384xf32> to vector<2x128xf32>
    %94 = vector.extract_strided_slice %90 {offsets = [0, 128], sizes = [2, 128], strides = [1, 1]} : vector<2x384xf32> to vector<2x128xf32>
    %95 = vector.extract_strided_slice %90 {offsets = [0, 256], sizes = [2, 128], strides = [1, 1]} : vector<2x384xf32> to vector<2x128xf32>
    %96 = arith.mulf %94, %53 : vector<2x128xf32>
    %97 = arith.mulf %93, %92 : vector<2x128xf32>
    %98 = arith.addf %96, %97 : vector<2x128xf32>
    %99 = math.tanh %98 : vector<2x128xf32>
    %100 = arith.mulf %95, %99 : vector<2x128xf32>
    %101 = vector.extract_strided_slice %6 {offsets = [4, 0], sizes = [2, 512], strides = [1, 1]} : vector<16x512xf32> to vector<2x512xf32>
    %102 = arith.truncf %76 : vector<2x128xf32> to vector<2x128xbf16>
    %c0_30 = arith.constant 0 : index
    %c0_31 = arith.constant 0 : index
    %103 = vector.load %arg3[%c0_30, %c0_31] : memref<128x512xbf16, #tpu.memory_space<vmem>>, vector<128x512xbf16>
    %cst_32 = arith.constant dense<0.000000e+00> : vector<2x512xf32>
    %104 = tpu.matmul %102, %103, %cst_32 {dimension_numbers = #tpu.dot_dimension_numbers<[1], [0], [0], [1], [0, 0, 1, 1], [], []>} : vector<2x128xbf16>, vector<128x512xbf16>, vector<2x512xf32> -> vector<2x512xf32>
    %105 = arith.addf %101, %104 : vector<2x512xf32>
    %106 = vector.extract_strided_slice %105 {offsets = [0, 0], sizes = [2, 384], strides = [1, 1]} : vector<2x512xf32> to vector<2x384xf32>
    %107 = arith.negf %106 : vector<2x384xf32>
    %108 = math.exp %107 : vector<2x384xf32>
    %cst_33 = arith.constant 1.000000e+00 : f32
    %109 = vector.broadcast %cst_33 : f32 to vector<2x384xf32>
    %110 = arith.addf %109, %108 : vector<2x384xf32>
    %111 = arith.divf %109, %110 : vector<2x384xf32>
    %112 = vector.extract_strided_slice %105 {offsets = [0, 384], sizes = [2, 128], strides = [1, 1]} : vector<2x512xf32> to vector<2x128xf32>
    %113 = math.tanh %112 : vector<2x128xf32>
    %114 = vector.extract_strided_slice %111 {offsets = [0, 0], sizes = [2, 128], strides = [1, 1]} : vector<2x384xf32> to vector<2x128xf32>
    %115 = vector.extract_strided_slice %111 {offsets = [0, 128], sizes = [2, 128], strides = [1, 1]} : vector<2x384xf32> to vector<2x128xf32>
    %116 = vector.extract_strided_slice %111 {offsets = [0, 256], sizes = [2, 128], strides = [1, 1]} : vector<2x384xf32> to vector<2x128xf32>
    %117 = arith.mulf %115, %74 : vector<2x128xf32>
    %118 = arith.mulf %114, %113 : vector<2x128xf32>
    %119 = arith.addf %117, %118 : vector<2x128xf32>
    %120 = math.tanh %119 : vector<2x128xf32>
    %121 = arith.mulf %116, %120 : vector<2x128xf32>
    %122 = arith.truncf %121 : vector<2x128xf32> to vector<2x128xbf16>
    %c0_34 = arith.constant 0 : index
    %c0_35 = arith.constant 0 : index
    %123 = vector.load %arg5[%c0_34, %c0_35] : memref<128x512xbf16, #tpu.memory_space<vmem>>, vector<128x512xbf16>
    %cst_36 = arith.constant dense<0.000000e+00> : vector<2x512xf32>
    %124 = tpu.matmul %122, %123, %cst_36 {dimension_numbers = #tpu.dot_dimension_numbers<[1], [0], [0], [1], [0, 0, 1, 1], [], []>} : vector<2x128xbf16>, vector<128x512xbf16>, vector<2x512xf32> -> vector<2x512xf32>
    %125 = arith.truncf %100 : vector<2x128xf32> to vector<2x128xbf16>
    %c0_37 = arith.constant 0 : index
    %c0_38 = arith.constant 0 : index
    %126 = vector.load %arg6[%c0_37, %c0_38] : memref<128x512xbf16, #tpu.memory_space<vmem>>, vector<128x512xbf16>
    %cst_39 = arith.constant dense<0.000000e+00> : vector<2x512xf32>
    %127 = tpu.matmul %125, %126, %cst_39 {dimension_numbers = #tpu.dot_dimension_numbers<[1], [0], [0], [1], [0, 0, 1, 1], [], []>} : vector<2x128xbf16>, vector<128x512xbf16>, vector<2x512xf32> -> vector<2x512xf32>
    %128 = arith.addf %124, %127 : vector<2x512xf32>
    %129 = arith.addf %128, %9 : vector<2x512xf32>
    %130 = vector.extract_strided_slice %129 {offsets = [0, 0], sizes = [2, 384], strides = [1, 1]} : vector<2x512xf32> to vector<2x384xf32>
    %131 = arith.negf %130 : vector<2x384xf32>
    %132 = math.exp %131 : vector<2x384xf32>
    %cst_40 = arith.constant 1.000000e+00 : f32
    %133 = vector.broadcast %cst_40 : f32 to vector<2x384xf32>
    %134 = arith.addf %133, %132 : vector<2x384xf32>
    %135 = arith.divf %133, %134 : vector<2x384xf32>
    %136 = vector.extract_strided_slice %129 {offsets = [0, 384], sizes = [2, 128], strides = [1, 1]} : vector<2x512xf32> to vector<2x128xf32>
    %137 = math.tanh %136 : vector<2x128xf32>
    %138 = vector.extract_strided_slice %135 {offsets = [0, 0], sizes = [2, 128], strides = [1, 1]} : vector<2x384xf32> to vector<2x128xf32>
    %139 = vector.extract_strided_slice %135 {offsets = [0, 128], sizes = [2, 128], strides = [1, 1]} : vector<2x384xf32> to vector<2x128xf32>
    %140 = vector.extract_strided_slice %135 {offsets = [0, 256], sizes = [2, 128], strides = [1, 1]} : vector<2x384xf32> to vector<2x128xf32>
    %141 = arith.mulf %139, %98 : vector<2x128xf32>
    %142 = arith.mulf %138, %137 : vector<2x128xf32>
    %143 = arith.addf %141, %142 : vector<2x128xf32>
    %144 = math.tanh %143 : vector<2x128xf32>
    %145 = arith.mulf %140, %144 : vector<2x128xf32>
    %146 = vector.extract_strided_slice %6 {offsets = [6, 0], sizes = [2, 512], strides = [1, 1]} : vector<16x512xf32> to vector<2x512xf32>
    %147 = arith.truncf %121 : vector<2x128xf32> to vector<2x128xbf16>
    %c0_41 = arith.constant 0 : index
    %c0_42 = arith.constant 0 : index
    %148 = vector.load %arg3[%c0_41, %c0_42] : memref<128x512xbf16, #tpu.memory_space<vmem>>, vector<128x512xbf16>
    %cst_43 = arith.constant dense<0.000000e+00> : vector<2x512xf32>
    %149 = tpu.matmul %147, %148, %cst_43 {dimension_numbers = #tpu.dot_dimension_numbers<[1], [0], [0], [1], [0, 0, 1, 1], [], []>} : vector<2x128xbf16>, vector<128x512xbf16>, vector<2x512xf32> -> vector<2x512xf32>
    %150 = arith.addf %146, %149 : vector<2x512xf32>
    %151 = vector.extract_strided_slice %150 {offsets = [0, 0], sizes = [2, 384], strides = [1, 1]} : vector<2x512xf32> to vector<2x384xf32>
    %152 = arith.negf %151 : vector<2x384xf32>
    %153 = math.exp %152 : vector<2x384xf32>
    %cst_44 = arith.constant 1.000000e+00 : f32
    %154 = vector.broadcast %cst_44 : f32 to vector<2x384xf32>
    %155 = arith.addf %154, %153 : vector<2x384xf32>
    %156 = arith.divf %154, %155 : vector<2x384xf32>
    %157 = vector.extract_strided_slice %150 {offsets = [0, 384], sizes = [2, 128], strides = [1, 1]} : vector<2x512xf32> to vector<2x128xf32>
    %158 = math.tanh %157 : vector<2x128xf32>
    %159 = vector.extract_strided_slice %156 {offsets = [0, 0], sizes = [2, 128], strides = [1, 1]} : vector<2x384xf32> to vector<2x128xf32>
    %160 = vector.extract_strided_slice %156 {offsets = [0, 128], sizes = [2, 128], strides = [1, 1]} : vector<2x384xf32> to vector<2x128xf32>
    %161 = vector.extract_strided_slice %156 {offsets = [0, 256], sizes = [2, 128], strides = [1, 1]} : vector<2x384xf32> to vector<2x128xf32>
    %162 = arith.mulf %160, %119 : vector<2x128xf32>
    %163 = arith.mulf %159, %158 : vector<2x128xf32>
    %164 = arith.addf %162, %163 : vector<2x128xf32>
    %165 = math.tanh %164 : vector<2x128xf32>
    %166 = arith.mulf %161, %165 : vector<2x128xf32>
    %167 = arith.truncf %166 : vector<2x128xf32> to vector<2x128xbf16>
    %c0_45 = arith.constant 0 : index
    %c0_46 = arith.constant 0 : index
    %168 = vector.load %arg5[%c0_45, %c0_46] : memref<128x512xbf16, #tpu.memory_space<vmem>>, vector<128x512xbf16>
    %cst_47 = arith.constant dense<0.000000e+00> : vector<2x512xf32>
    %169 = tpu.matmul %167, %168, %cst_47 {dimension_numbers = #tpu.dot_dimension_numbers<[1], [0], [0], [1], [0, 0, 1, 1], [], []>} : vector<2x128xbf16>, vector<128x512xbf16>, vector<2x512xf32> -> vector<2x512xf32>
    %170 = arith.truncf %145 : vector<2x128xf32> to vector<2x128xbf16>
    %c0_48 = arith.constant 0 : index
    %c0_49 = arith.constant 0 : index
    %171 = vector.load %arg6[%c0_48, %c0_49] : memref<128x512xbf16, #tpu.memory_space<vmem>>, vector<128x512xbf16>
    %cst_50 = arith.constant dense<0.000000e+00> : vector<2x512xf32>
    %172 = tpu.matmul %170, %171, %cst_50 {dimension_numbers = #tpu.dot_dimension_numbers<[1], [0], [0], [1], [0, 0, 1, 1], [], []>} : vector<2x128xbf16>, vector<128x512xbf16>, vector<2x512xf32> -> vector<2x512xf32>
    %173 = arith.addf %169, %172 : vector<2x512xf32>
    %174 = arith.addf %173, %9 : vector<2x512xf32>
    %175 = vector.extract_strided_slice %174 {offsets = [0, 0], sizes = [2, 384], strides = [1, 1]} : vector<2x512xf32> to vector<2x384xf32>
    %176 = arith.negf %175 : vector<2x384xf32>
    %177 = math.exp %176 : vector<2x384xf32>
    %cst_51 = arith.constant 1.000000e+00 : f32
    %178 = vector.broadcast %cst_51 : f32 to vector<2x384xf32>
    %179 = arith.addf %178, %177 : vector<2x384xf32>
    %180 = arith.divf %178, %179 : vector<2x384xf32>
    %181 = vector.extract_strided_slice %174 {offsets = [0, 384], sizes = [2, 128], strides = [1, 1]} : vector<2x512xf32> to vector<2x128xf32>
    %182 = math.tanh %181 : vector<2x128xf32>
    %183 = vector.extract_strided_slice %180 {offsets = [0, 0], sizes = [2, 128], strides = [1, 1]} : vector<2x384xf32> to vector<2x128xf32>
    %184 = vector.extract_strided_slice %180 {offsets = [0, 128], sizes = [2, 128], strides = [1, 1]} : vector<2x384xf32> to vector<2x128xf32>
    %185 = vector.extract_strided_slice %180 {offsets = [0, 256], sizes = [2, 128], strides = [1, 1]} : vector<2x384xf32> to vector<2x128xf32>
    %186 = arith.mulf %184, %143 : vector<2x128xf32>
    %187 = arith.mulf %183, %182 : vector<2x128xf32>
    %188 = arith.addf %186, %187 : vector<2x128xf32>
    %189 = math.tanh %188 : vector<2x128xf32>
    %190 = arith.mulf %185, %189 : vector<2x128xf32>
    %191 = vector.extract_strided_slice %6 {offsets = [8, 0], sizes = [2, 512], strides = [1, 1]} : vector<16x512xf32> to vector<2x512xf32>
    %192 = arith.truncf %166 : vector<2x128xf32> to vector<2x128xbf16>
    %c0_52 = arith.constant 0 : index
    %c0_53 = arith.constant 0 : index
    %193 = vector.load %arg3[%c0_52, %c0_53] : memref<128x512xbf16, #tpu.memory_space<vmem>>, vector<128x512xbf16>
    %cst_54 = arith.constant dense<0.000000e+00> : vector<2x512xf32>
    %194 = tpu.matmul %192, %193, %cst_54 {dimension_numbers = #tpu.dot_dimension_numbers<[1], [0], [0], [1], [0, 0, 1, 1], [], []>} : vector<2x128xbf16>, vector<128x512xbf16>, vector<2x512xf32> -> vector<2x512xf32>
    %195 = arith.addf %191, %194 : vector<2x512xf32>
    %196 = vector.extract_strided_slice %195 {offsets = [0, 0], sizes = [2, 384], strides = [1, 1]} : vector<2x512xf32> to vector<2x384xf32>
    %197 = arith.negf %196 : vector<2x384xf32>
    %198 = math.exp %197 : vector<2x384xf32>
    %cst_55 = arith.constant 1.000000e+00 : f32
    %199 = vector.broadcast %cst_55 : f32 to vector<2x384xf32>
    %200 = arith.addf %199, %198 : vector<2x384xf32>
    %201 = arith.divf %199, %200 : vector<2x384xf32>
    %202 = vector.extract_strided_slice %195 {offsets = [0, 384], sizes = [2, 128], strides = [1, 1]} : vector<2x512xf32> to vector<2x128xf32>
    %203 = math.tanh %202 : vector<2x128xf32>
    %204 = vector.extract_strided_slice %201 {offsets = [0, 0], sizes = [2, 128], strides = [1, 1]} : vector<2x384xf32> to vector<2x128xf32>
    %205 = vector.extract_strided_slice %201 {offsets = [0, 128], sizes = [2, 128], strides = [1, 1]} : vector<2x384xf32> to vector<2x128xf32>
    %206 = vector.extract_strided_slice %201 {offsets = [0, 256], sizes = [2, 128], strides = [1, 1]} : vector<2x384xf32> to vector<2x128xf32>
    %207 = arith.mulf %205, %164 : vector<2x128xf32>
    %208 = arith.mulf %204, %203 : vector<2x128xf32>
    %209 = arith.addf %207, %208 : vector<2x128xf32>
    %210 = math.tanh %209 : vector<2x128xf32>
    %211 = arith.mulf %206, %210 : vector<2x128xf32>
    %212 = arith.truncf %211 : vector<2x128xf32> to vector<2x128xbf16>
    %c0_56 = arith.constant 0 : index
    %c0_57 = arith.constant 0 : index
    %213 = vector.load %arg5[%c0_56, %c0_57] : memref<128x512xbf16, #tpu.memory_space<vmem>>, vector<128x512xbf16>
    %cst_58 = arith.constant dense<0.000000e+00> : vector<2x512xf32>
    %214 = tpu.matmul %212, %213, %cst_58 {dimension_numbers = #tpu.dot_dimension_numbers<[1], [0], [0], [1], [0, 0, 1, 1], [], []>} : vector<2x128xbf16>, vector<128x512xbf16>, vector<2x512xf32> -> vector<2x512xf32>
    %215 = arith.truncf %190 : vector<2x128xf32> to vector<2x128xbf16>
    %c0_59 = arith.constant 0 : index
    %c0_60 = arith.constant 0 : index
    %216 = vector.load %arg6[%c0_59, %c0_60] : memref<128x512xbf16, #tpu.memory_space<vmem>>, vector<128x512xbf16>
    %cst_61 = arith.constant dense<0.000000e+00> : vector<2x512xf32>
    %217 = tpu.matmul %215, %216, %cst_61 {dimension_numbers = #tpu.dot_dimension_numbers<[1], [0], [0], [1], [0, 0, 1, 1], [], []>} : vector<2x128xbf16>, vector<128x512xbf16>, vector<2x512xf32> -> vector<2x512xf32>
    %218 = arith.addf %214, %217 : vector<2x512xf32>
    %219 = arith.addf %218, %9 : vector<2x512xf32>
    %220 = vector.extract_strided_slice %219 {offsets = [0, 0], sizes = [2, 384], strides = [1, 1]} : vector<2x512xf32> to vector<2x384xf32>
    %221 = arith.negf %220 : vector<2x384xf32>
    %222 = math.exp %221 : vector<2x384xf32>
    %cst_62 = arith.constant 1.000000e+00 : f32
    %223 = vector.broadcast %cst_62 : f32 to vector<2x384xf32>
    %224 = arith.addf %223, %222 : vector<2x384xf32>
    %225 = arith.divf %223, %224 : vector<2x384xf32>
    %226 = vector.extract_strided_slice %219 {offsets = [0, 384], sizes = [2, 128], strides = [1, 1]} : vector<2x512xf32> to vector<2x128xf32>
    %227 = math.tanh %226 : vector<2x128xf32>
    %228 = vector.extract_strided_slice %225 {offsets = [0, 0], sizes = [2, 128], strides = [1, 1]} : vector<2x384xf32> to vector<2x128xf32>
    %229 = vector.extract_strided_slice %225 {offsets = [0, 128], sizes = [2, 128], strides = [1, 1]} : vector<2x384xf32> to vector<2x128xf32>
    %230 = vector.extract_strided_slice %225 {offsets = [0, 256], sizes = [2, 128], strides = [1, 1]} : vector<2x384xf32> to vector<2x128xf32>
    %231 = arith.mulf %229, %188 : vector<2x128xf32>
    %232 = arith.mulf %228, %227 : vector<2x128xf32>
    %233 = arith.addf %231, %232 : vector<2x128xf32>
    %234 = math.tanh %233 : vector<2x128xf32>
    %235 = arith.mulf %230, %234 : vector<2x128xf32>
    %236 = vector.extract_strided_slice %6 {offsets = [10, 0], sizes = [2, 512], strides = [1, 1]} : vector<16x512xf32> to vector<2x512xf32>
    %237 = arith.truncf %211 : vector<2x128xf32> to vector<2x128xbf16>
    %c0_63 = arith.constant 0 : index
    %c0_64 = arith.constant 0 : index
    %238 = vector.load %arg3[%c0_63, %c0_64] : memref<128x512xbf16, #tpu.memory_space<vmem>>, vector<128x512xbf16>
    %cst_65 = arith.constant dense<0.000000e+00> : vector<2x512xf32>
    %239 = tpu.matmul %237, %238, %cst_65 {dimension_numbers = #tpu.dot_dimension_numbers<[1], [0], [0], [1], [0, 0, 1, 1], [], []>} : vector<2x128xbf16>, vector<128x512xbf16>, vector<2x512xf32> -> vector<2x512xf32>
    %240 = arith.addf %236, %239 : vector<2x512xf32>
    %241 = vector.extract_strided_slice %240 {offsets = [0, 0], sizes = [2, 384], strides = [1, 1]} : vector<2x512xf32> to vector<2x384xf32>
    %242 = arith.negf %241 : vector<2x384xf32>
    %243 = math.exp %242 : vector<2x384xf32>
    %cst_66 = arith.constant 1.000000e+00 : f32
    %244 = vector.broadcast %cst_66 : f32 to vector<2x384xf32>
    %245 = arith.addf %244, %243 : vector<2x384xf32>
    %246 = arith.divf %244, %245 : vector<2x384xf32>
    %247 = vector.extract_strided_slice %240 {offsets = [0, 384], sizes = [2, 128], strides = [1, 1]} : vector<2x512xf32> to vector<2x128xf32>
    %248 = math.tanh %247 : vector<2x128xf32>
    %249 = vector.extract_strided_slice %246 {offsets = [0, 0], sizes = [2, 128], strides = [1, 1]} : vector<2x384xf32> to vector<2x128xf32>
    %250 = vector.extract_strided_slice %246 {offsets = [0, 128], sizes = [2, 128], strides = [1, 1]} : vector<2x384xf32> to vector<2x128xf32>
    %251 = vector.extract_strided_slice %246 {offsets = [0, 256], sizes = [2, 128], strides = [1, 1]} : vector<2x384xf32> to vector<2x128xf32>
    %252 = arith.mulf %250, %209 : vector<2x128xf32>
    %253 = arith.mulf %249, %248 : vector<2x128xf32>
    %254 = arith.addf %252, %253 : vector<2x128xf32>
    %255 = math.tanh %254 : vector<2x128xf32>
    %256 = arith.mulf %251, %255 : vector<2x128xf32>
    %257 = arith.truncf %256 : vector<2x128xf32> to vector<2x128xbf16>
    %c0_67 = arith.constant 0 : index
    %c0_68 = arith.constant 0 : index
    %258 = vector.load %arg5[%c0_67, %c0_68] : memref<128x512xbf16, #tpu.memory_space<vmem>>, vector<128x512xbf16>
    %cst_69 = arith.constant dense<0.000000e+00> : vector<2x512xf32>
    %259 = tpu.matmul %257, %258, %cst_69 {dimension_numbers = #tpu.dot_dimension_numbers<[1], [0], [0], [1], [0, 0, 1, 1], [], []>} : vector<2x128xbf16>, vector<128x512xbf16>, vector<2x512xf32> -> vector<2x512xf32>
    %260 = arith.truncf %235 : vector<2x128xf32> to vector<2x128xbf16>
    %c0_70 = arith.constant 0 : index
    %c0_71 = arith.constant 0 : index
    %261 = vector.load %arg6[%c0_70, %c0_71] : memref<128x512xbf16, #tpu.memory_space<vmem>>, vector<128x512xbf16>
    %cst_72 = arith.constant dense<0.000000e+00> : vector<2x512xf32>
    %262 = tpu.matmul %260, %261, %cst_72 {dimension_numbers = #tpu.dot_dimension_numbers<[1], [0], [0], [1], [0, 0, 1, 1], [], []>} : vector<2x128xbf16>, vector<128x512xbf16>, vector<2x512xf32> -> vector<2x512xf32>
    %263 = arith.addf %259, %262 : vector<2x512xf32>
    %264 = arith.addf %263, %9 : vector<2x512xf32>
    %265 = vector.extract_strided_slice %264 {offsets = [0, 0], sizes = [2, 384], strides = [1, 1]} : vector<2x512xf32> to vector<2x384xf32>
    %266 = arith.negf %265 : vector<2x384xf32>
    %267 = math.exp %266 : vector<2x384xf32>
    %cst_73 = arith.constant 1.000000e+00 : f32
    %268 = vector.broadcast %cst_73 : f32 to vector<2x384xf32>
    %269 = arith.addf %268, %267 : vector<2x384xf32>
    %270 = arith.divf %268, %269 : vector<2x384xf32>
    %271 = vector.extract_strided_slice %264 {offsets = [0, 384], sizes = [2, 128], strides = [1, 1]} : vector<2x512xf32> to vector<2x128xf32>
    %272 = math.tanh %271 : vector<2x128xf32>
    %273 = vector.extract_strided_slice %270 {offsets = [0, 0], sizes = [2, 128], strides = [1, 1]} : vector<2x384xf32> to vector<2x128xf32>
    %274 = vector.extract_strided_slice %270 {offsets = [0, 128], sizes = [2, 128], strides = [1, 1]} : vector<2x384xf32> to vector<2x128xf32>
    %275 = vector.extract_strided_slice %270 {offsets = [0, 256], sizes = [2, 128], strides = [1, 1]} : vector<2x384xf32> to vector<2x128xf32>
    %276 = arith.mulf %274, %233 : vector<2x128xf32>
    %277 = arith.mulf %273, %272 : vector<2x128xf32>
    %278 = arith.addf %276, %277 : vector<2x128xf32>
    %279 = math.tanh %278 : vector<2x128xf32>
    %280 = arith.mulf %275, %279 : vector<2x128xf32>
    %281 = vector.extract_strided_slice %6 {offsets = [12, 0], sizes = [2, 512], strides = [1, 1]} : vector<16x512xf32> to vector<2x512xf32>
    %282 = arith.truncf %256 : vector<2x128xf32> to vector<2x128xbf16>
    %c0_74 = arith.constant 0 : index
    %c0_75 = arith.constant 0 : index
    %283 = vector.load %arg3[%c0_74, %c0_75] : memref<128x512xbf16, #tpu.memory_space<vmem>>, vector<128x512xbf16>
    %cst_76 = arith.constant dense<0.000000e+00> : vector<2x512xf32>
    %284 = tpu.matmul %282, %283, %cst_76 {dimension_numbers = #tpu.dot_dimension_numbers<[1], [0], [0], [1], [0, 0, 1, 1], [], []>} : vector<2x128xbf16>, vector<128x512xbf16>, vector<2x512xf32> -> vector<2x512xf32>
    %285 = arith.addf %281, %284 : vector<2x512xf32>
    %286 = vector.extract_strided_slice %285 {offsets = [0, 0], sizes = [2, 384], strides = [1, 1]} : vector<2x512xf32> to vector<2x384xf32>
    %287 = arith.negf %286 : vector<2x384xf32>
    %288 = math.exp %287 : vector<2x384xf32>
    %cst_77 = arith.constant 1.000000e+00 : f32
    %289 = vector.broadcast %cst_77 : f32 to vector<2x384xf32>
    %290 = arith.addf %289, %288 : vector<2x384xf32>
    %291 = arith.divf %289, %290 : vector<2x384xf32>
    %292 = vector.extract_strided_slice %285 {offsets = [0, 384], sizes = [2, 128], strides = [1, 1]} : vector<2x512xf32> to vector<2x128xf32>
    %293 = math.tanh %292 : vector<2x128xf32>
    %294 = vector.extract_strided_slice %291 {offsets = [0, 0], sizes = [2, 128], strides = [1, 1]} : vector<2x384xf32> to vector<2x128xf32>
    %295 = vector.extract_strided_slice %291 {offsets = [0, 128], sizes = [2, 128], strides = [1, 1]} : vector<2x384xf32> to vector<2x128xf32>
    %296 = vector.extract_strided_slice %291 {offsets = [0, 256], sizes = [2, 128], strides = [1, 1]} : vector<2x384xf32> to vector<2x128xf32>
    %297 = arith.mulf %295, %254 : vector<2x128xf32>
    %298 = arith.mulf %294, %293 : vector<2x128xf32>
    %299 = arith.addf %297, %298 : vector<2x128xf32>
    %300 = math.tanh %299 : vector<2x128xf32>
    %301 = arith.mulf %296, %300 : vector<2x128xf32>
    %302 = arith.truncf %301 : vector<2x128xf32> to vector<2x128xbf16>
    %c0_78 = arith.constant 0 : index
    %c0_79 = arith.constant 0 : index
    %303 = vector.load %arg5[%c0_78, %c0_79] : memref<128x512xbf16, #tpu.memory_space<vmem>>, vector<128x512xbf16>
    %cst_80 = arith.constant dense<0.000000e+00> : vector<2x512xf32>
    %304 = tpu.matmul %302, %303, %cst_80 {dimension_numbers = #tpu.dot_dimension_numbers<[1], [0], [0], [1], [0, 0, 1, 1], [], []>} : vector<2x128xbf16>, vector<128x512xbf16>, vector<2x512xf32> -> vector<2x512xf32>
    %305 = arith.truncf %280 : vector<2x128xf32> to vector<2x128xbf16>
    %c0_81 = arith.constant 0 : index
    %c0_82 = arith.constant 0 : index
    %306 = vector.load %arg6[%c0_81, %c0_82] : memref<128x512xbf16, #tpu.memory_space<vmem>>, vector<128x512xbf16>
    %cst_83 = arith.constant dense<0.000000e+00> : vector<2x512xf32>
    %307 = tpu.matmul %305, %306, %cst_83 {dimension_numbers = #tpu.dot_dimension_numbers<[1], [0], [0], [1], [0, 0, 1, 1], [], []>} : vector<2x128xbf16>, vector<128x512xbf16>, vector<2x512xf32> -> vector<2x512xf32>
    %308 = arith.addf %304, %307 : vector<2x512xf32>
    %309 = arith.addf %308, %9 : vector<2x512xf32>
    %310 = vector.extract_strided_slice %309 {offsets = [0, 0], sizes = [2, 384], strides = [1, 1]} : vector<2x512xf32> to vector<2x384xf32>
    %311 = arith.negf %310 : vector<2x384xf32>
    %312 = math.exp %311 : vector<2x384xf32>
    %cst_84 = arith.constant 1.000000e+00 : f32
    %313 = vector.broadcast %cst_84 : f32 to vector<2x384xf32>
    %314 = arith.addf %313, %312 : vector<2x384xf32>
    %315 = arith.divf %313, %314 : vector<2x384xf32>
    %316 = vector.extract_strided_slice %309 {offsets = [0, 384], sizes = [2, 128], strides = [1, 1]} : vector<2x512xf32> to vector<2x128xf32>
    %317 = math.tanh %316 : vector<2x128xf32>
    %318 = vector.extract_strided_slice %315 {offsets = [0, 0], sizes = [2, 128], strides = [1, 1]} : vector<2x384xf32> to vector<2x128xf32>
    %319 = vector.extract_strided_slice %315 {offsets = [0, 128], sizes = [2, 128], strides = [1, 1]} : vector<2x384xf32> to vector<2x128xf32>
    %320 = vector.extract_strided_slice %315 {offsets = [0, 256], sizes = [2, 128], strides = [1, 1]} : vector<2x384xf32> to vector<2x128xf32>
    %321 = arith.mulf %319, %278 : vector<2x128xf32>
    %322 = arith.mulf %318, %317 : vector<2x128xf32>
    %323 = arith.addf %321, %322 : vector<2x128xf32>
    %324 = math.tanh %323 : vector<2x128xf32>
    %325 = arith.mulf %320, %324 : vector<2x128xf32>
    %326 = vector.extract_strided_slice %6 {offsets = [14, 0], sizes = [2, 512], strides = [1, 1]} : vector<16x512xf32> to vector<2x512xf32>
    %327 = arith.truncf %301 : vector<2x128xf32> to vector<2x128xbf16>
    %c0_85 = arith.constant 0 : index
    %c0_86 = arith.constant 0 : index
    %328 = vector.load %arg3[%c0_85, %c0_86] : memref<128x512xbf16, #tpu.memory_space<vmem>>, vector<128x512xbf16>
    %cst_87 = arith.constant dense<0.000000e+00> : vector<2x512xf32>
    %329 = tpu.matmul %327, %328, %cst_87 {dimension_numbers = #tpu.dot_dimension_numbers<[1], [0], [0], [1], [0, 0, 1, 1], [], []>} : vector<2x128xbf16>, vector<128x512xbf16>, vector<2x512xf32> -> vector<2x512xf32>
    %330 = arith.addf %326, %329 : vector<2x512xf32>
    %331 = vector.extract_strided_slice %330 {offsets = [0, 0], sizes = [2, 384], strides = [1, 1]} : vector<2x512xf32> to vector<2x384xf32>
    %332 = arith.negf %331 : vector<2x384xf32>
    %333 = math.exp %332 : vector<2x384xf32>
    %cst_88 = arith.constant 1.000000e+00 : f32
    %334 = vector.broadcast %cst_88 : f32 to vector<2x384xf32>
    %335 = arith.addf %334, %333 : vector<2x384xf32>
    %336 = arith.divf %334, %335 : vector<2x384xf32>
    %337 = vector.extract_strided_slice %330 {offsets = [0, 384], sizes = [2, 128], strides = [1, 1]} : vector<2x512xf32> to vector<2x128xf32>
    %338 = math.tanh %337 : vector<2x128xf32>
    %339 = vector.extract_strided_slice %336 {offsets = [0, 0], sizes = [2, 128], strides = [1, 1]} : vector<2x384xf32> to vector<2x128xf32>
    %340 = vector.extract_strided_slice %336 {offsets = [0, 128], sizes = [2, 128], strides = [1, 1]} : vector<2x384xf32> to vector<2x128xf32>
    %341 = vector.extract_strided_slice %336 {offsets = [0, 256], sizes = [2, 128], strides = [1, 1]} : vector<2x384xf32> to vector<2x128xf32>
    %342 = arith.mulf %340, %299 : vector<2x128xf32>
    %343 = arith.mulf %339, %338 : vector<2x128xf32>
    %344 = arith.addf %342, %343 : vector<2x128xf32>
    %345 = math.tanh %344 : vector<2x128xf32>
    %346 = arith.mulf %341, %345 : vector<2x128xf32>
    %347 = arith.truncf %346 : vector<2x128xf32> to vector<2x128xbf16>
    %c0_89 = arith.constant 0 : index
    %c0_90 = arith.constant 0 : index
    %348 = vector.load %arg5[%c0_89, %c0_90] : memref<128x512xbf16, #tpu.memory_space<vmem>>, vector<128x512xbf16>
    %cst_91 = arith.constant dense<0.000000e+00> : vector<2x512xf32>
    %349 = tpu.matmul %347, %348, %cst_91 {dimension_numbers = #tpu.dot_dimension_numbers<[1], [0], [0], [1], [0, 0, 1, 1], [], []>} : vector<2x128xbf16>, vector<128x512xbf16>, vector<2x512xf32> -> vector<2x512xf32>
    %350 = arith.truncf %325 : vector<2x128xf32> to vector<2x128xbf16>
    %c0_92 = arith.constant 0 : index
    %c0_93 = arith.constant 0 : index
    %351 = vector.load %arg6[%c0_92, %c0_93] : memref<128x512xbf16, #tpu.memory_space<vmem>>, vector<128x512xbf16>
    %cst_94 = arith.constant dense<0.000000e+00> : vector<2x512xf32>
    %352 = tpu.matmul %350, %351, %cst_94 {dimension_numbers = #tpu.dot_dimension_numbers<[1], [0], [0], [1], [0, 0, 1, 1], [], []>} : vector<2x128xbf16>, vector<128x512xbf16>, vector<2x512xf32> -> vector<2x512xf32>
    %353 = arith.addf %349, %352 : vector<2x512xf32>
    %354 = arith.addf %353, %9 : vector<2x512xf32>
    %355 = vector.extract_strided_slice %354 {offsets = [0, 0], sizes = [2, 384], strides = [1, 1]} : vector<2x512xf32> to vector<2x384xf32>
    %356 = arith.negf %355 : vector<2x384xf32>
    %357 = math.exp %356 : vector<2x384xf32>
    %cst_95 = arith.constant 1.000000e+00 : f32
    %358 = vector.broadcast %cst_95 : f32 to vector<2x384xf32>
    %359 = arith.addf %358, %357 : vector<2x384xf32>
    %360 = arith.divf %358, %359 : vector<2x384xf32>
    %361 = vector.extract_strided_slice %354 {offsets = [0, 384], sizes = [2, 128], strides = [1, 1]} : vector<2x512xf32> to vector<2x128xf32>
    %362 = math.tanh %361 : vector<2x128xf32>
    %363 = vector.extract_strided_slice %360 {offsets = [0, 0], sizes = [2, 128], strides = [1, 1]} : vector<2x384xf32> to vector<2x128xf32>
    %364 = vector.extract_strided_slice %360 {offsets = [0, 128], sizes = [2, 128], strides = [1, 1]} : vector<2x384xf32> to vector<2x128xf32>
    %365 = vector.extract_strided_slice %360 {offsets = [0, 256], sizes = [2, 128], strides = [1, 1]} : vector<2x384xf32> to vector<2x128xf32>
    %366 = arith.mulf %364, %323 : vector<2x128xf32>
    %367 = arith.mulf %363, %362 : vector<2x128xf32>
    %368 = arith.addf %366, %367 : vector<2x128xf32>
    %369 = math.tanh %368 : vector<2x128xf32>
    %370 = arith.mulf %365, %369 : vector<2x128xf32>
    %371 = arith.truncf %370 : vector<2x128xf32> to vector<2x128xbf16>
    %c0_96 = arith.constant 0 : index
    %c0_97 = arith.constant 0 : index
    %372 = vector.load %arg8[%c0_96, %c0_97] : memref<128x128xbf16, #tpu.memory_space<vmem>>, vector<128x128xbf16>
    %cst_98 = arith.constant dense<0.000000e+00> : vector<2x128xf32>
    %373 = tpu.matmul %371, %372, %cst_98 {dimension_numbers = #tpu.dot_dimension_numbers<[1], [0], [0], [1], [0, 0, 1, 1], [], []>} : vector<2x128xbf16>, vector<128x128xbf16>, vector<2x128xf32> -> vector<2x128xf32>
    %c0_99 = arith.constant 0 : index
    %c0_100 = arith.constant 0 : index
    %374 = vector.load %arg9[%c0_99, %c0_100] : memref<1x128xf32, #tpu.memory_space<vmem>>, vector<1x128xf32>
    %375 = vector.broadcast %374 : vector<1x128xf32> to vector<2x128xf32>
    %376 = arith.addf %373, %375 : vector<2x128xf32>
    %c0_101 = arith.constant 0 : index
    %c0_102 = arith.constant 0 : index
    %377 = vector.load %arg10[%c0_101, %c0_102] : memref<2x128xf32, #tpu.memory_space<vmem>>, vector<2x128xf32>
    tpu.vector_store %arg10[%c0_101, %c0_102], %376 {strides = array<i32>} : memref<2x128xf32, #tpu.memory_space<vmem>>, vector<2x128xf32>,
    return
  }
  func.func @transform_0(%arg0: i32) -> (i32, i32) {
    %c0_i32 = arith.constant 0 : i32
    %c0_i32_0 = arith.constant 0 : i32
    %c0_i32_1 = arith.constant 0 : i32
    return %c0_i32, %c0_i32_0 : i32, i32
  }
  func.func @transform_1(%arg0: i32) -> (i32, i32) {
    %c0_i32 = arith.constant 0 : i32
    %c0_i32_0 = arith.constant 0 : i32
    %c0_i32_1 = arith.constant 0 : i32
    return %c0_i32, %c0_i32_0 : i32, i32
  }
  func.func @transform_2(%arg0: i32) -> (i32, i32) {
    %c0_i32 = arith.constant 0 : i32
    %c0_i32_0 = arith.constant 0 : i32
    %c0_i32_1 = arith.constant 0 : i32
    return %c0_i32, %c0_i32_0 : i32, i32
  }
  func.func @transform_3(%arg0: i32) -> (i32, i32) {
    %c0_i32 = arith.constant 0 : i32
    %c0_i32_0 = arith.constant 0 : i32
    %c0_i32_1 = arith.constant 0 : i32
    return %c0_i32, %c0_i32_0 : i32, i32
  }
  func.func @transform_4(%arg0: i32) -> (i32, i32) {
    %c0_i32 = arith.constant 0 : i32
    %c0_i32_0 = arith.constant 0 : i32
    %c0_i32_1 = arith.constant 0 : i32
    return %c0_i32, %c0_i32_0 : i32, i32
  }
  func.func @transform_5(%arg0: i32) -> (i32, i32) {
    %c0_i32 = arith.constant 0 : i32
    %c0_i32_0 = arith.constant 0 : i32
    %c0_i32_1 = arith.constant 0 : i32
    return %c0_i32, %c0_i32_0 : i32, i32
  }
  func.func @transform_6(%arg0: i32) -> (i32, i32) {
    %c0_i32 = arith.constant 0 : i32
    %c0_i32_0 = arith.constant 0 : i32
    %c0_i32_1 = arith.constant 0 : i32
    return %c0_i32, %c0_i32_0 : i32, i32
  }
  func.func @transform_7(%arg0: i32) -> (i32, i32) {
    %c0_i32 = arith.constant 0 : i32
    %c0_i32_0 = arith.constant 0 : i32
    %c0_i32_1 = arith.constant 0 : i32
    return %c0_i32, %c0_i32_0 : i32, i32
  }
  func.func @transform_8(%arg0: i32) -> (i32, i32) {
    %c0_i32 = arith.constant 0 : i32
    %c0_i32_0 = arith.constant 0 : i32
    %c0_i32_1 = arith.constant 0 : i32
    return %c0_i32, %c0_i32_0 : i32, i32
  }
  func.func @transform_9(%arg0: i32) -> (i32, i32) {
    %c0_i32 = arith.constant 0 : i32
    %c0_i32_0 = arith.constant 0 : i32
    %c0_i32_1 = arith.constant 0 : i32
    return %c0_i32, %c0_i32_0 : i32, i32
  }
}

</mosaic_0001>

<bundles_post_ra>
// kernel: lstm_forward.1
= control target key start
LH: loop header
LB: loop body
LE: loop exit
PB: predicated region body
PF: predicated region fallthrough
CT: control target
= control target key end

     0   :  { %14 = vsyncpa [#allocation3], 0  ;;  %s6338_s0 = inlined_call_operand.vmem [shape: f32[16,128], index: 0, kind: input, shape index: {}]   ;;  %s6339_s1 = inlined_call_operand.hbm [shape: bf16[128,512], index: 1, kind: input, shape index: {}]   ;;  %s6340_s2 = inlined_call_operand.hbm [shape: bf16[128,512], index: 2, kind: input, shape index: {}]   ;;  %s6341_s3 = inlined_call_operand.vmem [shape: f32[1,512], index: 3, kind: input, shape index: {}]   ;;  %s6342_s4 = inlined_call_operand.hbm [shape: bf16[128,512], index: 4, kind: input, shape index: {}]   ;;  %s6343_s5 = inlined_call_operand.hbm [shape: bf16[128,512], index: 5, kind: input, shape index: {}]   ;;  %s6344_s6 = inlined_call_operand.vmem [shape: f32[1,512], index: 6, kind: input, shape index: {}]   ;;  %s6345_s7 = inlined_call_operand.vmem [shape: bf16[128,128], index: 7, kind: input, shape index: {}]   ;;  %s6346_s8 = inlined_call_operand.vmem [shape: f32[1,128], index: 8, kind: input, shape index: {}]   ;;  %s6347_s9 = inlined_call_operand.hbm [shape: f32[2,128], index: 9, kind: output, shape index: {}]  }
   0x1   :  { %15 = vsyncpa [#allocation6], 0 }
   0x2   :  { %16 = vsyncpa [#allocation9], 0 }
   0x3   :  { %17 = vsyncpa [#allocation4], 0  ;;  %s4642_s30 = smov [#allocation5]   ;;  %s4643_s11 = smov [#allocation2]  }
   0x4   :  { %s37_s10 = sshll.u32 %s4642_s30, 4  ;;  %s25_s12 = sshll.u32 %s4643_s11, 4  ;;  %s38_s10 = int_to_ptr.vmem [resolvable:$true] %s37_s10  ;;  %s26_s12 = int_to_ptr.vmem [resolvable:$true] %s25_s12 }
   0x5   :  { %s4542_s13 = scalar_lea.vmem %s38_s10, 4096  ;;  %p4547_p1 = scmp.lt.s32.totalorder %s38_s10, %s38_s10 }
   0x6   :  { %p4543_p0 = scmp.ne.s32.totalorder %s38_s10, %s4542_s13  ;;  %p4548_p2 = scmp.lt.s32.totalorder %s4542_s13, %s4542_s13 }
   0x8   :  { %p4549_p3 = por %p4548_p2, %p4547_p1 }
   0xa   :  { %p4550_p4 = pnand %p4549_p3, %p4543_p0 }
   0xc   :  { %4553 = shalt.err (!%p4550_p4)
}
   0xd   :  { %s4644_s14 = smov 256   ;;  %s4645_s15 = smov 16  }
   0xe   :  { %43 = dma.hbm_to_vmem [thread:$0]  %s6340_s2, 4096, %s38_s10, [#allocation6], %s4644_s14, %s4644_s14, %s4645_s15  }
   0xf   :  { %s4562_s18 = scalar_lea.vmem %s26_s12, 4096  ;;  %p4567_p6 = scmp.lt.s32.totalorder %s26_s12, %s26_s12 }
  0x10   :  { %p4563_p5 = scmp.ne.s32.totalorder %s26_s12, %s4562_s18  ;;  %p4568_p7 = scmp.lt.s32.totalorder %s4562_s18, %s4562_s18 }
  0x12   :  { %p4569_p8 = por %p4568_p7, %p4567_p6 }
  0x14   :  { %p4570_p9 = pnand %p4569_p8, %p4563_p5 }
  0x16   :  { %4573 = shalt.err (!%p4570_p9)
}
  0x17   :  { %31 = dma.hbm_to_vmem [thread:$0]  %s6339_s1, 4096, %s26_s12, [#allocation3], %s4644_s14, %s4644_s14, %s4645_s15  }
  0x18   :  { %s4646_s21 = smov [#allocation7]   ;;  %s4647_s23 = smov [#allocation8]  }
  0x19   :  { %s51_s22 = sshll.u32 %s4646_s21, 4  ;;  %s63_s24 = sshll.u32 %s4647_s23, 4  ;;  %s52_s22 = int_to_ptr.vmem [resolvable:$true] %s51_s22  ;;  %s64_s24 = int_to_ptr.vmem [resolvable:$true] %s63_s24 }
  0x1a   :  { %s4582_s2 = scalar_lea.vmem %s52_s22, 4096  ;;  %p4587_p11 = scmp.lt.s32.totalorder %s52_s22, %s52_s22 }
  0x1b   :  { %p4583_p10 = scmp.ne.s32.totalorder %s52_s22, %s4582_s2  ;;  %p4588_p12 = scmp.lt.s32.totalorder %s4582_s2, %s4582_s2 }
  0x1d   :  { %p4589_p13 = por %p4588_p12, %p4587_p11 }
  0x1f   :  { %p4590_p0 = pnand %p4589_p13, %p4583_p10 }
  0x21   :  { %4593 = shalt.err (!%p4590_p0)
}
  0x22   :  { %57 = dma.hbm_to_vmem [thread:$0]  %s6342_s4, 4096, %s52_s22, [#allocation6], %s4644_s14, %s4644_s14, %s4645_s15  }
  0x23   :  { %s4602_s1 = scalar_lea.vmem %s64_s24, 4096  ;;  %p4607_p2 = scmp.lt.s32.totalorder %s64_s24, %s64_s24 }
  0x24   :  { %p4603_p1 = scmp.ne.s32.totalorder %s64_s24, %s4602_s1  ;;  %p4608_p3 = scmp.lt.s32.totalorder %s4602_s1, %s4602_s1 }
  0x26   :  { %p4609_p4 = por %p4608_p3, %p4607_p2 }
  0x28   :  { %p4610_p5 = pnand %p4609_p4, %p4603_p1 }
  0x2a   :  { %4613 = shalt.err (!%p4610_p5)
}
  0x2b   :  { %69 = dma.hbm_to_vmem [thread:$0]  %s6343_s5, 4096, %s64_s24, [#allocation9], %s4644_s14, %s4644_s14, %s4645_s15  }
  0x2c   :  { %4634 = dma.done.wait [#allocation3], 4096  }
  0x2d   :  { %4635 = vsyncadd [#allocation3], 4294963200 }
  0x2e   :  { %4636 = dma.done.wait [#allocation6], 8192  }
  0x2f   :  { %4637 = vsyncadd [#allocation6], 4294959104 }
  0x30   :  { %4638 = dma.done.wait [#allocation9], 4096  }
  0x31   :  { %4639 = vsyncadd [#allocation9], 4294963200  ;;  %v6374_v0 = vmov 0   ;;  %v3886_v1 = vld [vmem:[#allocation2 + $0xe4] ss:$16 sps:$4 sm:$0xff]   ;;  %v90_v34 = vld [vmem:[%s6338_s0 + $0x8] sm:$0xff] }
  0x32   :  { %338 = vmatprep.mubr.bf16.mxu0 %v6374_v0  ;;  %381 = vmatprep.mubr.bf16.mxu1 %v6374_v0  ;;  %v3888_v2 = vld [vmem:[#allocation2 + $0xec] ss:$16 sps:$4 sm:$0xff]   ;;  %v3890_v3 = vld [vmem:[#allocation2 + $0xe0] ss:$16 sps:$4 sm:$0xff]   ;;  %v3891_v4 = vld [vmem:[#allocation2 + $0xe8] ss:$16 sps:$4 sm:$0xff]  }
  0x33   :  { %306 = vmatprep.subr.bf16.mxu0 %v3886_v1  ;;  %349 = vmatprep.subr.bf16.mxu1 %v3888_v2  ;;  %v3892_v5 = vld [vmem:[#allocation2 + $0xc4] ss:$16 sps:$4 sm:$0xff]   ;;  %v3894_v6 = vld [vmem:[#allocation2 + $0xcc] ss:$16 sps:$4 sm:$0xff]   ;;  %v3896_v7 = vld [vmem:[#allocation2 + $0xc0] ss:$16 sps:$4 sm:$0xff]  }
  0x34   :  { %307 = vmatpush1.bf16.msra.mxu0 %v3890_v3  ;;  %350 = vmatpush1.bf16.msra.mxu1 %v3891_v4  ;;  %v3897_v8 = vld [vmem:[#allocation2 + $0xc8] ss:$16 sps:$4 sm:$0xff]   ;;  %v3898_v9 = vld [vmem:[#allocation2 + $0xa4] ss:$16 sps:$4 sm:$0xff]   ;;  %v3900_v10 = vld [vmem:[#allocation2 + $0xac] ss:$16 sps:$4 sm:$0xff]  }
  0x35   :  { %308 = vmatprep.subr.bf16.mxu0 %v3892_v5  ;;  %351 = vmatprep.subr.bf16.mxu1 %v3894_v6  ;;  %v3902_v11 = vld [vmem:[#allocation2 + $0xa0] ss:$16 sps:$4 sm:$0xff]   ;;  %v3903_v12 = vld [vmem:[#allocation2 + $0xa8] ss:$16 sps:$4 sm:$0xff]   ;;  %v3904_v13 = vld [vmem:[#allocation2 + $0x84] ss:$16 sps:$4 sm:$0xff]  }
  0x36   :  { %v3906_v14 = vld [vmem:[#allocation2 + $0x8c] ss:$16 sps:$4 sm:$0xff]   ;;  %v3908_v15 = vld [vmem:[#allocation2 + $0x80] ss:$16 sps:$4 sm:$0xff]   ;;  %v3909_v16 = vld [vmem:[#allocation2 + $0x88] ss:$16 sps:$4 sm:$0xff]  }
  0x37   :  { %v3910_v17 = vld [vmem:[#allocation2 + $0x64] ss:$16 sps:$4 sm:$0xff]   ;;  %v3912_v18 = vld [vmem:[#allocation2 + $0x6c] ss:$16 sps:$4 sm:$0xff]   ;;  %v3914_v19 = vld [vmem:[#allocation2 + $0x60] ss:$16 sps:$4 sm:$0xff]  }
  0x38   :  { %309 = vmatpush1.bf16.msra.mxu0 %v3896_v7  ;;  %352 = vmatpush1.bf16.msra.mxu1 %v3897_v8  ;;  %v3915_v20 = vld [vmem:[#allocation2 + $0x68] ss:$16 sps:$4 sm:$0xff]   ;;  %v3916_v21 = vld [vmem:[#allocation2 + $0x44] ss:$16 sps:$4 sm:$0xff]   ;;  %v3918_v22 = vld [vmem:[#allocation2 + $0x4c] ss:$16 sps:$4 sm:$0xff]  }
  0x39   :  { %310 = vmatprep.subr.bf16.mxu0 %v3898_v9  ;;  %353 = vmatprep.subr.bf16.mxu1 %v3900_v10  ;;  %v3920_v23 = vld [vmem:[#allocation2 + $0x40] ss:$16 sps:$4 sm:$0xff]   ;;  %v3921_v24 = vld [vmem:[#allocation2 + $0x48] ss:$16 sps:$4 sm:$0xff]   ;;  %v3922_v25 = vld [vmem:[#allocation2 + $0x24] ss:$16 sps:$4 sm:$0xff]  }
  0x3a   :  { %v3924_v26 = vld [vmem:[#allocation2 + $0x2c] ss:$16 sps:$4 sm:$0xff]   ;;  %v3926_v27 = vld [vmem:[#allocation2 + $0x20] ss:$16 sps:$4 sm:$0xff]   ;;  %v3927_v28 = vld [vmem:[#allocation2 + $0x28] ss:$16 sps:$4 sm:$0xff]  }
  0x3b   :  { %v3928_v29 = vld [vmem:[#allocation2 + $0x4] ss:$16 sps:$4 sm:$0xff]   ;;  %v3930_v30 = vld [vmem:[#allocation2 + $0xc] ss:$16 sps:$4 sm:$0xff]   ;;  %v3932_v31 = vld [vmem:[#allocation2] ss:$16 sps:$4 sm:$0xff]  }
  0x3c   :  { %311 = vmatpush1.bf16.msra.mxu0 %v3902_v11  ;;  %354 = vmatpush1.bf16.msra.mxu1 %v3903_v12  ;;  %v3933_v32 = vld [vmem:[#allocation2 + $0x8] ss:$16 sps:$4 sm:$0xff]   ;;  %v89_v33 = vld [vmem:[%s6338_s0] sm:$0xff]  ;;  %v4736_v36 = vld [vmem:[#allocation5 + $0xec] ss:$16 sps:$4 sm:$0xff]   ;;  %vm4650_vm0 = vmmov 0  }
  0x3d   :  { %312 = vmatprep.subr.bf16.mxu0 %v3904_v13  ;;  %355 = vmatprep.subr.bf16.mxu1 %v3906_v14  ;;  %v4734_v35 = vld [vmem:[#allocation5 + $0xe4] ss:$16 sps:$4 sm:$0xff]   ;;  %v91_v37 = vpack.c.bf16 %v90_v34, %v89_v33  ;;  %v4738_v38 = vld [vmem:[#allocation5 + $0xe0] ss:$16 sps:$4 sm:$0xff]   ;;  %v4740_v39 = vld [vmem:[#allocation5 + $0xe8] ss:$16 sps:$4 sm:$0xff]  }
  0x3e   :  { %v4742_v40 = vld [vmem:[#allocation5 + $0xc4] ss:$16 sps:$4 sm:$0xff]   ;;  %v4746_v41 = vld [vmem:[#allocation5 + $0xcc] ss:$16 sps:$4 sm:$0xff]   ;;  %v4748_v42 = vld [vmem:[#allocation5 + $0xc0] ss:$16 sps:$4 sm:$0xff]  }
  0x3f   :  { %v4752_v43 = vld [vmem:[#allocation5 + $0xc8] ss:$16 sps:$4 sm:$0xff]   ;;  %v4756_v44 = vld [vmem:[#allocation5 + $0xa4] ss:$16 sps:$4 sm:$0xff]   ;;  %v4758_v45 = vld [vmem:[#allocation5 + $0xac] ss:$16 sps:$4 sm:$0xff]  }
  0x40   :  { %313 = vmatpush1.bf16.msra.mxu0 %v3908_v15  ;;  %356 = vmatpush1.bf16.msra.mxu1 %v3909_v16  ;;  %v4762_v46 = vld [vmem:[#allocation5 + $0xa0] ss:$16 sps:$4 sm:$0xff]   ;;  %v4766_v47 = vld [vmem:[#allocation5 + $0xa8] ss:$16 sps:$4 sm:$0xff]   ;;  %v4768_v48 = vld [vmem:[#allocation5 + $0x84] ss:$16 sps:$4 sm:$0xff]  }
  0x41   :  { %314 = vmatprep.subr.bf16.mxu0 %v3910_v17  ;;  %357 = vmatprep.subr.bf16.mxu1 %v3912_v18  ;;  %v4772_v49 = vld [vmem:[#allocation5 + $0x8c] ss:$16 sps:$4 sm:$0xff]   ;;  %v4774_v50 = vld [vmem:[#allocation5 + $0x80] ss:$16 sps:$4 sm:$0xff]   ;;  %v4776_v51 = vld [vmem:[#allocation5 + $0x88] ss:$16 sps:$4 sm:$0xff]  }
  0x42   :  { %v4778_v52 = vld [vmem:[#allocation5 + $0x64] ss:$16 sps:$4 sm:$0xff]   ;;  %v4780_v53 = vld [vmem:[#allocation5 + $0x6c] ss:$16 sps:$4 sm:$0xff]   ;;  %v4786_v54 = vld [vmem:[#allocation5 + $0x60] ss:$16 sps:$4 sm:$0xff]  }
  0x43   :  { %v4788_v55 = vld [vmem:[#allocation5 + $0x68] ss:$16 sps:$4 sm:$0xff]   ;;  %v4790_v56 = vld [vmem:[#allocation5 + $0x44] ss:$16 sps:$4 sm:$0xff]   ;;  %v4792_v57 = vld [vmem:[#allocation5 + $0x4c] ss:$16 sps:$4 sm:$0xff]  }
  0x44   :  { %315 = vmatpush1.bf16.msra.mxu0 %v3914_v19  ;;  %358 = vmatpush1.bf16.msra.mxu1 %v3915_v20  ;;  %v4798_v58 = vld [vmem:[#allocation5 + $0x40] ss:$16 sps:$4 sm:$0xff]   ;;  %v4800_v59 = vld [vmem:[#allocation5 + $0x48] ss:$16 sps:$4 sm:$0xff]   ;;  %v4802_v60 = vld [vmem:[#allocation5 + $0x24] ss:$16 sps:$4 sm:$0xff]  }
  0x45   :  { %316 = vmatprep.subr.bf16.mxu0 %v3916_v21  ;;  %359 = vmatprep.subr.bf16.mxu1 %v3918_v22  ;;  %v4804_v61 = vld [vmem:[#allocation5 + $0x2c] ss:$16 sps:$4 sm:$0xff]   ;;  %v4810_v62 = vld [vmem:[#allocation5 + $0x20] ss:$16 sps:$4 sm:$0xff]   ;;  %v4812_v63 = vld [vmem:[#allocation5 + $0x28] ss:$16 sps:$4 sm:$0xff]  }
  0x46   :  { %v4814_v1 = vld [vmem:[#allocation5 + $0x4] ss:$16 sps:$4 sm:$0xff]   ;;  %v4816_v2 = vld [vmem:[#allocation5 + $0xc] ss:$16 sps:$4 sm:$0xff]   ;;  %v4822_v3 = vld [vmem:[#allocation5] ss:$16 sps:$4 sm:$0xff]  }
  0x47   :  { %v4824_v4 = vld [vmem:[#allocation5 + $0x8] ss:$16 sps:$4 sm:$0xff]   ;;  %v4836_v5 = vld [vmem:[#allocation8 + $0xe4] ss:$16 sps:$4 sm:$0xff]   ;;  %v4838_v6 = vld [vmem:[#allocation8 + $0xe0] ss:$16 sps:$4 sm:$0xff]  }
  0x48   :  { %317 = vmatpush1.bf16.msra.mxu0 %v3920_v23  ;;  %360 = vmatpush1.bf16.msra.mxu1 %v3921_v24  ;;  %v4840_v7 = vld [vmem:[#allocation8 + $0xc4] ss:$16 sps:$4 sm:$0xff]   ;;  %v4842_v8 = vld [vmem:[#allocation8 + $0xec] ss:$16 sps:$4 sm:$0xff]   ;;  %v4845_v9 = vld [vmem:[#allocation8 + $0xe8] ss:$16 sps:$4 sm:$0xff]  }
  0x49   :  { %318 = vmatprep.subr.bf16.mxu0 %v3922_v25  ;;  %361 = vmatprep.subr.bf16.mxu1 %v3924_v26  ;;  %v4848_v10 = vld [vmem:[#allocation8 + $0xc0] ss:$16 sps:$4 sm:$0xff]   ;;  %v4851_v11 = vld [vmem:[#allocation8 + $0xcc] ss:$16 sps:$4 sm:$0xff]   ;;  %v4855_v12 = vld [vmem:[#allocation8 + $0xa4] ss:$16 sps:$4 sm:$0xff]  }
  0x4a   :  { %v4857_v13 = vld [vmem:[#allocation8 + $0xc8] ss:$16 sps:$4 sm:$0xff]   ;;  %v4861_v14 = vld [vmem:[#allocation8 + $0xa0] ss:$16 sps:$4 sm:$0xff]   ;;  %v4866_v15 = vld [vmem:[#allocation8 + $0x84] ss:$16 sps:$4 sm:$0xff]  }
  0x4b   :  { %6692 = vst [vmem:[#allocation15_spill] sm:$0xff] %v4861_v14  ;;  %6693 = vst [vmem:[#allocation16_spill] sm:$0xff] %v4866_v15  ;;  %v4869_v16 = vld [vmem:[#allocation8 + $0x80] ss:$16 sps:$4 sm:$0xff]   ;;  %v4871_v17 = vld [vmem:[#allocation8 + $0xac] ss:$16 sps:$4 sm:$0xff]  }
  0x4c   :  { %319 = vmatpush1.bf16.msra.mxu0 %v3926_v27  ;;  %362 = vmatpush1.bf16.msra.mxu1 %v3927_v28  ;;  %6694 = vst [vmem:[#allocation17_spill] sm:$0xff] %v4869_v16  ;;  %v4873_v18 = vld [vmem:[#allocation8 + $0xa8] ss:$16 sps:$4 sm:$0xff]   ;;  %v4878_v19 = vld [vmem:[#allocation8 + $0x64] ss:$16 sps:$4 sm:$0xff]   ;;  %s4651_s1 = smov [#allocation10]  }
  0x4d   :  { %320 = vmatprep.subr.bf16.mxu0 %v3928_v29  ;;  %363 = vmatprep.subr.bf16.mxu1 %v3930_v30  ;;  %6695 = vst [vmem:[#allocation18_spill] sm:$0xff] %v4873_v18  ;;  %6696 = vst [vmem:[#allocation19_spill] sm:$0xff] %v4878_v19  ;;  %v4880_v20 = vld [vmem:[#allocation8 + $0x60] ss:$16 sps:$4 sm:$0xff]   ;;  %v4882_v21 = vld [vmem:[#allocation8 + $0x8c] ss:$16 sps:$4 sm:$0xff]  }
  0x4e   :  { %6697 = vst [vmem:[#allocation20_spill] sm:$0xff] %v4880_v20  ;;  %6698 = vst [vmem:[#allocation21_spill] sm:$0xff] %v4882_v21  ;;  %v4885_v22 = vld [vmem:[#allocation8 + $0x88] ss:$16 sps:$4 sm:$0xff]   ;;  %v4890_v23 = vld [vmem:[#allocation8 + $0x44] ss:$16 sps:$4 sm:$0xff]  }
  0x4f   :  { %6699 = vst [vmem:[#allocation22_spill] sm:$0xff] %v4885_v22  ;;  %6700 = vst [vmem:[#allocation23_spill] sm:$0xff] %v4890_v23  ;;  %v4892_v24 = vld [vmem:[#allocation8 + $0x40] ss:$16 sps:$4 sm:$0xff]   ;;  %v4894_v25 = vld [vmem:[#allocation8 + $0x6c] ss:$16 sps:$4 sm:$0xff]  }
  0x50   :  { %321 = vmatpush1.bf16.msra.mxu0 %v3932_v31  ;;  %364 = vmatpush1.bf16.msra.mxu1 %v3933_v32  ;;  %6701 = vst [vmem:[#allocation24_spill] sm:$0xff] %v4892_v24  ;;  %6702 = vst [vmem:[#allocation25_spill] sm:$0xff] %v4894_v25  ;;  %v4897_v26 = vld [vmem:[#allocation8 + $0x68] ss:$16 sps:$4 sm:$0xff]   ;;  %v4902_v27 = vld [vmem:[#allocation8 + $0x24] ss:$16 sps:$4 sm:$0xff]  }
  0x51   :  { %606 = vmatprep.subr.bf16.mxu0 %v4734_v35  ;;  %647 = vmatprep.subr.bf16.mxu1 %v4736_v36  ;;  %6703 = vst [vmem:[#allocation26_spill] sm:$0xff] %v4897_v26  ;;  %6704 = vst [vmem:[#allocation27_spill] sm:$0xff] %v4902_v27  ;;  %v4904_v28 = vld [vmem:[#allocation8 + $0x20] ss:$16 sps:$4 sm:$0xff]   ;;  %v4906_v29 = vld [vmem:[#allocation8 + $0x4c] ss:$16 sps:$4 sm:$0xff]  }
  0x52   :  { %6705 = vst [vmem:[#allocation28_spill] sm:$0xff] %v4904_v28  ;;  %6706 = vst [vmem:[#allocation29_spill] sm:$0xff] %v4906_v29  ;;  %v4909_v30 = vld [vmem:[#allocation8 + $0x48] ss:$16 sps:$4 sm:$0xff]   ;;  %v4914_v31 = vld [vmem:[#allocation8 + $0x4] ss:$16 sps:$4 sm:$0xff]  }
  0x53   :  { %339 = vmatmul.mubr.bf16.vlgmr.msra.gmra.mxu0 %v91_v37  ;;  %382 = vmatmul.mubr.bf16.vlgmr.msra.gmra.mxu1 %v91_v37  ;;  %6707 = vst [vmem:[#allocation30_spill] sm:$0xff] %v4909_v30  ;;  %6708 = vst [vmem:[#allocation31_spill] sm:$0xff] %v4914_v31  ;;  %v4916_v32 = vld [vmem:[#allocation8] ss:$16 sps:$4 sm:$0xff]   ;;  %v4918_v33 = vld [vmem:[#allocation8 + $0x2c] ss:$16 sps:$4 sm:$0xff]  }
  0x54   :  { %607 = vmatpush1.bf16.msra.mxu0 %v4738_v38  ;;  %648 = vmatpush1.bf16.msra.mxu1 %v4740_v39  ;;  %6709 = vst [vmem:[#allocation32_spill] sm:$0xff] %v4916_v32  ;;  %6710 = vst [vmem:[#allocation33_spill] sm:$0xff] %v4918_v33  ;;  %v4921_v34 = vld [vmem:[#allocation8 + $0x28] ss:$16 sps:$4 sm:$0xff]   ;;  %v4926_v37 = vld [vmem:[#allocation8 + $0xc] ss:$16 sps:$4 sm:$0xff]  }
  0x55   :  { %608 = vmatprep.subr.bf16.mxu0 %v4742_v40  ;;  %649 = vmatprep.subr.bf16.mxu1 %v4746_v41  ;;  %6711 = vst [vmem:[#allocation34_spill] sm:$0xff] %v4921_v34  ;;  %6712 = vst [vmem:[#allocation35_spill] sm:$0xff] %v4926_v37  ;;  %s3651_s27 = sshll.u32 %s4651_s1, 4  ;;  %s3652_s27 = int_to_ptr.vmem [resolvable:$true] %s3651_s27 }
  0x56   :  { %638 = vmatprep.mubr.bf16.mxu0 %v6374_v0  ;;  %679 = vmatprep.mubr.bf16.mxu1 %v6374_v0  ;;  %s4614_s28 = scalar_lea.vmem %s3652_s27, 32  ;;  %p4619_p7 = scmp.lt.s32.totalorder %s3652_s27, %s3652_s27 }
  0x57   :  { %p4615_p6 = scmp.ne.s32.totalorder %s3652_s27, %s4614_s28  ;;  %p4620_p8 = scmp.lt.s32.totalorder %s4614_s28, %s4614_s28 }
  0x58   :  { %609 = vmatpush1.bf16.msra.mxu0 %v4748_v42  ;;  %650 = vmatpush1.bf16.msra.mxu1 %v4752_v43 }
  0x59   :  { %610 = vmatprep.subr.bf16.mxu0 %v4756_v44  ;;  %651 = vmatprep.subr.bf16.mxu1 %v4758_v45  ;;  %p4621_p9 = por %p4620_p8, %p4619_p7 }
  0x5b   :  { %p4622_p10 = pnand %p4621_p9, %p4615_p6 }
  0x5c   :  { %611 = vmatpush1.bf16.msra.mxu0 %v4762_v46  ;;  %652 = vmatpush1.bf16.msra.mxu1 %v4766_v47 }
  0x5d   :  { %612 = vmatprep.subr.bf16.mxu0 %v4768_v48  ;;  %653 = vmatprep.subr.bf16.mxu1 %v4772_v49 }
  0x60   :  { %613 = vmatpush1.bf16.msra.mxu0 %v4774_v50  ;;  %654 = vmatpush1.bf16.msra.mxu1 %v4776_v51 }
  0x61   :  { %614 = vmatprep.subr.bf16.mxu0 %v4778_v52  ;;  %655 = vmatprep.subr.bf16.mxu1 %v4780_v53 }
  0x64   :  { %615 = vmatpush1.bf16.msra.mxu0 %v4786_v54  ;;  %656 = vmatpush1.bf16.msra.mxu1 %v4788_v55 }
  0x65   :  { %616 = vmatprep.subr.bf16.mxu0 %v4790_v56  ;;  %657 = vmatprep.subr.bf16.mxu1 %v4792_v57 }
  0x68   :  { %617 = vmatpush1.bf16.msra.mxu0 %v4798_v58  ;;  %658 = vmatpush1.bf16.msra.mxu1 %v4800_v59 }
  0x69   :  { %618 = vmatprep.subr.bf16.mxu0 %v4802_v60  ;;  %659 = vmatprep.subr.bf16.mxu1 %v4804_v61 }
  0x6c   :  { %619 = vmatpush1.bf16.msra.mxu0 %v4810_v62  ;;  %660 = vmatpush1.bf16.msra.mxu1 %v4812_v63 }
  0x6d   :  { %620 = vmatprep.subr.bf16.mxu0 %v4814_v1  ;;  %661 = vmatprep.subr.bf16.mxu1 %v4816_v2 }
  0x70   :  { %621 = vmatpush1.bf16.msra.mxu0 %v4822_v3  ;;  %662 = vmatpush1.bf16.msra.mxu1 %v4824_v4 }
  0x71   :  { %941 = vmatprep.subr.bf16.mxu0 %v4836_v5  ;;  %982 = vmatprep.subr.bf16.mxu1 %v4842_v8 }
  0x73   :  { %639 = vmatmul.mubr.bf16.vlgmr.msra.gmra.mxu0 %v6374_v0  ;;  %680 = vmatmul.mubr.bf16.vlgmr.msra.gmra.mxu1 %v6374_v0 }
  0x74   :  { %973 = vmatprep.mubr.bf16.mxu0 %v6374_v0  ;;  %1014 = vmatprep.mubr.bf16.mxu1 %v6374_v0 }
  0x75   :  { %942 = vmatpush1.bf16.msra.mxu0 %v4838_v6  ;;  %983 = vmatpush1.bf16.msra.mxu1 %v4845_v9 }
  0x76   :  { %943 = vmatprep.subr.bf16.mxu0 %v4840_v7  ;;  %984 = vmatprep.subr.bf16.mxu1 %v4851_v11 }
  0x79   :  { %944 = vmatpush1.bf16.msra.mxu0 %v4848_v10  ;;  %985 = vmatpush1.bf16.msra.mxu1 %v4857_v13 }
  0x7a   :  { %945 = vmatprep.subr.bf16.mxu0 %v4855_v12  ;;  %986 = vmatprep.subr.bf16.mxu1 %v4871_v17 }
  0x7d   :  { %946 = vmatpush1.bf16.msra.mxu0 %v4861_v14  ;;  %987 = vmatpush1.bf16.msra.mxu1 %v4873_v18 }
  0x7e   :  { %947 = vmatprep.subr.bf16.mxu0 %v4866_v15  ;;  %988 = vmatprep.subr.bf16.mxu1 %v4882_v21 }
  0x81   :  { %948 = vmatpush1.bf16.msra.mxu0 %v4869_v16  ;;  %989 = vmatpush1.bf16.msra.mxu1 %v4885_v22 }
  0x82   :  { %949 = vmatprep.subr.bf16.mxu0 %v4878_v19  ;;  %990 = vmatprep.subr.bf16.mxu1 %v4894_v25 }
  0x85   :  { %950 = vmatpush1.bf16.msra.mxu0 %v4880_v20  ;;  %991 = vmatpush1.bf16.msra.mxu1 %v4897_v26 }
  0x86   :  { %951 = vmatprep.subr.bf16.mxu0 %v4890_v23  ;;  %992 = vmatprep.subr.bf16.mxu1 %v4906_v29 }
  0x89   :  { %952 = vmatpush1.bf16.msra.mxu0 %v4892_v24  ;;  %993 = vmatpush1.bf16.msra.mxu1 %v4909_v30  ;;  %v4954_v30 = vld [vmem:[#allocation7 + $0xc8] ss:$16 sps:$4 sm:$0xff]  }
  0x8a   :  { %953 = vmatprep.subr.bf16.mxu0 %v4902_v27  ;;  %994 = vmatprep.subr.bf16.mxu1 %v4918_v33  ;;  %v4936_v27 = vld [vmem:[#allocation7 + $0xec] ss:$16 sps:$4 sm:$0xff]   ;;  %v4940_v33 = vld [vmem:[#allocation7 + $0xe8] ss:$16 sps:$4 sm:$0xff]   ;;  %6721 = vst [vmem:[#allocation44_spill] sm:$0xff] %v4954_v30 }
  0x8b   :  { %6715 = vst [vmem:[#allocation38_spill] sm:$0xff] %v4936_v27  ;;  %6717 = vst [vmem:[#allocation40_spill] sm:$0xff] %v4940_v33 }
  0x8d   :  { %954 = vmatpush1.bf16.msra.mxu0 %v4904_v28  ;;  %995 = vmatpush1.bf16.msra.mxu1 %v4921_v34  ;;  %v4929_v28 = vld [vmem:[#allocation8 + $0x8] ss:$16 sps:$4 sm:$0xff]   ;;  %v4952_v34 = vld [vmem:[#allocation7 + $0xc0] ss:$16 sps:$4 sm:$0xff]  }
  0x8e   :  { %955 = vmatprep.subr.bf16.mxu0 %v4914_v31  ;;  %6713 = vst [vmem:[#allocation36_spill] sm:$0xff] %v4929_v28  ;;  %996 = vmatprep.subr.bf16.mxu1 %v4926_v37  ;;  %v4934_v31 = vld [vmem:[#allocation7 + $0xe4] ss:$16 sps:$4 sm:$0xff]   ;;  %6720 = vst [vmem:[#allocation43_spill] sm:$0xff] %v4952_v34 }
  0x8f   :  { %6714 = vst [vmem:[#allocation37_spill] sm:$0xff] %v4934_v31  ;;  %v4947_v37 = vld [vmem:[#allocation7 + $0xc4] ss:$16 sps:$4 sm:$0xff]  }
  0x90   :  { %6718 = vst [vmem:[#allocation41_spill] sm:$0xff] %v4947_v37 }
  0x91   :  { %956 = vmatpush1.bf16.msra.mxu0 %v4916_v32  ;;  %997 = vmatpush1.bf16.msra.mxu1 %v4929_v28  ;;  %v4938_v32 = vld [vmem:[#allocation7 + $0xe0] ss:$16 sps:$4 sm:$0xff]   ;;  %v4949_v28 = vld [vmem:[#allocation7 + $0xcc] ss:$16 sps:$4 sm:$0xff]  }
  0x92   :  { %6716 = vst [vmem:[#allocation39_spill] sm:$0xff] %v4938_v32  ;;  %1183 = vmatprep.subr.bf16.mxu0 %v4934_v31  ;;  %1224 = vmatprep.subr.bf16.mxu1 %v4936_v27  ;;  %6719 = vst [vmem:[#allocation42_spill] sm:$0xff] %v4949_v28  ;;  %v4964_v27 = vld [vmem:[#allocation7 + $0xa0] ss:$16 sps:$4 sm:$0xff]   ;;  %v4966_v31 = vld [vmem:[#allocation7 + $0xa8] ss:$16 sps:$4 sm:$0xff]  }
  0x93   :  { %6724 = vst [vmem:[#allocation47_spill] sm:$0xff] %v4964_v27  ;;  %6725 = vst [vmem:[#allocation48_spill] sm:$0xff] %v4966_v31 }
  0x94   :  { %974 = vmatmul.mubr.bf16.vlgmr.msra.gmra.mxu0 %v6374_v0  ;;  %1015 = vmatmul.mubr.bf16.vlgmr.msra.gmra.mxu1 %v6374_v0 }
  0x95   :  { %1215 = vmatprep.mubr.bf16.mxu0 %v6374_v0  ;;  %1184 = vmatpush1.bf16.msra.mxu0 %v4938_v32  ;;  %v4960_v32 = vld [vmem:[#allocation7 + $0xa4] ss:$16 sps:$4 sm:$0xff]  }
  0x96   :  { %1225 = vmatpush1.bf16.msra.mxu1 %v4940_v33  ;;  %1256 = vmatprep.mubr.bf16.mxu1 %v6374_v0  ;;  %6722 = vst [vmem:[#allocation45_spill] sm:$0xff] %v4960_v32  ;;  %v4962_v33 = vld [vmem:[#allocation7 + $0xac] ss:$16 sps:$4 sm:$0xff]   ;;  %v4972_v0 = vld [vmem:[#allocation7 + $0x84] ss:$16 sps:$4 sm:$0xff]  }
  0x97   :  { %1185 = vmatprep.subr.bf16.mxu0 %v4947_v37  ;;  %1226 = vmatprep.subr.bf16.mxu1 %v4949_v28  ;;  %6723 = vst [vmem:[#allocation46_spill] sm:$0xff] %v4962_v33  ;;  %6726 = vst [vmem:[#allocation49_spill] sm:$0xff] %v4972_v0  ;;  %v4978_v28 = vld [vmem:[#allocation7 + $0x88] ss:$16 sps:$4 sm:$0xff]   ;;  %v4982_v37 = vld [vmem:[#allocation7 + $0x64] ss:$16 sps:$4 sm:$0xff]  }
  0x98   :  { %6729 = vst [vmem:[#allocation52_spill] sm:$0xff] %v4978_v28  ;;  %6730 = vst [vmem:[#allocation53_spill] sm:$0xff] %v4982_v37 }
  0x99   :  { %1186 = vmatpush1.bf16.msra.mxu0 %v4952_v34  ;;  %v4974_v34 = vld [vmem:[#allocation7 + $0x8c] ss:$16 sps:$4 sm:$0xff]  }
  0x9a   :  { %1227 = vmatpush1.bf16.msra.mxu1 %v4954_v30  ;;  %1187 = vmatprep.subr.bf16.mxu0 %v4960_v32  ;;  %6727 = vst [vmem:[#allocation50_spill] sm:$0xff] %v4974_v34  ;;  %v4976_v30 = vld [vmem:[#allocation7 + $0x80] ss:$16 sps:$4 sm:$0xff]   ;;  %v4984_v32 = vld [vmem:[#allocation7 + $0x6c] ss:$16 sps:$4 sm:$0xff]  }
  0x9b   :  { %1228 = vmatprep.subr.bf16.mxu1 %v4962_v33  ;;  %6728 = vst [vmem:[#allocation51_spill] sm:$0xff] %v4976_v30  ;;  %6731 = vst [vmem:[#allocation54_spill] sm:$0xff] %v4984_v32  ;;  %v4993_v33 = vld [vmem:[#allocation7 + $0x44] ss:$16 sps:$4 sm:$0xff]  }
  0x9c   :  { %6734 = vst [vmem:[#allocation57_spill] sm:$0xff] %v4993_v33 }
  0x9d   :  { %1188 = vmatpush1.bf16.msra.mxu0 %v4964_v27  ;;  %v4987_v27 = vld [vmem:[#allocation7 + $0x60] ss:$16 sps:$4 sm:$0xff]  }
  0x9e   :  { %1229 = vmatpush1.bf16.msra.mxu1 %v4966_v31  ;;  %1189 = vmatprep.subr.bf16.mxu0 %v4972_v0  ;;  %6732 = vst [vmem:[#allocation55_spill] sm:$0xff] %v4987_v27  ;;  %v4991_v31 = vld [vmem:[#allocation7 + $0x68] ss:$16 sps:$4 sm:$0xff]   ;;  %v4996_v0 = vld [vmem:[#allocation7 + $0x4c] ss:$16 sps:$4 sm:$0xff]  }
  0x9f   :  { %1230 = vmatprep.subr.bf16.mxu1 %v4974_v34  ;;  %6733 = vst [vmem:[#allocation56_spill] sm:$0xff] %v4991_v31  ;;  %6735 = vst [vmem:[#allocation58_spill] sm:$0xff] %v4996_v0  ;;  %v4999_v34 = vld [vmem:[#allocation7 + $0x40] ss:$16 sps:$4 sm:$0xff]  }
  0xa0   :  { %6736 = vst [vmem:[#allocation59_spill] sm:$0xff] %v4999_v34 }
  0xa1   :  { %1190 = vmatpush1.bf16.msra.mxu0 %v4976_v30  ;;  %v5003_v30 = vld [vmem:[#allocation7 + $0x48] ss:$16 sps:$4 sm:$0xff]  }
  0xa2   :  { %1231 = vmatpush1.bf16.msra.mxu1 %v4978_v28  ;;  %1191 = vmatprep.subr.bf16.mxu0 %v4982_v37  ;;  %6737 = vst [vmem:[#allocation60_spill] sm:$0xff] %v5003_v30  ;;  %v5005_v28 = vld [vmem:[#allocation7 + $0x24] ss:$16 sps:$4 sm:$0xff]   ;;  %v5008_v37 = vld [vmem:[#allocation7 + $0x2c] ss:$16 sps:$4 sm:$0xff]  }
  0xa3   :  { %1232 = vmatprep.subr.bf16.mxu1 %v4984_v32  ;;  %6738 = vst [vmem:[#allocation61_spill] sm:$0xff] %v5005_v28  ;;  %6739 = vst [vmem:[#allocation62_spill] sm:$0xff] %v5008_v37  ;;  %v5011_v32 = vld [vmem:[#allocation7 + $0x20] ss:$16 sps:$4 sm:$0xff]  }
  0xa4   :  { %6740 = vst [vmem:[#allocation63_spill] sm:$0xff] %v5011_v32 }
  0xa5   :  { %1192 = vmatpush1.bf16.msra.mxu0 %v4987_v27  ;;  %v5015_v27 = vld [vmem:[#allocation7 + $0x28] ss:$16 sps:$4 sm:$0xff]  }
  0xa6   :  { %1233 = vmatpush1.bf16.msra.mxu1 %v4991_v31  ;;  %1193 = vmatprep.subr.bf16.mxu0 %v4993_v33  ;;  %6741 = vst [vmem:[#allocation64_spill] sm:$0xff] %v5015_v27  ;;  %v5017_v31 = vld [vmem:[#allocation7 + $0x4] ss:$16 sps:$4 sm:$0xff]   ;;  %v5020_v33 = vld [vmem:[#allocation7 + $0xc] ss:$16 sps:$4 sm:$0xff]  }
  0xa7   :  { %1234 = vmatprep.subr.bf16.mxu1 %v4996_v0  ;;  %6742 = vst [vmem:[#allocation65_spill] sm:$0xff] %v5017_v31  ;;  %6743 = vst [vmem:[#allocation66_spill] sm:$0xff] %v5020_v33  ;;  %v5023_v0 = vld [vmem:[#allocation7] ss:$16 sps:$4 sm:$0xff]  }
  0xa8   :  { %6744 = vst [vmem:[#allocation67_spill] sm:$0xff] %v5023_v0 }
  0xa9   :  { %1194 = vmatpush1.bf16.msra.mxu0 %v4999_v34  ;;  %v5027_v34 = vld [vmem:[#allocation7 + $0x8] ss:$16 sps:$4 sm:$0xff]  }
  0xaa   :  { %1235 = vmatpush1.bf16.msra.mxu1 %v5003_v30  ;;  %1195 = vmatprep.subr.bf16.mxu0 %v5005_v28  ;;  %6745 = vst [vmem:[#allocation68_spill] sm:$0xff] %v5027_v34 }
  0xab   :  { %1236 = vmatprep.subr.bf16.mxu1 %v5008_v37  ;;  %v126_v37 = vlaneseq }
  0xad   :  { %1196 = vmatpush1.bf16.msra.mxu0 %v5011_v32  ;;  %v5034_v32 = vshrl.u32 %v126_v37, 7 }
  0xae   :  { %1237 = vmatpush1.bf16.msra.mxu1 %v5015_v27  ;;  %1197 = vmatprep.subr.bf16.mxu0 %v5017_v31 }
  0xaf   :  { %1238 = vmatprep.subr.bf16.mxu1 %v5020_v33  ;;  %6746 = vst [vmem:[#allocation69_spill] sm:$0xff] %v5034_v32  ;;  %v6450_v28 = vsub.s32 2, %v5034_v32  ;;  %v6455_v27 = vsub.s32 0, %v5034_v32  ;;  %v6458_v31 = vsub.s32 3, %v5034_v32  ;;  %v124_v33 = vld [vmem:[%s6341_s3] sm:$0xf] }
  0xb1   :  { %1198 = vmatpush1.bf16.msra.mxu0 %v5023_v0  ;;  %v129_v24 = vrot.slane %v124_v33, %v6455_v27  ;;  %v141_v29 = vrot.slane %v124_v33, %v6458_v31 }
  0xb2   :  { %1239 = vmatpush1.bf16.msra.mxu1 %v5027_v34  ;;  %1293 = vmatprep.subr.bf16.mxu0 %v4734_v35  ;;  %v6463_v34 = vsub.s32 1, %v5034_v32  ;;  %v137_v35 = vrot.slane %v124_v33, %v6450_v28 }
  0xb3   :  { %1334 = vmatprep.subr.bf16.mxu1 %v4736_v36 }
  0xb4   :  { %v133_v20 = vrot.slane %v124_v33, %v6463_v34 }
 0x113   :  { %v340_v0 = vpop.f32.mrf.mxu0  ;;  %v383_v30 = vpop.f32.mrf.mxu1 }
 0x114   :  { %v5059_v15 = vadd.f32 %v340_v0, %v129_v24  ;;  %v5065_v0 = vadd.f32 %v383_v30, %v137_v35 }
 0x115   :  { %v342_v36 = vpop.f32.mrf.mxu0  ;;  %v385_v37 = vpop.f32.mrf.mxu1 }
 0x116   :  { %v5061_v31 = vadd.f32 %v342_v36, %v133_v20 }
 0x117   :  { %v344_v23 = vpop.f32.mrf.mxu0  ;;  %v387_v26 = vpop.f32.mrf.mxu1 }
 0x118   :  { %v5051_v25 = vadd.f32 %v344_v23, %v129_v24  ;;  %v5053_v19 = vadd.f32 %v387_v26, %v137_v35 }
 0x119   :  { %v346_v22 = vpop.f32.mrf.mxu0  ;;  %v389_v16 = vpop.f32.mrf.mxu1 }
 0x11a   :  { %6747 = vst [vmem:[#allocation70_spill] sm:$0xff] %v5051_v25  ;;  %6748 = vst [vmem:[#allocation71_spill] sm:$0xff] %v5053_v19  ;;  %v5055_v28 = vadd.f32 %v346_v22, %v133_v20  ;;  %v5057_v21 = vadd.f32 %v389_v16, %v141_v29  ;;  %v5068_v20 = vadd.f32 %v385_v37, %v141_v29 }
 0x11c   :  { %6749 = vst [vmem:[#allocation72_spill] sm:$0xff] %v5055_v28  ;;  %6750 = vst [vmem:[#allocation73_spill] sm:$0xff] %v5057_v21 }
 0x133   :  { %v640_v27 = vpop.f32.mrf.mxu0  ;;  %v681_v18 = vpop.f32.mrf.mxu1 }
 0x134   :  { %v688_v14 = vadd.f32 %v640_v27, %v5059_v15  ;;  %v690_v24 = vadd.f32 %v681_v18, %v5065_v0 }
 0x135   :  { %v642_v32 = vpop.f32.mrf.mxu0  ;;  %v683_v33 = vpop.f32.mrf.mxu1 }
 0x136   :  { %v3726_v23 = vmul.f32 -1.442695, %v688_v14  ;;  %v689_v26 = vadd.f32 %v642_v32, %v5061_v31  ;;  %v3728_v36 = vmul.f32 -1.442695, %v690_v24  ;;  %v691_v21 = vadd.f32 %v683_v33, %v5068_v20  ;;  %v6770_v24 = vld [vmem:[#allocation31_spill] sm:$0xff] }
 0x137   :  { %v644_v34 = vpop.f32.mrf.mxu0  ;;  %v685_v19 = vpop.f32.mrf.mxu1 }
 0x138   :  { %4086 = vpow2.f32 %v3726_v23  ;;  %v3727_v22 = vmul.f32 -1.442695, %v689_v26 }
 0x139   :  { %v645_v28 = vpop.f32.mrf.mxu0  ;;  %v686_v16 = vpop.f32.mrf.mxu1 }
 0x13a   :  { %4088 = vpow2.f32 %v3727_v22  ;;  %v6769_v16 = vld [vmem:[#allocation34_spill] sm:$0xff] }
 0x13b   :  { %4090 = vpow2.f32 %v3728_v36  ;;  %v6771_v36 = vld [vmem:[#allocation35_spill] sm:$0xff] }
 0x145   :  { %v4087_v27 = vpop.eup %4086 }
 0x146   :  { %v701_v14 = vadd.f32 1.0, %v4087_v27  ;;  %v6772_v27 = vld [vmem:[#allocation32_spill] sm:$0xff] }
 0x147   :  { %v4089_v25 = vpop.eup %4088 }
 0x148   :  { %4092 = vrcp.f32 %v701_v14  ;;  %v702_v19 = vadd.f32 1.0, %v4089_v25  ;;  %v4091_v28 = vpop.eup %4090  ;;  %v6768_v25 = vld [vmem:[#allocation28_spill] sm:$0xff] }
 0x149   :  { %4094 = vtanh.f32 %v691_v21  ;;  %v703_v35 = vadd.f32 1.0, %v4091_v28  ;;  %v6751_v21 = vmov 0   ;;  %v6773_v14 = vld [vmem:[#allocation36_spill] sm:$0xff]  ;;  %v6775_v28 = vld [vmem:[#allocation38_spill] sm:$0xff] }
 0x14a   :  { %4096 = vrcp.f32 %v702_v19  ;;  %v6774_v19 = vld [vmem:[#allocation37_spill] sm:$0xff] }
 0x14b   :  { %4098 = vrcp.f32 %v703_v35 }
 0x155   :  { %v4093_v32 = vpop.eup %4092 }
 0x156   :  { %v4095_v34 = vpop.eup %4094 }
 0x157   :  { %v4097_v30 = vpop.eup %4096  ;;  %v712_v18 = vmul.f32 %v4095_v34, %v4093_v32  ;;  %v392_v32 = vld [vmem:[%s6344_s6] sm:$0xf]  ;;  %v6776_v34 = vld [vmem:[#allocation69_spill] sm:$0xff] }
 0x158   :  { %v711_v23 = vmul.f32 0.0, %v4097_v30  ;;  %v4099_v37 = vpop.eup %4098  ;;  %v6777_v30 = vsub.s32 0, %v6776_v34 }
 0x15a   :  { %v5071_v29 = vadd.f32 %v712_v18, %v711_v23  ;;  %v5147_v35 = vrot.slane %v392_v32, %v6777_v30 }
 0x15c   :  { %4100 = vtanh.f32 %v5071_v29 }
 0x169   :  { %v4101_v33 = vpop.eup %4100 }
 0x16a   :  { %v715_v26 = vmul.f32 %v4101_v33, %v4099_v37  ;;  %v6778_v37 = vsub.s32 1, %v6776_v34 }
 0x16c   :  { %v716_v22 = vpack.c.bf16 %v715_v26, %v715_v26  ;;  %v5151_v33 = vrot.slane %v392_v32, %v6778_v37 }
 0x16e   :  { %1216 = vmatmul.mubr.bf16.vlgmr.msra.gmra.mxu0 %v716_v22  ;;  %1257 = vmatmul.mubr.bf16.vlgmr.msra.gmra.mxu1 %v716_v22 }
 0x16f   :  { %1294 = vmatpush1.bf16.msra.mxu0 %v4738_v38  ;;  %1335 = vmatpush1.bf16.msra.mxu1 %v4740_v39  ;;  %v975_v38 = vpop.f32.mrf.mxu0 }
 0x170   :  { %1295 = vmatprep.subr.bf16.mxu0 %v4742_v40  ;;  %1336 = vmatprep.subr.bf16.mxu1 %v4746_v41 }
 0x171   :  { %1325 = vmatprep.mubr.bf16.mxu0 %v6751_v21  ;;  %1366 = vmatprep.mubr.bf16.mxu1 %v6751_v21  ;;  %v977_v39 = vpop.f32.mrf.mxu0 }
 0x173   :  { %1296 = vmatpush1.bf16.msra.mxu0 %v4748_v42  ;;  %1337 = vmatpush1.bf16.msra.mxu1 %v4752_v43  ;;  %v979_v40 = vpop.f32.mrf.mxu0  ;;  %v1016_v42 = vpop.f32.mrf.mxu1 }
 0x174   :  { %1297 = vmatprep.subr.bf16.mxu0 %v4756_v44  ;;  %1338 = vmatprep.subr.bf16.mxu1 %v4758_v45 }
 0x175   :  { %v980_v41 = vpop.f32.mrf.mxu0  ;;  %v1018_v43 = vpop.f32.mrf.mxu1 }
 0x177   :  { %1298 = vmatpush1.bf16.msra.mxu0 %v4762_v46  ;;  %1339 = vmatpush1.bf16.msra.mxu1 %v4766_v47  ;;  %v1020_v44 = vpop.f32.mrf.mxu1  ;;  %v6752_v46 = vld [vmem:[#allocation15_spill] sm:$0xff]  ;;  %v6753_v47 = vld [vmem:[#allocation18_spill] sm:$0xff] }
 0x178   :  { %1299 = vmatprep.subr.bf16.mxu0 %v4768_v48  ;;  %1340 = vmatprep.subr.bf16.mxu1 %v4772_v49  ;;  %v6754_v48 = vld [vmem:[#allocation16_spill] sm:$0xff]  ;;  %v6755_v49 = vld [vmem:[#allocation21_spill] sm:$0xff] }
 0x179   :  { %v1021_v45 = vpop.f32.mrf.mxu1 }
 0x17b   :  { %1300 = vmatpush1.bf16.msra.mxu0 %v4774_v50  ;;  %1341 = vmatpush1.bf16.msra.mxu1 %v4776_v51  ;;  %v6756_v50 = vld [vmem:[#allocation17_spill] sm:$0xff]  ;;  %v6757_v51 = vld [vmem:[#allocation22_spill] sm:$0xff] }
 0x17c   :  { %1301 = vmatprep.subr.bf16.mxu0 %v4778_v52  ;;  %1342 = vmatprep.subr.bf16.mxu1 %v4780_v53  ;;  %v6758_v52 = vld [vmem:[#allocation19_spill] sm:$0xff]  ;;  %v6759_v53 = vld [vmem:[#allocation25_spill] sm:$0xff] }
 0x17f   :  { %1302 = vmatpush1.bf16.msra.mxu0 %v4786_v54  ;;  %1343 = vmatpush1.bf16.msra.mxu1 %v4788_v55  ;;  %v6760_v54 = vld [vmem:[#allocation20_spill] sm:$0xff]  ;;  %v6761_v55 = vld [vmem:[#allocation26_spill] sm:$0xff] }
 0x180   :  { %1303 = vmatprep.subr.bf16.mxu0 %v4790_v56  ;;  %1344 = vmatprep.subr.bf16.mxu1 %v4792_v57  ;;  %v6762_v56 = vld [vmem:[#allocation23_spill] sm:$0xff]  ;;  %v6763_v57 = vld [vmem:[#allocation29_spill] sm:$0xff] }
 0x183   :  { %1304 = vmatpush1.bf16.msra.mxu0 %v4798_v58  ;;  %1345 = vmatpush1.bf16.msra.mxu1 %v4800_v59  ;;  %v6764_v58 = vld [vmem:[#allocation24_spill] sm:$0xff]  ;;  %v6765_v59 = vld [vmem:[#allocation30_spill] sm:$0xff] }
 0x184   :  { %1305 = vmatprep.subr.bf16.mxu0 %v4802_v60  ;;  %1346 = vmatprep.subr.bf16.mxu1 %v4804_v61  ;;  %v6766_v60 = vld [vmem:[#allocation27_spill] sm:$0xff]  ;;  %v6767_v61 = vld [vmem:[#allocation33_spill] sm:$0xff] }
 0x187   :  { %1306 = vmatpush1.bf16.msra.mxu0 %v4810_v62  ;;  %1347 = vmatpush1.bf16.msra.mxu1 %v4812_v63 }
 0x188   :  { %1307 = vmatprep.subr.bf16.mxu0 %v4814_v1  ;;  %1348 = vmatprep.subr.bf16.mxu1 %v4816_v2 }
 0x18b   :  { %1308 = vmatpush1.bf16.msra.mxu0 %v4822_v3  ;;  %1349 = vmatpush1.bf16.msra.mxu1 %v4824_v4 }
 0x18c   :  { %1420 = vmatprep.subr.bf16.mxu0 %v4836_v5  ;;  %1461 = vmatprep.subr.bf16.mxu1 %v4842_v8 }
 0x18e   :  { %1326 = vmatmul.mubr.bf16.vlgmr.msra.gmra.mxu0 %v716_v22  ;;  %1367 = vmatmul.mubr.bf16.vlgmr.msra.gmra.mxu1 %v716_v22 }
 0x18f   :  { %1421 = vmatpush1.bf16.msra.mxu0 %v4838_v6  ;;  %1462 = vmatpush1.bf16.msra.mxu1 %v4845_v9 }
 0x190   :  { %1422 = vmatprep.subr.bf16.mxu0 %v4840_v7  ;;  %1463 = vmatprep.subr.bf16.mxu1 %v4851_v11 }
 0x191   :  { %1452 = vmatprep.mubr.bf16.mxu0 %v6751_v21  ;;  %1493 = vmatprep.mubr.bf16.mxu1 %v6751_v21 }
 0x193   :  { %1423 = vmatpush1.bf16.msra.mxu0 %v4848_v10  ;;  %1464 = vmatpush1.bf16.msra.mxu1 %v4857_v13 }
 0x194   :  { %1424 = vmatprep.subr.bf16.mxu0 %v4855_v12  ;;  %1465 = vmatprep.subr.bf16.mxu1 %v4871_v17 }
 0x197   :  { %1425 = vmatpush1.bf16.msra.mxu0 %v6752_v46  ;;  %1466 = vmatpush1.bf16.msra.mxu1 %v6753_v47 }
 0x198   :  { %1426 = vmatprep.subr.bf16.mxu0 %v6754_v48  ;;  %1467 = vmatprep.subr.bf16.mxu1 %v6755_v49 }
 0x19b   :  { %1427 = vmatpush1.bf16.msra.mxu0 %v6756_v50  ;;  %1468 = vmatpush1.bf16.msra.mxu1 %v6757_v51 }
 0x19c   :  { %1428 = vmatprep.subr.bf16.mxu0 %v6758_v52  ;;  %1469 = vmatprep.subr.bf16.mxu1 %v6759_v53 }
 0x19f   :  { %1429 = vmatpush1.bf16.msra.mxu0 %v6760_v54  ;;  %1470 = vmatpush1.bf16.msra.mxu1 %v6761_v55 }
 0x1a0   :  { %1430 = vmatprep.subr.bf16.mxu0 %v6762_v56  ;;  %1471 = vmatprep.subr.bf16.mxu1 %v6763_v57 }
 0x1a3   :  { %1431 = vmatpush1.bf16.msra.mxu0 %v6764_v58  ;;  %1472 = vmatpush1.bf16.msra.mxu1 %v6765_v59 }
 0x1a4   :  { %1432 = vmatprep.subr.bf16.mxu0 %v6766_v60  ;;  %1473 = vmatprep.subr.bf16.mxu1 %v6767_v61 }
 0x1a7   :  { %1433 = vmatpush1.bf16.msra.mxu0 %v6768_v25  ;;  %1474 = vmatpush1.bf16.msra.mxu1 %v6769_v16 }
 0x1a8   :  { %1434 = vmatprep.subr.bf16.mxu0 %v6770_v24  ;;  %1475 = vmatprep.subr.bf16.mxu1 %v6771_v36  ;;  %v6779_v24 = vsub.s32 2, %v6776_v34 }
 0x1aa   :  { %v5157_v37 = vrot.slane %v392_v32, %v6779_v24 }
 0x1ab   :  { %1435 = vmatpush1.bf16.msra.mxu0 %v6772_v27  ;;  %1476 = vmatpush1.bf16.msra.mxu1 %v6773_v14 }
 0x1ac   :  { %1505 = vmatprep.subr.bf16.mxu0 %v6774_v19  ;;  %1546 = vmatprep.subr.bf16.mxu1 %v6775_v28 }
 0x22e   :  { %v1217_v23 = vpop.f32.mrf.mxu0  ;;  %v1258_v18 = vpop.f32.mrf.mxu1 }
 0x22f   :  { %v1218_v26 = vadd.f32 %v1217_v23, %v975_v38  ;;  %v1259_v38 = vadd.f32 %v1258_v18, %v1016_v42 }
 0x230   :  { %v1219_v22 = vpop.f32.mrf.mxu0  ;;  %v1260_v40 = vpop.f32.mrf.mxu1 }
 0x231   :  { %v1265_v41 = vadd.f32 %v1218_v26, %v5147_v35  ;;  %v1220_v44 = vadd.f32 %v1219_v22, %v977_v39  ;;  %v1267_v23 = vadd.f32 %v1259_v38, %v5157_v37  ;;  %v6780_v26 = vsub.s32 3, %v6776_v34 }
 0x232   :  { %v1221_v45 = vpop.f32.mrf.mxu0  ;;  %v1262_v28 = vpop.f32.mrf.mxu1 }
 0x233   :  { %v3793_v19 = vmul.f32 -1.442695, %v1265_v41  ;;  %v1266_v14 = vadd.f32 %v1220_v44, %v5151_v33  ;;  %v5162_v39 = vrot.slane %v392_v32, %v6780_v26  ;;  %v1261_v28 = vadd.f32 %v1260_v40, %v1018_v43 }
 0x234   :  { %v1222_v27 = vpop.f32.mrf.mxu0  ;;  %v1263_v30 = vpop.f32.mrf.mxu1  ;;  %v3795_v22 = vmul.f32 -1.442695, %v1267_v23 }
 0x235   :  { %4102 = vpow2.f32 %v3793_v19  ;;  %v3794_v36 = vmul.f32 -1.442695, %v1266_v14  ;;  %6781 = vst [vmem:[#allocation15_spill] sm:$0xff] %v5162_v39  ;;  %v1268_v27 = vadd.f32 %v1261_v28, %v5162_v39 }
 0x237   :  { %4104 = vpow2.f32 %v3794_v36 }
 0x238   :  { %4106 = vpow2.f32 %v3795_v22 }
 0x242   :  { %v4103_v41 = vpop.eup %4102 }
 0x243   :  { %v1278_v44 = vadd.f32 1.0, %v4103_v41 }
 0x244   :  { %v4105_v19 = vpop.eup %4104 }
 0x245   :  { %4108 = vrcp.f32 %v1278_v44  ;;  %v1279_v36 = vadd.f32 1.0, %v4105_v19  ;;  %v4107_v34 = vpop.eup %4106 }
 0x246   :  { %4110 = vtanh.f32 %v1268_v27  ;;  %v1280_v41 = vadd.f32 1.0, %v4107_v34 }
 0x247   :  { %4112 = vrcp.f32 %v1279_v36 }
 0x24e   :  { %v1327_v24 = vpop.f32.mrf.mxu0  ;;  %v1368_v42 = vpop.f32.mrf.mxu1 }
 0x24f   :  { %v1379_v14 = vrot.slane %v1327_v24, 6 }
 0x250   :  { %v1329_v18 = vpop.f32.mrf.mxu0  ;;  %v1370_v45 = vpop.f32.mrf.mxu1 }
 0x251   :  { %v1387_v32 = vadd.f32 %v1379_v14, %v5059_v15  ;;  %v1380_v43 = vrot.slane %v1329_v18, 6  ;;  %v1381_v14 = vrot.slane %v1368_v42, 6 }
 0x252   :  { %v4109_v40 = vpop.eup %4108  ;;  %v1331_v30 = vpop.f32.mrf.mxu0 }
 0x253   :  { %v1372_v38 = vpop.f32.mrf.mxu1  ;;  %v4111_v23 = vpop.eup %4110  ;;  %v3796_v26 = vmul.f32 -1.442695, %v1387_v32  ;;  %v1388_v28 = vadd.f32 %v1380_v43, %v5061_v31  ;;  %v1389_v18 = vadd.f32 %v1381_v14, %v5065_v0  ;;  %v1382_v32 = vrot.slane %v1370_v45, 6  ;;  %v6783_v45 = vld [vmem:[#allocation40_spill] sm:$0xff]  ;;  %v6788_v14 = vld [vmem:[#allocation45_spill] sm:$0xff] }
 0x254   :  { %v4113_v22 = vpop.eup %4112  ;;  %v1332_v27 = vpop.f32.mrf.mxu0  ;;  %v1289_v36 = vmul.f32 %v4111_v23, %v4109_v40 }
 0x255   :  { %v1373_v44 = vpop.f32.mrf.mxu1  ;;  %v1288_v19 = vmul.f32 0.0, %v4113_v22  ;;  %4114 = vpow2.f32 %v3796_v26  ;;  %v3797_v24 = vmul.f32 -1.442695, %v1388_v28  ;;  %v3798_v30 = vmul.f32 -1.442695, %v1389_v18  ;;  %v6782_v22 = vld [vmem:[#allocation39_spill] sm:$0xff] }
 0x256   :  { %v1390_v34 = vadd.f32 %v1382_v32, %v5068_v20  ;;  %v6785_v44 = vld [vmem:[#allocation42_spill] sm:$0xff] }
 0x257   :  { %v5167_v39 = vadd.f32 %v1289_v36, %v1288_v19  ;;  %4116 = vpow2.f32 %v3797_v24  ;;  %v6786_v19 = vld [vmem:[#allocation43_spill] sm:$0xff]  ;;  %v6787_v36 = vld [vmem:[#allocation44_spill] sm:$0xff]  ;;  %v6789_v18 = vld [vmem:[#allocation46_spill] sm:$0xff] }
 0x258   :  { %4118 = vrcp.f32 %v1280_v41  ;;  %v6784_v41 = vld [vmem:[#allocation41_spill] sm:$0xff] }
 0x259   :  { %4120 = vtanh.f32 %v5167_v39 }
 0x25a   :  { %4122 = vpow2.f32 %v3798_v30 }
 0x262   :  { %v4115_v43 = vpop.eup %4114 }
 0x263   :  { %v1400_v38 = vadd.f32 1.0, %v4115_v43  ;;  %v1411_v43 = vrot.slane %v5071_v29, 6  ;;  %v6796_v29 = vld [vmem:[#allocation53_spill] sm:$0xff] }
 0x264   :  { %v4117_v27 = vpop.eup %4116 }
 0x265   :  { %v4119_v40 = vpop.eup %4118  ;;  %4124 = vrcp.f32 %v1400_v38  ;;  %v1401_v23 = vadd.f32 1.0, %v4117_v27  ;;  %v6790_v27 = vld [vmem:[#allocation47_spill] sm:$0xff] }
 0x266   :  { %v4121_v26 = vpop.eup %4120  ;;  %4126 = vtanh.f32 %v1390_v34 }
 0x267   :  { %4128 = vrcp.f32 %v1401_v23  ;;  %v1292_v28 = vmul.f32 %v4121_v26, %v4119_v40  ;;  %v4123_v24 = vpop.eup %4122  ;;  %v6791_v40 = vld [vmem:[#allocation48_spill] sm:$0xff] }
 0x268   :  { %v1402_v38 = vadd.f32 1.0, %v4123_v24  ;;  %v6797_v24 = vld [vmem:[#allocation54_spill] sm:$0xff] }
 0x269   :  { %v1419_v42 = vpack.c.bf16 %v1292_v28, %v1292_v28  ;;  %v6792_v28 = vld [vmem:[#allocation49_spill] sm:$0xff] }
 0x26a   :  { %4130 = vrcp.f32 %v1402_v38  ;;  %v6803_v38 = vld [vmem:[#allocation60_spill] sm:$0xff] }
 0x26b   :  { %1453 = vmatmul.mubr.bf16.vlgmr.msra.gmra.mxu0 %v1419_v42  ;;  %1494 = vmatmul.mubr.bf16.vlgmr.msra.gmra.mxu1 %v1419_v42  ;;  %v6793_v42 = vld [vmem:[#allocation50_spill] sm:$0xff] }
 0x26c   :  { %1506 = vmatpush1.bf16.msra.mxu0 %v6782_v22  ;;  %1547 = vmatpush1.bf16.msra.mxu1 %v6783_v45 }
 0x26d   :  { %1507 = vmatprep.subr.bf16.mxu0 %v6784_v41  ;;  %1548 = vmatprep.subr.bf16.mxu1 %v6785_v44 }
 0x26e   :  { %1537 = vmatprep.mubr.bf16.mxu0 %v6751_v21  ;;  %1578 = vmatprep.mubr.bf16.mxu1 %v6751_v21 }
 0x270   :  { %1508 = vmatpush1.bf16.msra.mxu0 %v6786_v19  ;;  %1549 = vmatpush1.bf16.msra.mxu1 %v6787_v36 }
 0x271   :  { %1509 = vmatprep.subr.bf16.mxu0 %v6788_v14  ;;  %1550 = vmatprep.subr.bf16.mxu1 %v6789_v18  ;;  %v6794_v18 = vld [vmem:[#allocation51_spill] sm:$0xff]  ;;  %v6795_v14 = vld [vmem:[#allocation52_spill] sm:$0xff] }
 0x272   :  { %v4125_v32 = vpop.eup %4124 }
 0x273   :  { %v4127_v30 = vpop.eup %4126 }
 0x274   :  { %v4129_v34 = vpop.eup %4128  ;;  %1510 = vmatpush1.bf16.msra.mxu0 %v6790_v27  ;;  %1551 = vmatpush1.bf16.msra.mxu1 %v6791_v40  ;;  %v1414_v26 = vmul.f32 %v4127_v30, %v4125_v32  ;;  %v6798_v40 = vld [vmem:[#allocation55_spill] sm:$0xff]  ;;  %v6799_v32 = vld [vmem:[#allocation56_spill] sm:$0xff]  ;;  %v6800_v30 = vld [vmem:[#allocation57_spill] sm:$0xff] }
 0x275   :  { %v1413_v23 = vmul.f32 %v4129_v34, %v1411_v43  ;;  %1511 = vmatprep.subr.bf16.mxu0 %v6792_v28  ;;  %1552 = vmatprep.subr.bf16.mxu1 %v6793_v42  ;;  %v6801_v43 = vld [vmem:[#allocation58_spill] sm:$0xff]  ;;  %v6802_v34 = vld [vmem:[#allocation59_spill] sm:$0xff] }
 0x277   :  { %v5187_v36 = vadd.f32 %v1414_v26, %v1413_v23  ;;  %v6804_v23 = vld [vmem:[#allocation61_spill] sm:$0xff]  ;;  %v6805_v26 = vld [vmem:[#allocation62_spill] sm:$0xff] }
 0x278   :  { %1512 = vmatpush1.bf16.msra.mxu0 %v6794_v18  ;;  %1553 = vmatpush1.bf16.msra.mxu1 %v6795_v14  ;;  %v6806_v14 = vld [vmem:[#allocation63_spill] sm:$0xff] }
 0x279   :  { %4132 = vtanh.f32 %v5187_v36  ;;  %1513 = vmatprep.subr.bf16.mxu0 %v6796_v29  ;;  %1554 = vmatprep.subr.bf16.mxu1 %v6797_v24  ;;  %v6807_v29 = vld [vmem:[#allocation64_spill] sm:$0xff]  ;;  %v4131_v24 = vpop.eup %4130 }
 0x27c   :  { %1514 = vmatpush1.bf16.msra.mxu0 %v6798_v40  ;;  %1555 = vmatpush1.bf16.msra.mxu1 %v6799_v32  ;;  %v6808_v40 = vld [vmem:[#allocation65_spill] sm:$0xff]  ;;  %v6809_v32 = vld [vmem:[#allocation66_spill] sm:$0xff] }
 0x27d   :  { %1515 = vmatprep.subr.bf16.mxu0 %v6800_v30  ;;  %1556 = vmatprep.subr.bf16.mxu1 %v6801_v43  ;;  %v6810_v43 = vld [vmem:[#allocation67_spill] sm:$0xff] }
 0x280   :  { %1516 = vmatpush1.bf16.msra.mxu0 %v6802_v34  ;;  %1557 = vmatpush1.bf16.msra.mxu1 %v6803_v38  ;;  %v6811_v34 = vld [vmem:[#allocation68_spill] sm:$0xff]  ;;  %v5208_v38 = vld [vmem:[#allocation5 + $0xe4] ss:$16 sps:$4 sm:$0xff]  }
 0x281   :  { %1517 = vmatprep.subr.bf16.mxu0 %v6804_v23  ;;  %1558 = vmatprep.subr.bf16.mxu1 %v6805_v26  ;;  %6812 = vst [vmem:[#allocation18_spill] sm:$0xff] %v5208_v38  ;;  %v5211_v26 = vld [vmem:[#allocation5 + $0xec] ss:$16 sps:$4 sm:$0xff]  }
 0x284   :  { %1518 = vmatpush1.bf16.msra.mxu0 %v6806_v14  ;;  %1559 = vmatpush1.bf16.msra.mxu1 %v6807_v29 }
 0x285   :  { %1519 = vmatprep.subr.bf16.mxu0 %v6808_v40  ;;  %1560 = vmatprep.subr.bf16.mxu1 %v6809_v32  ;;  %v5214_v40 = vld [vmem:[#allocation5 + $0xe0] ss:$16 sps:$4 sm:$0xff]  }
 0x286   :  { %v4133_v30 = vpop.eup %4132  ;;  %6813 = vst [vmem:[#allocation16_spill] sm:$0xff] %v5214_v40 }
 0x287   :  { %v1417_v18 = vmul.f32 %v4133_v30, %v4131_v24  ;;  %v5217_v24 = vld [vmem:[#allocation5 + $0xe8] ss:$16 sps:$4 sm:$0xff]   ;;  %v5220_v30 = vld [vmem:[#allocation5 + $0xc4] ss:$16 sps:$4 sm:$0xff]  }
 0x288   :  { %1520 = vmatpush1.bf16.msra.mxu0 %v6810_v43  ;;  %1561 = vmatpush1.bf16.msra.mxu1 %v6811_v34  ;;  %6814 = vst [vmem:[#allocation21_spill] sm:$0xff] %v5217_v24  ;;  %6815 = vst [vmem:[#allocation17_spill] sm:$0xff] %v5220_v30 }
 0x289   :  { %1615 = vmatprep.subr.bf16.mxu0 %v5208_v38  ;;  %1656 = vmatprep.subr.bf16.mxu1 %v5211_v26  ;;  %v1418_v29 = vpack.c.bf16 %v1417_v18, %v1417_v18  ;;  %v5223_v38 = vld [vmem:[#allocation5 + $0xcc] ss:$16 sps:$4 sm:$0xff]   ;;  %v5228_v18 = vld [vmem:[#allocation5 + $0xc0] ss:$16 sps:$4 sm:$0xff]  }
 0x28a   :  { %6816 = vst [vmem:[#allocation22_spill] sm:$0xff] %v5223_v38  ;;  %6817 = vst [vmem:[#allocation19_spill] sm:$0xff] %v5228_v18 }
 0x28b   :  { %v1503_v14 = vrot.slane %v1418_v29, 1  ;;  %v5231_v29 = vld [vmem:[#allocation5 + $0xc8] ss:$16 sps:$4 sm:$0xff]  }
 0x28c   :  { %6818 = vst [vmem:[#allocation25_spill] sm:$0xff] %v5231_v29 }
 0x28d   :  { %1538 = vmatmul.mubr.bf16.vlgmr.msra.gmra.mxu0 %v1503_v14  ;;  %1579 = vmatmul.mubr.bf16.vlgmr.msra.gmra.mxu1 %v1503_v14 }
 0x28e   :  { %1616 = vmatpush1.bf16.msra.mxu0 %v5214_v40  ;;  %1657 = vmatpush1.bf16.msra.mxu1 %v5217_v24  ;;  %v5234_v24 = vld [vmem:[#allocation5 + $0xa4] ss:$16 sps:$4 sm:$0xff]   ;;  %v5243_v40 = vld [vmem:[#allocation5 + $0xa8] ss:$16 sps:$4 sm:$0xff]  }
 0x28f   :  { %1617 = vmatprep.subr.bf16.mxu0 %v5220_v30  ;;  %1658 = vmatprep.subr.bf16.mxu1 %v5223_v38  ;;  %6819 = vst [vmem:[#allocation20_spill] sm:$0xff] %v5234_v24  ;;  %v5237_v30 = vld [vmem:[#allocation5 + $0xac] ss:$16 sps:$4 sm:$0xff]   ;;  %v5240_v38 = vld [vmem:[#allocation5 + $0xa0] ss:$16 sps:$4 sm:$0xff]   ;;  %6822 = vst [vmem:[#allocation29_spill] sm:$0xff] %v5243_v40 }
 0x290   :  { %1647 = vmatprep.mubr.bf16.mxu0 %v6751_v21  ;;  %1688 = vmatprep.mubr.bf16.mxu1 %v6751_v21  ;;  %6820 = vst [vmem:[#allocation26_spill] sm:$0xff] %v5237_v30  ;;  %6821 = vst [vmem:[#allocation23_spill] sm:$0xff] %v5240_v38 }
 0x292   :  { %1618 = vmatpush1.bf16.msra.mxu0 %v5228_v18  ;;  %1659 = vmatpush1.bf16.msra.mxu1 %v5231_v29  ;;  %v5246_v18 = vld [vmem:[#allocation5 + $0x84] ss:$16 sps:$4 sm:$0xff]   ;;  %v5249_v29 = vld [vmem:[#allocation5 + $0x8c] ss:$16 sps:$4 sm:$0xff]  }
 0x293   :  { %1619 = vmatprep.subr.bf16.mxu0 %v5234_v24  ;;  %1660 = vmatprep.subr.bf16.mxu1 %v5237_v30  ;;  %6823 = vst [vmem:[#allocation24_spill] sm:$0xff] %v5246_v18  ;;  %6824 = vst [vmem:[#allocation30_spill] sm:$0xff] %v5249_v29  ;;  %v5252_v24 = vld [vmem:[#allocation5 + $0x80] ss:$16 sps:$4 sm:$0xff]   ;;  %v5255_v30 = vld [vmem:[#allocation5 + $0x88] ss:$16 sps:$4 sm:$0xff]  }
 0x294   :  { %6825 = vst [vmem:[#allocation27_spill] sm:$0xff] %v5252_v24  ;;  %6826 = vst [vmem:[#allocation33_spill] sm:$0xff] %v5255_v30 }
 0x296   :  { %1620 = vmatpush1.bf16.msra.mxu0 %v5240_v38  ;;  %1661 = vmatpush1.bf16.msra.mxu1 %v5243_v40  ;;  %v5258_v38 = vld [vmem:[#allocation5 + $0x64] ss:$16 sps:$4 sm:$0xff]   ;;  %v5261_v40 = vld [vmem:[#allocation5 + $0x6c] ss:$16 sps:$4 sm:$0xff]  }
 0x297   :  { %1621 = vmatprep.subr.bf16.mxu0 %v5246_v18  ;;  %1662 = vmatprep.subr.bf16.mxu1 %v5249_v29  ;;  %6827 = vst [vmem:[#allocation28_spill] sm:$0xff] %v5258_v38  ;;  %6828 = vst [vmem:[#allocation34_spill] sm:$0xff] %v5261_v40  ;;  %v5264_v18 = vld [vmem:[#allocation5 + $0x60] ss:$16 sps:$4 sm:$0xff]   ;;  %v5267_v29 = vld [vmem:[#allocation5 + $0x68] ss:$16 sps:$4 sm:$0xff]  }
 0x298   :  { %6829 = vst [vmem:[#allocation69_spill] sm:$0xff] %v5264_v18  ;;  %6830 = vst [vmem:[#allocation39_spill] sm:$0xff] %v5267_v29 }
 0x29a   :  { %1622 = vmatpush1.bf16.msra.mxu0 %v5252_v24  ;;  %1663 = vmatpush1.bf16.msra.mxu1 %v5255_v30  ;;  %v5270_v24 = vld [vmem:[#allocation5 + $0x44] ss:$16 sps:$4 sm:$0xff]   ;;  %v5273_v30 = vld [vmem:[#allocation5 + $0x4c] ss:$16 sps:$4 sm:$0xff]  }
 0x29b   :  { %1623 = vmatprep.subr.bf16.mxu0 %v5258_v38  ;;  %1664 = vmatprep.subr.bf16.mxu1 %v5261_v40  ;;  %v5276_v38 = vld [vmem:[#allocation5 + $0x40] ss:$16 sps:$4 sm:$0xff]   ;;  %v5279_v40 = vld [vmem:[#allocation5 + $0x48] ss:$16 sps:$4 sm:$0xff]  }
 0x29e   :  { %1624 = vmatpush1.bf16.msra.mxu0 %v5264_v18  ;;  %1665 = vmatpush1.bf16.msra.mxu1 %v5267_v29  ;;  %v5282_v18 = vld [vmem:[#allocation5 + $0x24] ss:$16 sps:$4 sm:$0xff]   ;;  %v5285_v29 = vld [vmem:[#allocation5 + $0x2c] ss:$16 sps:$4 sm:$0xff]  }
 0x29f   :  { %1625 = vmatprep.subr.bf16.mxu0 %v5270_v24  ;;  %1666 = vmatprep.subr.bf16.mxu1 %v5273_v30 }
 0x2a2   :  { %1626 = vmatpush1.bf16.msra.mxu0 %v5276_v38  ;;  %1667 = vmatpush1.bf16.msra.mxu1 %v5279_v40 }
 0x2a3   :  { %1627 = vmatprep.subr.bf16.mxu0 %v5282_v18  ;;  %1668 = vmatprep.subr.bf16.mxu1 %v5285_v29 }
 0x2a6   :  { %1628 = vmatpush1.bf16.msra.mxu0 %v4810_v62  ;;  %1669 = vmatpush1.bf16.msra.mxu1 %v4812_v63  ;;  %v6831_v62 = vld [vmem:[#allocation31_spill] sm:$0xff] }
 0x2a7   :  { %1629 = vmatprep.subr.bf16.mxu0 %v4814_v1  ;;  %1670 = vmatprep.subr.bf16.mxu1 %v4816_v2  ;;  %v6832_v63 = vld [vmem:[#allocation35_spill] sm:$0xff]  ;;  %v6833_v1 = vld [vmem:[#allocation32_spill] sm:$0xff] }
 0x2a8   :  { %v6834_v2 = vld [vmem:[#allocation36_spill] sm:$0xff] }
 0x2aa   :  { %1630 = vmatpush1.bf16.msra.mxu0 %v4822_v3  ;;  %1671 = vmatpush1.bf16.msra.mxu1 %v4824_v4  ;;  %v6835_v3 = vld [vmem:[#allocation37_spill] sm:$0xff]  ;;  %v6836_v4 = vld [vmem:[#allocation38_spill] sm:$0xff] }
 0x2ab   :  { %1742 = vmatprep.subr.bf16.mxu0 %v4836_v5  ;;  %1783 = vmatprep.subr.bf16.mxu1 %v4842_v8 }
 0x2ad   :  { %1648 = vmatmul.mubr.bf16.vlgmr.msra.gmra.mxu0 %v1503_v14  ;;  %1689 = vmatmul.mubr.bf16.vlgmr.msra.gmra.mxu1 %v1503_v14 }
 0x2ae   :  { %1743 = vmatpush1.bf16.msra.mxu0 %v4838_v6  ;;  %1784 = vmatpush1.bf16.msra.mxu1 %v4845_v9 }
 0x2af   :  { %1744 = vmatprep.subr.bf16.mxu0 %v4840_v7  ;;  %1785 = vmatprep.subr.bf16.mxu1 %v4851_v11 }
 0x2b0   :  { %1774 = vmatprep.mubr.bf16.mxu0 %v6751_v21  ;;  %1815 = vmatprep.mubr.bf16.mxu1 %v6751_v21 }
 0x2b2   :  { %1745 = vmatpush1.bf16.msra.mxu0 %v4848_v10  ;;  %1786 = vmatpush1.bf16.msra.mxu1 %v4857_v13 }
 0x2b3   :  { %1746 = vmatprep.subr.bf16.mxu0 %v4855_v12  ;;  %1787 = vmatprep.subr.bf16.mxu1 %v4871_v17 }
 0x2b6   :  { %1747 = vmatpush1.bf16.msra.mxu0 %v6752_v46  ;;  %1788 = vmatpush1.bf16.msra.mxu1 %v6753_v47 }
 0x2b7   :  { %1748 = vmatprep.subr.bf16.mxu0 %v6754_v48  ;;  %1789 = vmatprep.subr.bf16.mxu1 %v6755_v49 }
 0x2ba   :  { %1749 = vmatpush1.bf16.msra.mxu0 %v6756_v50  ;;  %1790 = vmatpush1.bf16.msra.mxu1 %v6757_v51 }
 0x2bb   :  { %1750 = vmatprep.subr.bf16.mxu0 %v6758_v52  ;;  %1791 = vmatprep.subr.bf16.mxu1 %v6759_v53 }
 0x2be   :  { %1751 = vmatpush1.bf16.msra.mxu0 %v6760_v54  ;;  %1792 = vmatpush1.bf16.msra.mxu1 %v6761_v55 }
 0x2bf   :  { %1752 = vmatprep.subr.bf16.mxu0 %v6762_v56  ;;  %1793 = vmatprep.subr.bf16.mxu1 %v6763_v57 }
 0x2c2   :  { %1753 = vmatpush1.bf16.msra.mxu0 %v6764_v58  ;;  %1794 = vmatpush1.bf16.msra.mxu1 %v6765_v59 }
 0x2c3   :  { %1754 = vmatprep.subr.bf16.mxu0 %v6766_v60  ;;  %1795 = vmatprep.subr.bf16.mxu1 %v6767_v61 }
 0x2c6   :  { %1755 = vmatpush1.bf16.msra.mxu0 %v6768_v25  ;;  %1796 = vmatpush1.bf16.msra.mxu1 %v6769_v16  ;;  %v6837_v16 = vld [vmem:[#allocation15_spill] sm:$0xff] }
 0x2c7   :  { %1756 = vmatprep.subr.bf16.mxu0 %v6831_v62  ;;  %1797 = vmatprep.subr.bf16.mxu1 %v6832_v63 }
 0x2ca   :  { %1757 = vmatpush1.bf16.msra.mxu0 %v6833_v1  ;;  %1798 = vmatpush1.bf16.msra.mxu1 %v6834_v2 }
 0x2cb   :  { %1827 = vmatprep.subr.bf16.mxu0 %v6835_v3  ;;  %1868 = vmatprep.subr.bf16.mxu1 %v6836_v4 }
 0x32b   :  { %v1454_v5 = vpop.f32.mrf.mxu0  ;;  %v1495_v6 = vpop.f32.mrf.mxu1 }
 0x32d   :  { %v1456_v7 = vpop.f32.mrf.mxu0  ;;  %v1497_v8 = vpop.f32.mrf.mxu1 }
 0x32f   :  { %v1458_v9 = vpop.f32.mrf.mxu0  ;;  %v1499_v10 = vpop.f32.mrf.mxu1 }
 0x331   :  { %v1459_v11 = vpop.f32.mrf.mxu0  ;;  %v1500_v12 = vpop.f32.mrf.mxu1 }
 0x34d   :  { %v1539_v13 = vpop.f32.mrf.mxu0  ;;  %v1580_v17 = vpop.f32.mrf.mxu1 }
 0x34e   :  { %v1540_v46 = vadd.f32 %v1539_v13, %v1454_v5  ;;  %v1581_v58 = vadd.f32 %v1580_v17, %v1495_v6 }
 0x34f   :  { %v1541_v47 = vpop.f32.mrf.mxu0  ;;  %v1582_v48 = vpop.f32.mrf.mxu1 }
 0x350   :  { %v1587_v49 = vadd.f32 %v1540_v46, %v5147_v35  ;;  %v1542_v50 = vadd.f32 %v1541_v47, %v1456_v7  ;;  %v1589_v59 = vadd.f32 %v1581_v58, %v5157_v37  ;;  %v1583_v60 = vadd.f32 %v1582_v48, %v1497_v8 }
 0x351   :  { %v1543_v51 = vpop.f32.mrf.mxu0  ;;  %v1584_v52 = vpop.f32.mrf.mxu1 }
 0x352   :  { %v3799_v53 = vmul.f32 -1.442695, %v1587_v49  ;;  %v1588_v54 = vadd.f32 %v1542_v50, %v5151_v33  ;;  %v3801_v61 = vmul.f32 -1.442695, %v1589_v59  ;;  %v1590_v14 = vadd.f32 %v1583_v60, %v6837_v16 }
 0x353   :  { %v1544_v55 = vpop.f32.mrf.mxu0  ;;  %v1585_v56 = vpop.f32.mrf.mxu1 }
 0x354   :  { %4134 = vpow2.f32 %v3799_v53  ;;  %v3800_v57 = vmul.f32 -1.442695, %v1588_v54 }
 0x356   :  { %4136 = vpow2.f32 %v3800_v57 }
 0x357   :  { %4138 = vpow2.f32 %v3801_v61 }
 0x361   :  { %v4135_v25 = vpop.eup %4134 }
 0x362   :  { %v1600_v62 = vadd.f32 1.0, %v4135_v25 }
 0x363   :  { %v4137_v63 = vpop.eup %4136 }
 0x364   :  { %4140 = vrcp.f32 %v1600_v62  ;;  %v1601_v1 = vadd.f32 1.0, %v4137_v63  ;;  %v4139_v6 = vpop.eup %4138 }
 0x365   :  { %4142 = vtanh.f32 %v1590_v14  ;;  %v1602_v48 = vadd.f32 1.0, %v4139_v6 }
 0x366   :  { %4144 = vrcp.f32 %v1601_v1 }
 0x36d   :  { %v1649_v2 = vpop.f32.mrf.mxu0  ;;  %v1690_v3 = vpop.f32.mrf.mxu1 }
 0x36e   :  { %v1701_v4 = vrot.slane %v1649_v2, 4  ;;  %v1703_v55 = vrot.slane %v1690_v3, 4  ;;  %v6838_v2 = vld [vmem:[#allocation44_spill] sm:$0xff] }
 0x36f   :  { %v1651_v5 = vpop.f32.mrf.mxu0  ;;  %v1692_v7 = vpop.f32.mrf.mxu1 }
 0x370   :  { %v1709_v9 = vadd.f32 %v1701_v4, %v5059_v15  ;;  %v1702_v8 = vrot.slane %v1651_v5, 4  ;;  %v1711_v56 = vadd.f32 %v1703_v55, %v5065_v0  ;;  %v1704_v57 = vrot.slane %v1692_v7, 4  ;;  %v6839_v4 = vld [vmem:[#allocation45_spill] sm:$0xff]  ;;  %v6840_v5 = vld [vmem:[#allocation46_spill] sm:$0xff] }
 0x371   :  { %v4141_v10 = vpop.eup %4140  ;;  %v1653_v11 = vpop.f32.mrf.mxu0  ;;  %v6856_v55 = vld [vmem:[#allocation18_spill] sm:$0xff] }
 0x372   :  { %v1694_v12 = vpop.f32.mrf.mxu1  ;;  %v4143_v13 = vpop.eup %4142  ;;  %v3802_v17 = vmul.f32 -1.442695, %v1709_v9  ;;  %v1710_v46 = vadd.f32 %v1702_v8, %v5061_v31  ;;  %v3804_v58 = vmul.f32 -1.442695, %v1711_v56  ;;  %v1712_v60 = vadd.f32 %v1704_v57, %v5068_v20  ;;  %v6843_v11 = vld [vmem:[#allocation52_spill] sm:$0xff] }
 0x373   :  { %v4145_v47 = vpop.eup %4144  ;;  %v1654_v49 = vpop.f32.mrf.mxu0  ;;  %v1611_v52 = vmul.f32 %v4143_v13, %v4141_v10  ;;  %v6842_v10 = vld [vmem:[#allocation51_spill] sm:$0xff]  ;;  %v6847_v13 = vld [vmem:[#allocation56_spill] sm:$0xff] }
 0x374   :  { %v1695_v50 = vpop.f32.mrf.mxu1  ;;  %v1610_v51 = vmul.f32 %v4145_v47, %v5167_v39  ;;  %4146 = vpow2.f32 %v3802_v17  ;;  %v3803_v53 = vmul.f32 -1.442695, %v1710_v46  ;;  %v6846_v12 = vld [vmem:[#allocation55_spill] sm:$0xff]  ;;  %v6851_v46 = vld [vmem:[#allocation60_spill] sm:$0xff]  ;;  %v6852_v47 = vld [vmem:[#allocation62_spill] sm:$0xff] }
 0x375   :  { %v6850_v17 = vld [vmem:[#allocation59_spill] sm:$0xff]  ;;  %v6854_v49 = vld [vmem:[#allocation64_spill] sm:$0xff] }
 0x376   :  { %v5337_v54 = vadd.f32 %v1611_v52, %v1610_v51  ;;  %4148 = vpow2.f32 %v3803_v53  ;;  %v6855_v51 = vld [vmem:[#allocation65_spill] sm:$0xff]  ;;  %v6857_v57 = vld [vmem:[#allocation16_spill] sm:$0xff] }
 0x377   :  { %4150 = vrcp.f32 %v1602_v48  ;;  %v6853_v48 = vld [vmem:[#allocation63_spill] sm:$0xff] }
 0x378   :  { %4152 = vtanh.f32 %v5337_v54 }
 0x379   :  { %4154 = vpow2.f32 %v3804_v58  ;;  %v6858_v58 = vld [vmem:[#allocation21_spill] sm:$0xff] }
 0x381   :  { %v4147_v59 = vpop.eup %4146 }
 0x382   :  { %v1722_v61 = vadd.f32 1.0, %v4147_v59  ;;  %v6859_v59 = vld [vmem:[#allocation17_spill] sm:$0xff] }
 0x383   :  { %v4149_v25 = vpop.eup %4148 }
 0x384   :  { %v4151_v39 = vpop.eup %4150  ;;  %4156 = vrcp.f32 %v1722_v61  ;;  %v1723_v14 = vadd.f32 1.0, %v4149_v25  ;;  %v6864_v61 = vld [vmem:[#allocation26_spill] sm:$0xff]  ;;  %v6865_v25 = vld [vmem:[#allocation23_spill] sm:$0xff] }
 0x385   :  { %v4153_v62 = vpop.eup %4152  ;;  %4158 = vtanh.f32 %v1712_v60  ;;  %v6863_v60 = vld [vmem:[#allocation20_spill] sm:$0xff] }
 0x386   :  { %4160 = vrcp.f32 %v1723_v14  ;;  %v1614_v63 = vmul.f32 %v4153_v62, %v4151_v39  ;;  %v4155_v3 = vpop.eup %4154  ;;  %v6866_v39 = vld [vmem:[#allocation29_spill] sm:$0xff]  ;;  %v6867_v14 = vld [vmem:[#allocation24_spill] sm:$0xff]  ;;  %v6868_v62 = vld [vmem:[#allocation30_spill] sm:$0xff] }
 0x387   :  { %v1724_v6 = vadd.f32 1.0, %v4155_v3  ;;  %v6872_v3 = vld [vmem:[#allocation34_spill] sm:$0xff] }
 0x388   :  { %v1741_v1 = vpack.c.bf16 %v1614_v63, %v1614_v63  ;;  %v6869_v63 = vld [vmem:[#allocation27_spill] sm:$0xff] }
 0x389   :  { %4162 = vrcp.f32 %v1724_v6  ;;  %v5418_v6 = vld [vmem:[#allocation5] ss:$16 sps:$4 sm:$0xff]  }
 0x38a   :  { %1775 = vmatmul.mubr.bf16.vlgmr.msra.gmra.mxu0 %v1741_v1  ;;  %1816 = vmatmul.mubr.bf16.vlgmr.msra.gmra.mxu1 %v1741_v1  ;;  %v6870_v1 = vld [vmem:[#allocation33_spill] sm:$0xff] }
 0x38b   :  { %1828 = vmatpush1.bf16.msra.mxu0 %v6782_v22  ;;  %1869 = vmatpush1.bf16.msra.mxu1 %v6783_v45  ;;  %v1733_v45 = vrot.slane %v5187_v36, 6  ;;  %v6844_v36 = vld [vmem:[#allocation53_spill] sm:$0xff] }
 0x38c   :  { %1829 = vmatprep.subr.bf16.mxu0 %v6784_v41  ;;  %1870 = vmatprep.subr.bf16.mxu1 %v6785_v44  ;;  %v6841_v44 = vld [vmem:[#allocation48_spill] sm:$0xff] }
 0x38d   :  { %1859 = vmatprep.mubr.bf16.mxu0 %v6751_v21  ;;  %1900 = vmatprep.mubr.bf16.mxu1 %v6751_v21 }
 0x38f   :  { %1830 = vmatpush1.bf16.msra.mxu0 %v6786_v19  ;;  %1871 = vmatpush1.bf16.msra.mxu1 %v6838_v2  ;;  %v6871_v2 = vld [vmem:[#allocation28_spill] sm:$0xff] }
 0x390   :  { %1831 = vmatprep.subr.bf16.mxu0 %v6839_v4  ;;  %1872 = vmatprep.subr.bf16.mxu1 %v6840_v5  ;;  %v6873_v4 = vld [vmem:[#allocation69_spill] sm:$0xff]  ;;  %v6874_v5 = vld [vmem:[#allocation39_spill] sm:$0xff] }
 0x391   :  { %v4157_v22 = vpop.eup %4156 }
 0x392   :  { %v4159_v7 = vpop.eup %4158 }
 0x393   :  { %v4161_v41 = vpop.eup %4160  ;;  %1832 = vmatpush1.bf16.msra.mxu0 %v6790_v27  ;;  %1873 = vmatpush1.bf16.msra.mxu1 %v6841_v44  ;;  %v1736_v8 = vmul.f32 %v4159_v7, %v4157_v22  ;;  %v6845_v27 = vld [vmem:[#allocation54_spill] sm:$0xff] }
 0x394   :  { %v1735_v9 = vmul.f32 %v4161_v41, %v1733_v45  ;;  %1833 = vmatprep.subr.bf16.mxu0 %v6792_v28  ;;  %1874 = vmatprep.subr.bf16.mxu1 %v6793_v42  ;;  %v6848_v28 = vld [vmem:[#allocation57_spill] sm:$0xff]  ;;  %v6849_v42 = vld [vmem:[#allocation58_spill] sm:$0xff] }
 0x395   :  { %v5406_v22 = vld [vmem:[#allocation5 + $0x20] ss:$16 sps:$4 sm:$0xff]   ;;  %v5409_v7 = vld [vmem:[#allocation5 + $0x28] ss:$16 sps:$4 sm:$0xff]   ;;  %v5412_v45 = vld [vmem:[#allocation5 + $0x4] ss:$16 sps:$4 sm:$0xff]  }
 0x396   :  { %v5357_v19 = vadd.f32 %v1736_v8, %v1735_v9  ;;  %v4163_v50 = vpop.eup %4162  ;;  %v5415_v41 = vld [vmem:[#allocation5 + $0xc] ss:$16 sps:$4 sm:$0xff]   ;;  %v5421_v44 = vld [vmem:[#allocation5 + $0x8] ss:$16 sps:$4 sm:$0xff]   ;;  %v5424_v9 = vld [vmem:[#allocation8 + $0xe4] ss:$16 sps:$4 sm:$0xff]  }
 0x397   :  { %1834 = vmatpush1.bf16.msra.mxu0 %v6842_v10  ;;  %1875 = vmatpush1.bf16.msra.mxu1 %v6843_v11  ;;  %6875 = vst [vmem:[#allocation40_spill] sm:$0xff] %v5421_v44  ;;  %6876 = vst [vmem:[#allocation41_spill] sm:$0xff] %v5424_v9  ;;  %v5427_v8 = vld [vmem:[#allocation8 + $0xec] ss:$16 sps:$4 sm:$0xff]   ;;  %v5430_v10 = vld [vmem:[#allocation8 + $0xe0] ss:$16 sps:$4 sm:$0xff]  }
 0x398   :  { %4164 = vtanh.f32 %v5357_v19  ;;  %1835 = vmatprep.subr.bf16.mxu0 %v6844_v36  ;;  %1876 = vmatprep.subr.bf16.mxu1 %v6845_v27  ;;  %6877 = vst [vmem:[#allocation42_spill] sm:$0xff] %v5427_v8  ;;  %6878 = vst [vmem:[#allocation43_spill] sm:$0xff] %v5430_v10  ;;  %v5433_v11 = vld [vmem:[#allocation8 + $0xe8] ss:$16 sps:$4 sm:$0xff]   ;;  %v5436_v36 = vld [vmem:[#allocation8 + $0xc4] ss:$16 sps:$4 sm:$0xff]  }
 0x399   :  { %6879 = vst [vmem:[#allocation47_spill] sm:$0xff] %v5433_v11  ;;  %6880 = vst [vmem:[#allocation49_spill] sm:$0xff] %v5436_v36  ;;  %v5439_v27 = vld [vmem:[#allocation8 + $0xcc] ss:$16 sps:$4 sm:$0xff]  }
 0x39a   :  { %6881 = vst [vmem:[#allocation50_spill] sm:$0xff] %v5439_v27 }
 0x39b   :  { %1836 = vmatpush1.bf16.msra.mxu0 %v6846_v12  ;;  %1877 = vmatpush1.bf16.msra.mxu1 %v6847_v13  ;;  %v5444_v12 = vld [vmem:[#allocation8 + $0xc0] ss:$16 sps:$4 sm:$0xff]   ;;  %v5447_v13 = vld [vmem:[#allocation8 + $0xc8] ss:$16 sps:$4 sm:$0xff]  }
 0x39c   :  { %1837 = vmatprep.subr.bf16.mxu0 %v6848_v28  ;;  %1878 = vmatprep.subr.bf16.mxu1 %v6849_v42  ;;  %6882 = vst [vmem:[#allocation61_spill] sm:$0xff] %v5444_v12  ;;  %6883 = vst [vmem:[#allocation66_spill] sm:$0xff] %v5447_v13  ;;  %v5450_v28 = vld [vmem:[#allocation8 + $0xa4] ss:$16 sps:$4 sm:$0xff]   ;;  %v5453_v42 = vld [vmem:[#allocation8 + $0xac] ss:$16 sps:$4 sm:$0xff]  }
 0x39d   :  { %6884 = vst [vmem:[#allocation67_spill] sm:$0xff] %v5450_v28  ;;  %6885 = vst [vmem:[#allocation68_spill] sm:$0xff] %v5453_v42 }
 0x39f   :  { %1838 = vmatpush1.bf16.msra.mxu0 %v6850_v17  ;;  %1879 = vmatpush1.bf16.msra.mxu1 %v6851_v46  ;;  %v5456_v17 = vld [vmem:[#allocation8 + $0xa0] ss:$16 sps:$4 sm:$0xff]   ;;  %v5459_v46 = vld [vmem:[#allocation8 + $0xa8] ss:$16 sps:$4 sm:$0xff]  }
 0x3a0   :  { %1839 = vmatprep.subr.bf16.mxu0 %v6804_v23  ;;  %1880 = vmatprep.subr.bf16.mxu1 %v6852_v47  ;;  %6886 = vst [vmem:[#allocation31_spill] sm:$0xff] %v5456_v17  ;;  %6887 = vst [vmem:[#allocation35_spill] sm:$0xff] %v5459_v46  ;;  %v5462_v47 = vld [vmem:[#allocation8 + $0x84] ss:$16 sps:$4 sm:$0xff]  }
 0x3a1   :  { %6888 = vst [vmem:[#allocation32_spill] sm:$0xff] %v5462_v47 }
 0x3a3   :  { %1840 = vmatpush1.bf16.msra.mxu0 %v6853_v48  ;;  %1881 = vmatpush1.bf16.msra.mxu1 %v6854_v49  ;;  %v5465_v48 = vld [vmem:[#allocation8 + $0x8c] ss:$16 sps:$4 sm:$0xff]   ;;  %v5468_v49 = vld [vmem:[#allocation8 + $0x80] ss:$16 sps:$4 sm:$0xff]  }
 0x3a4   :  { %1841 = vmatprep.subr.bf16.mxu0 %v6855_v51  ;;  %1882 = vmatprep.subr.bf16.mxu1 %v6809_v32  ;;  %v6860_v32 = vld [vmem:[#allocation22_spill] sm:$0xff]  ;;  %6889 = vst [vmem:[#allocation36_spill] sm:$0xff] %v5465_v48  ;;  %6890 = vst [vmem:[#allocation37_spill] sm:$0xff] %v5468_v49  ;;  %v5474_v51 = vld [vmem:[#allocation8 + $0x64] ss:$16 sps:$4 sm:$0xff]  }
 0x3a5   :  { %v4165_v52 = vpop.eup %4164  ;;  %6892 = vst [vmem:[#allocation15_spill] sm:$0xff] %v5474_v51 }
 0x3a6   :  { %v1739_v53 = vmul.f32 %v4165_v52, %v4163_v50  ;;  %v5471_v50 = vld [vmem:[#allocation8 + $0x88] ss:$16 sps:$4 sm:$0xff]   ;;  %v5477_v52 = vld [vmem:[#allocation8 + $0x6c] ss:$16 sps:$4 sm:$0xff]  }
 0x3a7   :  { %1842 = vmatpush1.bf16.msra.mxu0 %v6810_v43  ;;  %1883 = vmatpush1.bf16.msra.mxu1 %v6811_v34  ;;  %v6861_v43 = vld [vmem:[#allocation19_spill] sm:$0xff]  ;;  %v6862_v34 = vld [vmem:[#allocation25_spill] sm:$0xff]  ;;  %6891 = vst [vmem:[#allocation38_spill] sm:$0xff] %v5471_v50  ;;  %6893 = vst [vmem:[#allocation44_spill] sm:$0xff] %v5477_v52 }
 0x3a8   :  { %1937 = vmatprep.subr.bf16.mxu0 %v6856_v55  ;;  %1978 = vmatprep.subr.bf16.mxu1 %v5211_v26  ;;  %v1740_v23 = vpack.c.bf16 %v1739_v53, %v1739_v53  ;;  %v5480_v53 = vld [vmem:[#allocation8 + $0x60] ss:$16 sps:$4 sm:$0xff]  }
 0x3a9   :  { %6894 = vst [vmem:[#allocation45_spill] sm:$0xff] %v5480_v53 }
 0x3aa   :  { %v1825_v56 = vrot.slane %v1740_v23, 2  ;;  %v5483_v23 = vld [vmem:[#allocation8 + $0x68] ss:$16 sps:$4 sm:$0xff]  }
 0x3ab   :  { %6895 = vst [vmem:[#allocation46_spill] sm:$0xff] %v5483_v23 }
 0x3ac   :  { %1860 = vmatmul.mubr.bf16.vlgmr.msra.gmra.mxu0 %v1825_v56  ;;  %1901 = vmatmul.mubr.bf16.vlgmr.msra.gmra.mxu1 %v1825_v56 }
 0x3ad   :  { %1938 = vmatpush1.bf16.msra.mxu0 %v6857_v57  ;;  %1979 = vmatpush1.bf16.msra.mxu1 %v6858_v58 }
 0x3ae   :  { %1939 = vmatprep.subr.bf16.mxu0 %v6859_v59  ;;  %1980 = vmatprep.subr.bf16.mxu1 %v6860_v32 }
 0x3af   :  { %1969 = vmatprep.mubr.bf16.mxu0 %v6751_v21  ;;  %2010 = vmatprep.mubr.bf16.mxu1 %v6751_v21 }
 0x3b1   :  { %1940 = vmatpush1.bf16.msra.mxu0 %v6861_v43  ;;  %1981 = vmatpush1.bf16.msra.mxu1 %v6862_v34 }
 0x3b2   :  { %1941 = vmatprep.subr.bf16.mxu0 %v6863_v60  ;;  %1982 = vmatprep.subr.bf16.mxu1 %v6864_v61 }
 0x3b5   :  { %1942 = vmatpush1.bf16.msra.mxu0 %v6865_v25  ;;  %1983 = vmatpush1.bf16.msra.mxu1 %v6866_v39 }
 0x3b6   :  { %1943 = vmatprep.subr.bf16.mxu0 %v6867_v14  ;;  %1984 = vmatprep.subr.bf16.mxu1 %v6868_v62 }
 0x3b9   :  { %1944 = vmatpush1.bf16.msra.mxu0 %v6869_v63  ;;  %1985 = vmatpush1.bf16.msra.mxu1 %v6870_v1 }
 0x3ba   :  { %1945 = vmatprep.subr.bf16.mxu0 %v6871_v2  ;;  %1986 = vmatprep.subr.bf16.mxu1 %v6872_v3 }
 0x3bd   :  { %1946 = vmatpush1.bf16.msra.mxu0 %v6873_v4  ;;  %1987 = vmatpush1.bf16.msra.mxu1 %v6874_v5 }
 0x3be   :  { %1947 = vmatprep.subr.bf16.mxu0 %v5270_v24  ;;  %1988 = vmatprep.subr.bf16.mxu1 %v5273_v30 }
 0x3c1   :  { %1948 = vmatpush1.bf16.msra.mxu0 %v5276_v38  ;;  %1989 = vmatpush1.bf16.msra.mxu1 %v5279_v40 }
 0x3c2   :  { %1949 = vmatprep.subr.bf16.mxu0 %v5282_v18  ;;  %1990 = vmatprep.subr.bf16.mxu1 %v5285_v29 }
 0x3c5   :  { %1950 = vmatpush1.bf16.msra.mxu0 %v5406_v22  ;;  %1991 = vmatpush1.bf16.msra.mxu1 %v5409_v7 }
 0x3c6   :  { %1951 = vmatprep.subr.bf16.mxu0 %v5412_v45  ;;  %1992 = vmatprep.subr.bf16.mxu1 %v5415_v41 }
 0x3c9   :  { %1952 = vmatpush1.bf16.msra.mxu0 %v5418_v6  ;;  %1993 = vmatpush1.bf16.msra.mxu1 %v5421_v44 }
 0x3ca   :  { %2064 = vmatprep.subr.bf16.mxu0 %v5424_v9  ;;  %2105 = vmatprep.subr.bf16.mxu1 %v5427_v8 }
 0x3cc   :  { %1970 = vmatmul.mubr.bf16.vlgmr.msra.gmra.mxu0 %v1825_v56  ;;  %2011 = vmatmul.mubr.bf16.vlgmr.msra.gmra.mxu1 %v1825_v56  ;;  %v5486_v56 = vld [vmem:[#allocation8 + $0x44] ss:$16 sps:$4 sm:$0xff]  }
 0x3cd   :  { %2065 = vmatpush1.bf16.msra.mxu0 %v5430_v10  ;;  %2106 = vmatpush1.bf16.msra.mxu1 %v5433_v11  ;;  %6896 = vst [vmem:[#allocation48_spill] sm:$0xff] %v5486_v56 }
 0x3ce   :  { %2066 = vmatprep.subr.bf16.mxu0 %v5436_v36  ;;  %2107 = vmatprep.subr.bf16.mxu1 %v5439_v27 }
 0x3cf   :  { %2096 = vmatprep.mubr.bf16.mxu0 %v6751_v21  ;;  %2137 = vmatprep.mubr.bf16.mxu1 %v6751_v21 }
 0x3d1   :  { %2067 = vmatpush1.bf16.msra.mxu0 %v5444_v12  ;;  %2108 = vmatpush1.bf16.msra.mxu1 %v5447_v13 }
 0x3d2   :  { %2068 = vmatprep.subr.bf16.mxu0 %v5450_v28  ;;  %2109 = vmatprep.subr.bf16.mxu1 %v5453_v42 }
 0x3d5   :  { %2069 = vmatpush1.bf16.msra.mxu0 %v5456_v17  ;;  %2110 = vmatpush1.bf16.msra.mxu1 %v5459_v46 }
 0x3d6   :  { %2070 = vmatprep.subr.bf16.mxu0 %v5462_v47  ;;  %2111 = vmatprep.subr.bf16.mxu1 %v5465_v48 }
 0x3d9   :  { %2071 = vmatpush1.bf16.msra.mxu0 %v5468_v49  ;;  %2112 = vmatpush1.bf16.msra.mxu1 %v5471_v50  ;;  %v5489_v50 = vld [vmem:[#allocation8 + $0x4c] ss:$16 sps:$4 sm:$0xff]  }
 0x3da   :  { %2072 = vmatprep.subr.bf16.mxu0 %v5474_v51  ;;  %2113 = vmatprep.subr.bf16.mxu1 %v5477_v52  ;;  %6897 = vst [vmem:[#allocation51_spill] sm:$0xff] %v5489_v50  ;;  %v5492_v51 = vld [vmem:[#allocation8 + $0x40] ss:$16 sps:$4 sm:$0xff]   ;;  %v5495_v52 = vld [vmem:[#allocation8 + $0x48] ss:$16 sps:$4 sm:$0xff]  }
 0x3db   :  { %6898 = vst [vmem:[#allocation52_spill] sm:$0xff] %v5492_v51  ;;  %6899 = vst [vmem:[#allocation53_spill] sm:$0xff] %v5495_v52 }
 0x3dd   :  { %2073 = vmatpush1.bf16.msra.mxu0 %v5480_v53  ;;  %2114 = vmatpush1.bf16.msra.mxu1 %v5483_v23  ;;  %v5498_v53 = vld [vmem:[#allocation8 + $0x24] ss:$16 sps:$4 sm:$0xff]   ;;  %v5501_v23 = vld [vmem:[#allocation8 + $0x2c] ss:$16 sps:$4 sm:$0xff]  }
 0x3de   :  { %2074 = vmatprep.subr.bf16.mxu0 %v5486_v56  ;;  %2115 = vmatprep.subr.bf16.mxu1 %v5489_v50  ;;  %6900 = vst [vmem:[#allocation54_spill] sm:$0xff] %v5498_v53  ;;  %6901 = vst [vmem:[#allocation55_spill] sm:$0xff] %v5501_v23  ;;  %v5504_v56 = vld [vmem:[#allocation8 + $0x20] ss:$16 sps:$4 sm:$0xff]   ;;  %v5507_v50 = vld [vmem:[#allocation8 + $0x28] ss:$16 sps:$4 sm:$0xff]  }
 0x3df   :  { %6902 = vst [vmem:[#allocation56_spill] sm:$0xff] %v5504_v56  ;;  %6903 = vst [vmem:[#allocation57_spill] sm:$0xff] %v5507_v50 }
 0x3e1   :  { %2075 = vmatpush1.bf16.msra.mxu0 %v5492_v51  ;;  %2116 = vmatpush1.bf16.msra.mxu1 %v5495_v52  ;;  %v5510_v51 = vld [vmem:[#allocation8 + $0x4] ss:$16 sps:$4 sm:$0xff]   ;;  %v5513_v52 = vld [vmem:[#allocation8 + $0xc] ss:$16 sps:$4 sm:$0xff]  }
 0x3e2   :  { %2076 = vmatprep.subr.bf16.mxu0 %v5498_v53  ;;  %2117 = vmatprep.subr.bf16.mxu1 %v5501_v23  ;;  %6904 = vst [vmem:[#allocation58_spill] sm:$0xff] %v5510_v51  ;;  %6905 = vst [vmem:[#allocation59_spill] sm:$0xff] %v5513_v52  ;;  %v5516_v53 = vld [vmem:[#allocation8] ss:$16 sps:$4 sm:$0xff]   ;;  %v5519_v23 = vld [vmem:[#allocation8 + $0x8] ss:$16 sps:$4 sm:$0xff]  }
 0x3e3   :  { %6906 = vst [vmem:[#allocation60_spill] sm:$0xff] %v5516_v53  ;;  %6907 = vst [vmem:[#allocation62_spill] sm:$0xff] %v5519_v23 }
 0x3e5   :  { %2077 = vmatpush1.bf16.msra.mxu0 %v5504_v56  ;;  %2118 = vmatpush1.bf16.msra.mxu1 %v5507_v50  ;;  %v5522_v56 = vld [vmem:[#allocation7 + $0xe4] ss:$16 sps:$4 sm:$0xff]   ;;  %v5525_v50 = vld [vmem:[#allocation7 + $0xec] ss:$16 sps:$4 sm:$0xff]  }
 0x3e6   :  { %2078 = vmatprep.subr.bf16.mxu0 %v5510_v51  ;;  %2119 = vmatprep.subr.bf16.mxu1 %v5513_v52  ;;  %6908 = vst [vmem:[#allocation63_spill] sm:$0xff] %v5522_v56  ;;  %6909 = vst [vmem:[#allocation64_spill] sm:$0xff] %v5525_v50 }
 0x3e9   :  { %2079 = vmatpush1.bf16.msra.mxu0 %v5516_v53  ;;  %2120 = vmatpush1.bf16.msra.mxu1 %v5519_v23 }
 0x3ea   :  { %2149 = vmatprep.subr.bf16.mxu0 %v5522_v56  ;;  %2190 = vmatprep.subr.bf16.mxu1 %v5525_v50 }
 0x44a   :  { %v1776_v51 = vpop.f32.mrf.mxu0  ;;  %v1817_v49 = vpop.f32.mrf.mxu1 }
 0x44c   :  { %v1778_v48 = vpop.f32.mrf.mxu0  ;;  %v1819_v52 = vpop.f32.mrf.mxu1 }
 0x44e   :  { %v1780_v47 = vpop.f32.mrf.mxu0  ;;  %v1821_v46 = vpop.f32.mrf.mxu1 }
 0x450   :  { %v1781_v17 = vpop.f32.mrf.mxu0  ;;  %v1822_v53 = vpop.f32.mrf.mxu1 }
 0x46c   :  { %v1861_v42 = vpop.f32.mrf.mxu0  ;;  %v1902_v28 = vpop.f32.mrf.mxu1 }
 0x46d   :  { %v1862_v13 = vadd.f32 %v1861_v42, %v1776_v51  ;;  %v1903_v17 = vadd.f32 %v1902_v28, %v1817_v49 }
 0x46e   :  { %v1863_v23 = vpop.f32.mrf.mxu0  ;;  %v1904_v12 = vpop.f32.mrf.mxu1 }
 0x46f   :  { %v1909_v27 = vadd.f32 %v1862_v13, %v5147_v35  ;;  %v1864_v56 = vadd.f32 %v1863_v23, %v1778_v48  ;;  %v1911_v46 = vadd.f32 %v1903_v17, %v5157_v37  ;;  %v1905_v53 = vadd.f32 %v1904_v12, %v1819_v52 }
 0x470   :  { %v1865_v36 = vpop.f32.mrf.mxu0  ;;  %v1906_v11 = vpop.f32.mrf.mxu1 }
 0x471   :  { %v3805_v10 = vmul.f32 -1.442695, %v1909_v27  ;;  %v1910_v50 = vadd.f32 %v1864_v56, %v5151_v33  ;;  %v3807_v42 = vmul.f32 -1.442695, %v1911_v46  ;;  %v1912_v44 = vadd.f32 %v1905_v53, %v6837_v16 }
 0x472   :  { %v1866_v8 = vpop.f32.mrf.mxu0  ;;  %v1907_v9 = vpop.f32.mrf.mxu1 }
 0x473   :  { %4166 = vpow2.f32 %v3805_v10  ;;  %v3806_v47 = vmul.f32 -1.442695, %v1910_v50 }
 0x475   :  { %4168 = vpow2.f32 %v3806_v47 }
 0x476   :  { %4170 = vpow2.f32 %v3807_v42 }
 0x480   :  { %v4167_v51 = vpop.eup %4166 }
 0x481   :  { %v1922_v13 = vadd.f32 1.0, %v4167_v51 }
 0x482   :  { %v4169_v48 = vpop.eup %4168 }
 0x483   :  { %4172 = vrcp.f32 %v1922_v13  ;;  %v1923_v11 = vadd.f32 1.0, %v4169_v48  ;;  %v4171_v28 = vpop.eup %4170 }
 0x484   :  { %4174 = vtanh.f32 %v1912_v44  ;;  %v1924_v53 = vadd.f32 1.0, %v4171_v28 }
 0x485   :  { %4176 = vrcp.f32 %v1923_v11 }
 0x48c   :  { %v1971_v8 = vpop.f32.mrf.mxu0  ;;  %v2012_v9 = vpop.f32.mrf.mxu1 }
 0x48d   :  { %v2023_v10 = vrot.slane %v1971_v8, 2 }
 0x48e   :  { %v1973_v36 = vpop.f32.mrf.mxu0  ;;  %v2014_v27 = vpop.f32.mrf.mxu1 }
 0x48f   :  { %v2031_v49 = vadd.f32 %v2023_v10, %v5059_v15  ;;  %v2024_v12 = vrot.slane %v1973_v36, 2  ;;  %v2025_v15 = vrot.slane %v2012_v9, 2  ;;  %v2026_v10 = vrot.slane %v2014_v27, 2  ;;  %v5549_v27 = vld [vmem:[#allocation7 + $0xcc] ss:$16 sps:$4 sm:$0xff]  }
 0x490   :  { %v4173_v50 = vpop.eup %4172  ;;  %v1975_v52 = vpop.f32.mrf.mxu0 }
 0x491   :  { %v2016_v23 = vpop.f32.mrf.mxu1  ;;  %v4175_v56 = vpop.eup %4174  ;;  %v3808_v47 = vmul.f32 -1.442695, %v2031_v49  ;;  %v2032_v17 = vadd.f32 %v2024_v12, %v5061_v31  ;;  %v2033_v8 = vadd.f32 %v2025_v15, %v5065_v0  ;;  %v2034_v28 = vadd.f32 %v2026_v10, %v5068_v20  ;;  %v5543_v0 = vld [vmem:[#allocation7 + $0xe8] ss:$16 sps:$4 sm:$0xff]   ;;  %v5546_v20 = vld [vmem:[#allocation7 + $0xc4] ss:$16 sps:$4 sm:$0xff]  }
 0x492   :  { %v4177_v46 = vpop.eup %4176  ;;  %v1976_v44 = vpop.f32.mrf.mxu0  ;;  %v1933_v13 = vmul.f32 %v4175_v56, %v4173_v50  ;;  %v5540_v56 = vld [vmem:[#allocation7 + $0xe0] ss:$16 sps:$4 sm:$0xff]   ;;  %v5570_v10 = vld [vmem:[#allocation7 + $0xa8] ss:$16 sps:$4 sm:$0xff]  }
 0x493   :  { %v2017_v42 = vpop.f32.mrf.mxu1  ;;  %v1932_v51 = vmul.f32 %v4177_v46, %v5337_v54  ;;  %4178 = vpow2.f32 %v3808_v47  ;;  %v3809_v48 = vmul.f32 -1.442695, %v2032_v17  ;;  %v3810_v31 = vmul.f32 -1.442695, %v2033_v8  ;;  %v5554_v47 = vld [vmem:[#allocation7 + $0xc0] ss:$16 sps:$4 sm:$0xff]  }
 0x494   :  { %v5557_v17 = vld [vmem:[#allocation7 + $0xc8] ss:$16 sps:$4 sm:$0xff]   ;;  %v5563_v44 = vld [vmem:[#allocation7 + $0xac] ss:$16 sps:$4 sm:$0xff]   ;;  %v5567_v8 = vld [vmem:[#allocation7 + $0xa0] ss:$16 sps:$4 sm:$0xff]  }
 0x495   :  { %v5535_v11 = vadd.f32 %v1933_v13, %v1932_v51  ;;  %4180 = vpow2.f32 %v3809_v48  ;;  %v2055_v13 = vrot.slane %v5357_v19, 6 }
 0x496   :  { %4182 = vrcp.f32 %v1924_v53  ;;  %v5560_v53 = vld [vmem:[#allocation7 + $0xa4] ss:$16 sps:$4 sm:$0xff]  }
 0x497   :  { %4184 = vtanh.f32 %v5535_v11 }
 0x498   :  { %4186 = vpow2.f32 %v3810_v31 }
 0x4a0   :  { %v4179_v36 = vpop.eup %4178 }
 0x4a1   :  { %v2044_v49 = vadd.f32 1.0, %v4179_v36 }
 0x4a2   :  { %v4181_v12 = vpop.eup %4180 }
 0x4a3   :  { %v4183_v54 = vpop.eup %4182  ;;  %4188 = vrcp.f32 %v2044_v49  ;;  %v2045_v50 = vadd.f32 1.0, %v4181_v12  ;;  %v5576_v49 = vld [vmem:[#allocation7 + $0x8c] ss:$16 sps:$4 sm:$0xff]   ;;  %v5581_v12 = vld [vmem:[#allocation7 + $0x80] ss:$16 sps:$4 sm:$0xff]  }
 0x4a4   :  { %v4185_v52 = vpop.eup %4184  ;;  %4190 = vtanh.f32 %v2034_v28  ;;  %v5573_v28 = vld [vmem:[#allocation7 + $0x84] ss:$16 sps:$4 sm:$0xff]  }
 0x4a5   :  { %4192 = vrcp.f32 %v2045_v50  ;;  %v1936_v23 = vmul.f32 %v4185_v52, %v4183_v54  ;;  %v4187_v46 = vpop.eup %4186  ;;  %v5584_v54 = vld [vmem:[#allocation7 + $0x88] ss:$16 sps:$4 sm:$0xff]   ;;  %v5588_v50 = vld [vmem:[#allocation7 + $0x64] ss:$16 sps:$4 sm:$0xff]   ;;  %v5591_v52 = vld [vmem:[#allocation7 + $0x6c] ss:$16 sps:$4 sm:$0xff]  }
 0x4a6   :  { %v2046_v15 = vadd.f32 1.0, %v4187_v46  ;;  %v5600_v46 = vld [vmem:[#allocation7 + $0x44] ss:$16 sps:$4 sm:$0xff]  }
 0x4a7   :  { %v2063_v9 = vpack.c.bf16 %v1936_v23, %v1936_v23  ;;  %v5594_v23 = vld [vmem:[#allocation7 + $0x60] ss:$16 sps:$4 sm:$0xff]   ;;  %6910 = vst [vmem:[#allocation65_spill] sm:$0xff] %v5600_v46 }
 0x4a8   :  { %4194 = vrcp.f32 %v2046_v15  ;;  %v5615_v15 = vld [vmem:[#allocation7 + $0x2c] ss:$16 sps:$4 sm:$0xff]  }
 0x4a9   :  { %2097 = vmatmul.mubr.bf16.vlgmr.msra.gmra.mxu0 %v2063_v9  ;;  %2138 = vmatmul.mubr.bf16.vlgmr.msra.gmra.mxu1 %v2063_v9  ;;  %v5597_v9 = vld [vmem:[#allocation7 + $0x68] ss:$16 sps:$4 sm:$0xff]   ;;  %6915 = vst [vmem:[#allocation22_spill] sm:$0xff] %v5615_v15 }
 0x4aa   :  { %2150 = vmatpush1.bf16.msra.mxu0 %v5540_v56  ;;  %2191 = vmatpush1.bf16.msra.mxu1 %v5543_v0 }
 0x4ab   :  { %2151 = vmatprep.subr.bf16.mxu0 %v5546_v20  ;;  %2192 = vmatprep.subr.bf16.mxu1 %v5549_v27 }
 0x4ac   :  { %2181 = vmatprep.mubr.bf16.mxu0 %v6751_v21  ;;  %2222 = vmatprep.mubr.bf16.mxu1 %v6751_v21 }
 0x4ae   :  { %2152 = vmatpush1.bf16.msra.mxu0 %v5554_v47  ;;  %2193 = vmatpush1.bf16.msra.mxu1 %v5557_v17 }
 0x4af   :  { %2153 = vmatprep.subr.bf16.mxu0 %v5560_v53  ;;  %2194 = vmatprep.subr.bf16.mxu1 %v5563_v44 }
 0x4b0   :  { %v4189_v42 = vpop.eup %4188 }
 0x4b1   :  { %v4191_v51 = vpop.eup %4190 }
 0x4b2   :  { %v4193_v48 = vpop.eup %4192  ;;  %2154 = vmatpush1.bf16.msra.mxu0 %v5567_v8  ;;  %2195 = vmatpush1.bf16.msra.mxu1 %v5570_v10  ;;  %v2058_v36 = vmul.f32 %v4191_v51, %v4189_v42  ;;  %v5603_v42 = vld [vmem:[#allocation7 + $0x4c] ss:$16 sps:$4 sm:$0xff]   ;;  %v5606_v51 = vld [vmem:[#allocation7 + $0x40] ss:$16 sps:$4 sm:$0xff]  }
 0x4b3   :  { %v2057_v31 = vmul.f32 %v4193_v48, %v2055_v13  ;;  %2155 = vmatprep.subr.bf16.mxu0 %v5573_v28  ;;  %2196 = vmatprep.subr.bf16.mxu1 %v5576_v49  ;;  %6911 = vst [vmem:[#allocation18_spill] sm:$0xff] %v5603_v42  ;;  %6912 = vst [vmem:[#allocation16_spill] sm:$0xff] %v5606_v51  ;;  %v5609_v13 = vld [vmem:[#allocation7 + $0x48] ss:$16 sps:$4 sm:$0xff]   ;;  %v5612_v48 = vld [vmem:[#allocation7 + $0x24] ss:$16 sps:$4 sm:$0xff]  }
 0x4b4   :  { %6913 = vst [vmem:[#allocation21_spill] sm:$0xff] %v5609_v13  ;;  %6914 = vst [vmem:[#allocation17_spill] sm:$0xff] %v5612_v48 }
 0x4b5   :  { %v5579_v19 = vadd.f32 %v2058_v36, %v2057_v31  ;;  %v5618_v31 = vld [vmem:[#allocation7 + $0x20] ss:$16 sps:$4 sm:$0xff]   ;;  %v5621_v36 = vld [vmem:[#allocation7 + $0x28] ss:$16 sps:$4 sm:$0xff]  }
 0x4b6   :  { %2156 = vmatpush1.bf16.msra.mxu0 %v5581_v12  ;;  %2197 = vmatpush1.bf16.msra.mxu1 %v5584_v54  ;;  %6916 = vst [vmem:[#allocation19_spill] sm:$0xff] %v5618_v31  ;;  %6917 = vst [vmem:[#allocation25_spill] sm:$0xff] %v5621_v36 }
 0x4b7   :  { %4196 = vtanh.f32 %v5579_v19  ;;  %2157 = vmatprep.subr.bf16.mxu0 %v5588_v50  ;;  %2198 = vmatprep.subr.bf16.mxu1 %v5591_v52 }
 0x4ba   :  { %2158 = vmatpush1.bf16.msra.mxu0 %v5594_v23  ;;  %2199 = vmatpush1.bf16.msra.mxu1 %v5597_v9 }
 0x4bb   :  { %2159 = vmatprep.subr.bf16.mxu0 %v5600_v46  ;;  %2200 = vmatprep.subr.bf16.mxu1 %v5603_v42  ;;  %v5624_v42 = vld [vmem:[#allocation7 + $0x4] ss:$16 sps:$4 sm:$0xff]  }
 0x4bc   :  { %6918 = vst [vmem:[#allocation20_spill] sm:$0xff] %v5624_v42 }
 0x4be   :  { %2160 = vmatpush1.bf16.msra.mxu0 %v5606_v51  ;;  %2201 = vmatpush1.bf16.msra.mxu1 %v5609_v13  ;;  %v4195_v51 = vpop.eup %4194  ;;  %v5627_v13 = vld [vmem:[#allocation7 + $0xc] ss:$16 sps:$4 sm:$0xff]  }
 0x4bf   :  { %2161 = vmatprep.subr.bf16.mxu0 %v5612_v48  ;;  %2202 = vmatprep.subr.bf16.mxu1 %v5615_v15  ;;  %v5630_v15 = vld [vmem:[#allocation7] ss:$16 sps:$4 sm:$0xff]  }
 0x4c2   :  { %2162 = vmatpush1.bf16.msra.mxu0 %v5618_v31  ;;  %2203 = vmatpush1.bf16.msra.mxu1 %v5621_v36  ;;  %v5633_v31 = vld [vmem:[#allocation7 + $0x8] ss:$16 sps:$4 sm:$0xff]  }
 0x4c3   :  { %2163 = vmatprep.subr.bf16.mxu0 %v5624_v42  ;;  %2204 = vmatprep.subr.bf16.mxu1 %v5627_v13 }
 0x4c4   :  { %v4197_v48 = vpop.eup %4196 }
 0x4c5   :  { %v2061_v46 = vmul.f32 %v4197_v48, %v4195_v51  ;;  %v6947_v51 = vld [vmem:[#allocation57_spill] sm:$0xff]  ;;  %v6948_v48 = vld [vmem:[#allocation58_spill] sm:$0xff] }
 0x4c6   :  { %2164 = vmatpush1.bf16.msra.mxu0 %v5630_v15  ;;  %2205 = vmatpush1.bf16.msra.mxu1 %v5633_v31 }
 0x4c7   :  { %2259 = vmatprep.subr.bf16.mxu0 %v6856_v55  ;;  %2300 = vmatprep.subr.bf16.mxu1 %v5211_v26  ;;  %v2062_v36 = vpack.c.bf16 %v2061_v46, %v2061_v46  ;;  %v6919_v26 = vld [vmem:[#allocation40_spill] sm:$0xff]  ;;  %v6926_v55 = vld [vmem:[#allocation61_spill] sm:$0xff]  ;;  %v6945_v46 = vld [vmem:[#allocation55_spill] sm:$0xff] }
 0x4c9   :  { %v2147_v42 = vrot.slane %v2062_v36, 3  ;;  %v6949_v36 = vld [vmem:[#allocation59_spill] sm:$0xff] }
 0x4cb   :  { %2182 = vmatmul.mubr.bf16.vlgmr.msra.gmra.mxu0 %v2147_v42  ;;  %2223 = vmatmul.mubr.bf16.vlgmr.msra.gmra.mxu1 %v2147_v42 }
 0x4cc   :  { %2260 = vmatpush1.bf16.msra.mxu0 %v6857_v57  ;;  %2301 = vmatpush1.bf16.msra.mxu1 %v6858_v58  ;;  %v6927_v57 = vld [vmem:[#allocation66_spill] sm:$0xff]  ;;  %v6928_v58 = vld [vmem:[#allocation67_spill] sm:$0xff] }
 0x4cd   :  { %2261 = vmatprep.subr.bf16.mxu0 %v6859_v59  ;;  %2302 = vmatprep.subr.bf16.mxu1 %v6860_v32  ;;  %v6929_v59 = vld [vmem:[#allocation68_spill] sm:$0xff]  ;;  %v6930_v32 = vld [vmem:[#allocation31_spill] sm:$0xff] }
 0x4ce   :  { %2291 = vmatprep.mubr.bf16.mxu0 %v6751_v21  ;;  %2332 = vmatprep.mubr.bf16.mxu1 %v6751_v21 }
 0x4d0   :  { %2262 = vmatpush1.bf16.msra.mxu0 %v6861_v43  ;;  %2303 = vmatpush1.bf16.msra.mxu1 %v6862_v34  ;;  %v6931_v43 = vld [vmem:[#allocation35_spill] sm:$0xff]  ;;  %v6932_v34 = vld [vmem:[#allocation32_spill] sm:$0xff] }
 0x4d1   :  { %2263 = vmatprep.subr.bf16.mxu0 %v6863_v60  ;;  %2304 = vmatprep.subr.bf16.mxu1 %v6864_v61  ;;  %v6933_v60 = vld [vmem:[#allocation36_spill] sm:$0xff]  ;;  %v6934_v61 = vld [vmem:[#allocation37_spill] sm:$0xff] }
 0x4d4   :  { %2264 = vmatpush1.bf16.msra.mxu0 %v6865_v25  ;;  %2305 = vmatpush1.bf16.msra.mxu1 %v6866_v39  ;;  %v6935_v25 = vld [vmem:[#allocation38_spill] sm:$0xff]  ;;  %v6936_v39 = vld [vmem:[#allocation15_spill] sm:$0xff] }
 0x4d5   :  { %2265 = vmatprep.subr.bf16.mxu0 %v6867_v14  ;;  %2306 = vmatprep.subr.bf16.mxu1 %v6868_v62  ;;  %v6937_v14 = vld [vmem:[#allocation44_spill] sm:$0xff]  ;;  %v6938_v62 = vld [vmem:[#allocation45_spill] sm:$0xff] }
 0x4d8   :  { %2266 = vmatpush1.bf16.msra.mxu0 %v6869_v63  ;;  %2307 = vmatpush1.bf16.msra.mxu1 %v6870_v1  ;;  %v6939_v63 = vld [vmem:[#allocation46_spill] sm:$0xff]  ;;  %v6940_v1 = vld [vmem:[#allocation48_spill] sm:$0xff] }
 0x4d9   :  { %2267 = vmatprep.subr.bf16.mxu0 %v6871_v2  ;;  %2308 = vmatprep.subr.bf16.mxu1 %v6872_v3  ;;  %v6941_v2 = vld [vmem:[#allocation51_spill] sm:$0xff]  ;;  %v6942_v3 = vld [vmem:[#allocation52_spill] sm:$0xff] }
 0x4dc   :  { %2268 = vmatpush1.bf16.msra.mxu0 %v6873_v4  ;;  %2309 = vmatpush1.bf16.msra.mxu1 %v6874_v5  ;;  %v6943_v4 = vld [vmem:[#allocation53_spill] sm:$0xff]  ;;  %v6944_v5 = vld [vmem:[#allocation54_spill] sm:$0xff] }
 0x4dd   :  { %2269 = vmatprep.subr.bf16.mxu0 %v5270_v24  ;;  %2310 = vmatprep.subr.bf16.mxu1 %v5273_v30  ;;  %v6920_v24 = vld [vmem:[#allocation41_spill] sm:$0xff]  ;;  %v6923_v30 = vld [vmem:[#allocation47_spill] sm:$0xff] }
 0x4e0   :  { %2270 = vmatpush1.bf16.msra.mxu0 %v5276_v38  ;;  %2311 = vmatpush1.bf16.msra.mxu1 %v5279_v40  ;;  %v6921_v38 = vld [vmem:[#allocation42_spill] sm:$0xff]  ;;  %v6922_v40 = vld [vmem:[#allocation43_spill] sm:$0xff] }
 0x4e1   :  { %2271 = vmatprep.subr.bf16.mxu0 %v5282_v18  ;;  %2312 = vmatprep.subr.bf16.mxu1 %v5285_v29  ;;  %v6924_v18 = vld [vmem:[#allocation49_spill] sm:$0xff]  ;;  %v6925_v29 = vld [vmem:[#allocation50_spill] sm:$0xff] }
 0x4e4   :  { %2272 = vmatpush1.bf16.msra.mxu0 %v5406_v22  ;;  %2313 = vmatpush1.bf16.msra.mxu1 %v5409_v7 }
 0x4e5   :  { %2273 = vmatprep.subr.bf16.mxu0 %v5412_v45  ;;  %2314 = vmatprep.subr.bf16.mxu1 %v5415_v41 }
 0x4e8   :  { %2274 = vmatpush1.bf16.msra.mxu0 %v5418_v6  ;;  %2315 = vmatpush1.bf16.msra.mxu1 %v6919_v26 }
 0x4e9   :  { %2374 = vmatprep.subr.bf16.mxu0 %v6920_v24  ;;  %2415 = vmatprep.subr.bf16.mxu1 %v6921_v38 }
 0x4eb   :  { %2292 = vmatmul.mubr.bf16.vlgmr.msra.gmra.mxu0 %v2147_v42  ;;  %2333 = vmatmul.mubr.bf16.vlgmr.msra.gmra.mxu1 %v2147_v42  ;;  %v6946_v42 = vld [vmem:[#allocation56_spill] sm:$0xff] }
 0x4ec   :  { %2375 = vmatpush1.bf16.msra.mxu0 %v6922_v40  ;;  %2416 = vmatpush1.bf16.msra.mxu1 %v6923_v30 }
 0x4ed   :  { %2376 = vmatprep.subr.bf16.mxu0 %v6924_v18  ;;  %2417 = vmatprep.subr.bf16.mxu1 %v6925_v29 }
 0x4ee   :  { %2406 = vmatprep.mubr.bf16.mxu0 %v6751_v21  ;;  %2447 = vmatprep.mubr.bf16.mxu1 %v6751_v21 }
 0x4f0   :  { %2377 = vmatpush1.bf16.msra.mxu0 %v6926_v55  ;;  %2418 = vmatpush1.bf16.msra.mxu1 %v6927_v57 }
 0x4f1   :  { %2378 = vmatprep.subr.bf16.mxu0 %v6928_v58  ;;  %2419 = vmatprep.subr.bf16.mxu1 %v6929_v59 }
 0x4f4   :  { %2379 = vmatpush1.bf16.msra.mxu0 %v6930_v32  ;;  %2420 = vmatpush1.bf16.msra.mxu1 %v6931_v43 }
 0x4f5   :  { %2380 = vmatprep.subr.bf16.mxu0 %v6932_v34  ;;  %2421 = vmatprep.subr.bf16.mxu1 %v6933_v60 }
 0x4f8   :  { %2381 = vmatpush1.bf16.msra.mxu0 %v6934_v61  ;;  %2422 = vmatpush1.bf16.msra.mxu1 %v6935_v25 }
 0x4f9   :  { %2382 = vmatprep.subr.bf16.mxu0 %v6936_v39  ;;  %2423 = vmatprep.subr.bf16.mxu1 %v6937_v14 }
 0x4fc   :  { %2383 = vmatpush1.bf16.msra.mxu0 %v6938_v62  ;;  %2424 = vmatpush1.bf16.msra.mxu1 %v6939_v63  ;;  %v6950_v63 = vld [vmem:[#allocation60_spill] sm:$0xff] }
 0x4fd   :  { %2384 = vmatprep.subr.bf16.mxu0 %v6940_v1  ;;  %2425 = vmatprep.subr.bf16.mxu1 %v6941_v2  ;;  %v6951_v1 = vld [vmem:[#allocation62_spill] sm:$0xff]  ;;  %v6952_v2 = vld [vmem:[#allocation63_spill] sm:$0xff] }
 0x500   :  { %2385 = vmatpush1.bf16.msra.mxu0 %v6942_v3  ;;  %2426 = vmatpush1.bf16.msra.mxu1 %v6943_v4  ;;  %v6953_v3 = vld [vmem:[#allocation64_spill] sm:$0xff] }
 0x501   :  { %2386 = vmatprep.subr.bf16.mxu0 %v6944_v5  ;;  %2427 = vmatprep.subr.bf16.mxu1 %v6945_v46 }
 0x504   :  { %2387 = vmatpush1.bf16.msra.mxu0 %v6946_v42  ;;  %2428 = vmatpush1.bf16.msra.mxu1 %v6947_v51 }
 0x505   :  { %2388 = vmatprep.subr.bf16.mxu0 %v6948_v48  ;;  %2429 = vmatprep.subr.bf16.mxu1 %v6949_v36 }
 0x508   :  { %2389 = vmatpush1.bf16.msra.mxu0 %v6950_v63  ;;  %2430 = vmatpush1.bf16.msra.mxu1 %v6951_v1 }
 0x509   :  { %2456 = vmatprep.subr.bf16.mxu0 %v6952_v2  ;;  %2497 = vmatprep.subr.bf16.mxu1 %v6953_v3 }
 0x569   :  { %v2098_v4 = vpop.f32.mrf.mxu0  ;;  %v2139_v5 = vpop.f32.mrf.mxu1 }
 0x56b   :  { %v2100_v62 = vpop.f32.mrf.mxu0  ;;  %v2141_v46 = vpop.f32.mrf.mxu1 }
 0x56d   :  { %v2102_v14 = vpop.f32.mrf.mxu0  ;;  %v2143_v42 = vpop.f32.mrf.mxu1 }
 0x56f   :  { %v2103_v39 = vpop.f32.mrf.mxu0  ;;  %v2144_v51 = vpop.f32.mrf.mxu1 }
 0x58b   :  { %v2183_v25 = vpop.f32.mrf.mxu0  ;;  %v2224_v48 = vpop.f32.mrf.mxu1 }
 0x58c   :  { %v2184_v61 = vadd.f32 %v2183_v25, %v2098_v4  ;;  %v2225_v39 = vadd.f32 %v2224_v48, %v2139_v5 }
 0x58d   :  { %v2185_v36 = vpop.f32.mrf.mxu0  ;;  %v2226_v60 = vpop.f32.mrf.mxu1 }
 0x58e   :  { %v2231_v63 = vadd.f32 %v2184_v61, %v5147_v35  ;;  %v2186_v1 = vadd.f32 %v2185_v36, %v2100_v62  ;;  %v2233_v42 = vadd.f32 %v2225_v39, %v5157_v37  ;;  %v2227_v51 = vadd.f32 %v2226_v60, %v2141_v46  ;;  %v6955_v60 = vld [vmem:[#allocation72_spill] sm:$0xff] }
 0x58f   :  { %v2187_v34 = vpop.f32.mrf.mxu0  ;;  %v2228_v2 = vpop.f32.mrf.mxu1 }
 0x590   :  { %v3811_v43 = vmul.f32 -1.442695, %v2231_v63  ;;  %v2232_v3 = vadd.f32 %v2186_v1, %v5151_v33  ;;  %v3813_v25 = vmul.f32 -1.442695, %v2233_v42  ;;  %v2234_v58 = vadd.f32 %v2227_v51, %v6837_v16 }
 0x591   :  { %v2188_v32 = vpop.f32.mrf.mxu0  ;;  %v2229_v59 = vpop.f32.mrf.mxu1 }
 0x592   :  { %4198 = vpow2.f32 %v3811_v43  ;;  %v3812_v14 = vmul.f32 -1.442695, %v2232_v3  ;;  %v6954_v43 = vld [vmem:[#allocation70_spill] sm:$0xff] }
 0x594   :  { %4200 = vpow2.f32 %v3812_v14 }
 0x595   :  { %4202 = vpow2.f32 %v3813_v25 }
 0x59f   :  { %v4199_v4 = vpop.eup %4198 }
 0x5a0   :  { %v2244_v61 = vadd.f32 1.0, %v4199_v4 }
 0x5a1   :  { %v4201_v62 = vpop.eup %4200 }
 0x5a2   :  { %4204 = vrcp.f32 %v2244_v61  ;;  %v2245_v34 = vadd.f32 1.0, %v4201_v62  ;;  %v4203_v3 = vpop.eup %4202 }
 0x5a3   :  { %4206 = vtanh.f32 %v2234_v58  ;;  %v2246_v25 = vadd.f32 1.0, %v4203_v3 }
 0x5a4   :  { %4208 = vrcp.f32 %v2245_v34 }
 0x5ab   :  { %v2293_v32 = vpop.f32.mrf.mxu0  ;;  %v2334_v59 = vpop.f32.mrf.mxu1 }
 0x5ac   :  { %v2341_v63 = vadd.f32 %v2293_v32, %v6954_v43  ;;  %v6956_v32 = vld [vmem:[#allocation71_spill] sm:$0xff] }
 0x5ad   :  { %v2295_v1 = vpop.f32.mrf.mxu0  ;;  %v2336_v2 = vpop.f32.mrf.mxu1 }
 0x5ae   :  { %v3814_v5 = vmul.f32 -1.442695, %v2341_v63  ;;  %v2342_v46 = vadd.f32 %v2295_v1, %v6955_v60  ;;  %v2343_v63 = vadd.f32 %v2334_v59, %v6956_v32 }
 0x5af   :  { %v4205_v48 = vpop.eup %4204  ;;  %v2297_v36 = vpop.f32.mrf.mxu0 }
 0x5b0   :  { %v2338_v14 = vpop.f32.mrf.mxu1  ;;  %v4207_v39 = vpop.eup %4206  ;;  %4210 = vpow2.f32 %v3814_v5  ;;  %v3815_v42 = vmul.f32 -1.442695, %v2342_v46  ;;  %v3816_v1 = vmul.f32 -1.442695, %v2343_v63  ;;  %v6959_v63 = vld [vmem:[#allocation18_spill] sm:$0xff] }
 0x5b1   :  { %v4209_v51 = vpop.eup %4208  ;;  %v2298_v58 = vpop.f32.mrf.mxu0  ;;  %v2255_v62 = vmul.f32 %v4207_v39, %v4205_v48  ;;  %v6957_v14 = vld [vmem:[#allocation73_spill] sm:$0xff] }
 0x5b2   :  { %v2339_v4 = vpop.f32.mrf.mxu1  ;;  %v2254_v61 = vmul.f32 %v4209_v51, %v5535_v11  ;;  %4212 = vpow2.f32 %v3815_v42  ;;  %v2344_v5 = vadd.f32 %v2336_v2, %v6957_v14  ;;  %v2365_v51 = vrot.slane %v5579_v19, 6  ;;  %v6958_v19 = vld [vmem:[#allocation65_spill] sm:$0xff] }
 0x5b3   :  { %4214 = vrcp.f32 %v2246_v25 }
 0x5b4   :  { %v5713_v34 = vadd.f32 %v2255_v62, %v2254_v61 }
 0x5b6   :  { %4216 = vtanh.f32 %v5713_v34 }
 0x5b7   :  { %4218 = vpow2.f32 %v3816_v1  ;;  %v6960_v1 = vld [vmem:[#allocation16_spill] sm:$0xff] }
 0x5bd   :  { %v4211_v36 = vpop.eup %4210 }
 0x5be   :  { %v2354_v46 = vadd.f32 1.0, %v4211_v36  ;;  %v6961_v36 = vld [vmem:[#allocation21_spill] sm:$0xff] }
 0x5bf   :  { %v4213_v60 = vpop.eup %4212 }
 0x5c0   :  { %4220 = vrcp.f32 %v2354_v46  ;;  %v2355_v3 = vadd.f32 1.0, %v4213_v60  ;;  %v4215_v11 = vpop.eup %4214  ;;  %v6963_v46 = vld [vmem:[#allocation22_spill] sm:$0xff] }
 0x5c1   :  { %4222 = vtanh.f32 %v2344_v5  ;;  %v6962_v5 = vld [vmem:[#allocation17_spill] sm:$0xff] }
 0x5c2   :  { %4224 = vrcp.f32 %v2355_v3 }
 0x5c3   :  { %v4217_v48 = vpop.eup %4216 }
 0x5c4   :  { %v2258_v39 = vmul.f32 %v4217_v48, %v4215_v11  ;;  %v4219_v59 = vpop.eup %4218  ;;  %v6964_v48 = vld [vmem:[#allocation19_spill] sm:$0xff] }
 0x5c5   :  { %v2356_v58 = vadd.f32 1.0, %v4219_v59 }
 0x5c6   :  { %v2373_v42 = vpack.c.bf16 %v2258_v39, %v2258_v39  ;;  %v6965_v39 = vld [vmem:[#allocation25_spill] sm:$0xff] }
 0x5c7   :  { %4226 = vrcp.f32 %v2356_v58  ;;  %v5767_v58 = vld [vmem:[#allocation5 + $0xe8] ss:$16 sps:$4 sm:$0xff]  }
 0x5c8   :  { %2407 = vmatmul.mubr.bf16.vlgmr.msra.gmra.mxu0 %v2373_v42  ;;  %2448 = vmatmul.mubr.bf16.vlgmr.msra.gmra.mxu1 %v2373_v42  ;;  %v6966_v42 = vld [vmem:[#allocation20_spill] sm:$0xff]  ;;  %6968 = vst [vmem:[#allocation23_spill] sm:$0xff] %v5767_v58 }
 0x5c9   :  { %2457 = vmatpush1.bf16.msra.mxu0 %v5540_v56  ;;  %2498 = vmatpush1.bf16.msra.mxu1 %v5543_v0 }
 0x5ca   :  { %2458 = vmatprep.subr.bf16.mxu0 %v5546_v20  ;;  %2499 = vmatprep.subr.bf16.mxu1 %v5549_v27 }
 0x5cb   :  { %2488 = vmatprep.mubr.bf16.mxu0 %v6751_v21  ;;  %2529 = vmatprep.mubr.bf16.mxu1 %v6751_v21 }
 0x5cd   :  { %v4221_v2 = vpop.eup %4220  ;;  %2459 = vmatpush1.bf16.msra.mxu0 %v5554_v47  ;;  %2500 = vmatpush1.bf16.msra.mxu1 %v5557_v17 }
 0x5ce   :  { %v4223_v60 = vpop.eup %4222  ;;  %2460 = vmatprep.subr.bf16.mxu0 %v5560_v53  ;;  %2501 = vmatprep.subr.bf16.mxu1 %v5563_v44 }
 0x5cf   :  { %v4225_v25 = vpop.eup %4224  ;;  %v2368_v61 = vmul.f32 %v4223_v60, %v4221_v2  ;;  %v5756_v60 = vld [vmem:[#allocation5 + $0xe4] ss:$16 sps:$4 sm:$0xff]  }
 0x5d0   :  { %v2367_v4 = vmul.f32 %v4225_v25, %v2365_v51  ;;  %v5759_v51 = vld [vmem:[#allocation5 + $0xec] ss:$16 sps:$4 sm:$0xff]   ;;  %v5764_v25 = vld [vmem:[#allocation5 + $0xe0] ss:$16 sps:$4 sm:$0xff]  }
 0x5d1   :  { %2461 = vmatpush1.bf16.msra.mxu0 %v5567_v8  ;;  %2502 = vmatpush1.bf16.msra.mxu1 %v5570_v10  ;;  %6967 = vst [vmem:[#allocation26_spill] sm:$0xff] %v5764_v25 }
 0x5d2   :  { %v5731_v62 = vadd.f32 %v2368_v61, %v2367_v4  ;;  %2462 = vmatprep.subr.bf16.mxu0 %v5573_v28  ;;  %2503 = vmatprep.subr.bf16.mxu1 %v5576_v49  ;;  %v5770_v4 = vld [vmem:[#allocation5 + $0xc4] ss:$16 sps:$4 sm:$0xff]   ;;  %v5773_v61 = vld [vmem:[#allocation5 + $0xcc] ss:$16 sps:$4 sm:$0xff]  }
 0x5d3   :  { %6969 = vst [vmem:[#allocation29_spill] sm:$0xff] %v5770_v4  ;;  %6970 = vst [vmem:[#allocation24_spill] sm:$0xff] %v5773_v61 }
 0x5d4   :  { %4228 = vtanh.f32 %v5731_v62  ;;  %v4227_v3 = vpop.eup %4226 }
 0x5d5   :  { %2463 = vmatpush1.bf16.msra.mxu0 %v5581_v12  ;;  %2504 = vmatpush1.bf16.msra.mxu1 %v5584_v54 }
 0x5d6   :  { %2464 = vmatprep.subr.bf16.mxu0 %v5588_v50  ;;  %2505 = vmatprep.subr.bf16.mxu1 %v5591_v52 }
 0x5d9   :  { %2465 = vmatpush1.bf16.msra.mxu0 %v5594_v23  ;;  %2506 = vmatpush1.bf16.msra.mxu1 %v5597_v9 }
 0x5da   :  { %2466 = vmatprep.subr.bf16.mxu0 %v6958_v19  ;;  %2507 = vmatprep.subr.bf16.mxu1 %v6959_v63 }
 0x5dd   :  { %2467 = vmatpush1.bf16.msra.mxu0 %v6960_v1  ;;  %2508 = vmatpush1.bf16.msra.mxu1 %v6961_v36 }
 0x5de   :  { %2468 = vmatprep.subr.bf16.mxu0 %v6962_v5  ;;  %2509 = vmatprep.subr.bf16.mxu1 %v6963_v46 }
 0x5e1   :  { %v4229_v11 = vpop.eup %4228  ;;  %2469 = vmatpush1.bf16.msra.mxu0 %v6964_v48  ;;  %2510 = vmatpush1.bf16.msra.mxu1 %v6965_v39 }
 0x5e2   :  { %2470 = vmatprep.subr.bf16.mxu0 %v6966_v42  ;;  %2511 = vmatprep.subr.bf16.mxu1 %v5627_v13  ;;  %v2371_v59 = vmul.f32 %v4229_v11, %v4227_v3  ;;  %v5778_v3 = vld [vmem:[#allocation5 + $0xc0] ss:$16 sps:$4 sm:$0xff]   ;;  %v5781_v11 = vld [vmem:[#allocation5 + $0xc8] ss:$16 sps:$4 sm:$0xff]  }
 0x5e3   :  { %6971 = vst [vmem:[#allocation30_spill] sm:$0xff] %v5778_v3  ;;  %6972 = vst [vmem:[#allocation27_spill] sm:$0xff] %v5781_v11 }
 0x5e4   :  { %v5754_v2 = vpack.c.bf16 %v2371_v59, %v2371_v59  ;;  %v5784_v59 = vld [vmem:[#allocation5 + $0xa4] ss:$16 sps:$4 sm:$0xff]  }
 0x5e5   :  { %2471 = vmatpush1.bf16.msra.mxu0 %v5630_v15  ;;  %2512 = vmatpush1.bf16.msra.mxu1 %v5633_v31  ;;  %6973 = vst [vmem:[#allocation33_spill] sm:$0xff] %v5784_v59 }
 0x5e6   :  { %2566 = vmatprep.subr.bf16.mxu0 %v5756_v60  ;;  %2607 = vmatprep.subr.bf16.mxu1 %v5759_v51 }
 0x5e8   :  { %2489 = vmatmul.mubr.bf16.vlgmr.msra.gmra.mxu0 %v5754_v2  ;;  %2530 = vmatmul.mubr.bf16.vlgmr.msra.gmra.mxu1 %v5754_v2 }
 0x5e9   :  { %2567 = vmatpush1.bf16.msra.mxu0 %v5764_v25  ;;  %2608 = vmatpush1.bf16.msra.mxu1 %v5767_v58  ;;  %v5793_v58 = vld [vmem:[#allocation5 + $0xa8] ss:$16 sps:$4 sm:$0xff]  }
 0x5ea   :  { %2568 = vmatprep.subr.bf16.mxu0 %v5770_v4  ;;  %2609 = vmatprep.subr.bf16.mxu1 %v5773_v61  ;;  %v5787_v4 = vld [vmem:[#allocation5 + $0xac] ss:$16 sps:$4 sm:$0xff]   ;;  %v5790_v61 = vld [vmem:[#allocation5 + $0xa0] ss:$16 sps:$4 sm:$0xff]   ;;  %6976 = vst [vmem:[#allocation69_spill] sm:$0xff] %v5793_v58 }
 0x5eb   :  { %2598 = vmatprep.mubr.bf16.mxu0 %v6751_v21  ;;  %2639 = vmatprep.mubr.bf16.mxu1 %v6751_v21  ;;  %6974 = vst [vmem:[#allocation28_spill] sm:$0xff] %v5787_v4  ;;  %6975 = vst [vmem:[#allocation34_spill] sm:$0xff] %v5790_v61 }
 0x5ed   :  { %2569 = vmatpush1.bf16.msra.mxu0 %v5778_v3  ;;  %2610 = vmatpush1.bf16.msra.mxu1 %v5781_v11  ;;  %v5796_v3 = vld [vmem:[#allocation5 + $0x84] ss:$16 sps:$4 sm:$0xff]   ;;  %v5799_v11 = vld [vmem:[#allocation5 + $0x8c] ss:$16 sps:$4 sm:$0xff]  }
 0x5ee   :  { %2570 = vmatprep.subr.bf16.mxu0 %v5784_v59  ;;  %2611 = vmatprep.subr.bf16.mxu1 %v5787_v4  ;;  %6977 = vst [vmem:[#allocation39_spill] sm:$0xff] %v5796_v3  ;;  %6978 = vst [vmem:[#allocation40_spill] sm:$0xff] %v5799_v11  ;;  %v5802_v59 = vld [vmem:[#allocation5 + $0x80] ss:$16 sps:$4 sm:$0xff]   ;;  %v5805_v4 = vld [vmem:[#allocation5 + $0x88] ss:$16 sps:$4 sm:$0xff]  }
 0x5ef   :  { %6979 = vst [vmem:[#allocation41_spill] sm:$0xff] %v5802_v59  ;;  %6980 = vst [vmem:[#allocation42_spill] sm:$0xff] %v5805_v4 }
 0x5f1   :  { %2571 = vmatpush1.bf16.msra.mxu0 %v5790_v61  ;;  %2612 = vmatpush1.bf16.msra.mxu1 %v5793_v58  ;;  %v5808_v61 = vld [vmem:[#allocation5 + $0x64] ss:$16 sps:$4 sm:$0xff]   ;;  %v5811_v58 = vld [vmem:[#allocation5 + $0x6c] ss:$16 sps:$4 sm:$0xff]  }
 0x5f2   :  { %2572 = vmatprep.subr.bf16.mxu0 %v5796_v3  ;;  %2613 = vmatprep.subr.bf16.mxu1 %v5799_v11  ;;  %6981 = vst [vmem:[#allocation43_spill] sm:$0xff] %v5808_v61  ;;  %6982 = vst [vmem:[#allocation47_spill] sm:$0xff] %v5811_v58  ;;  %v5814_v3 = vld [vmem:[#allocation5 + $0x60] ss:$16 sps:$4 sm:$0xff]   ;;  %v5817_v11 = vld [vmem:[#allocation5 + $0x68] ss:$16 sps:$4 sm:$0xff]  }
 0x5f3   :  { %6983 = vst [vmem:[#allocation49_spill] sm:$0xff] %v5814_v3  ;;  %6984 = vst [vmem:[#allocation50_spill] sm:$0xff] %v5817_v11 }
 0x5f5   :  { %2573 = vmatpush1.bf16.msra.mxu0 %v5802_v59  ;;  %2614 = vmatpush1.bf16.msra.mxu1 %v5805_v4  ;;  %v5820_v59 = vld [vmem:[#allocation5 + $0x44] ss:$16 sps:$4 sm:$0xff]   ;;  %v5823_v4 = vld [vmem:[#allocation5 + $0x4c] ss:$16 sps:$4 sm:$0xff]  }
 0x5f6   :  { %2574 = vmatprep.subr.bf16.mxu0 %v5808_v61  ;;  %2615 = vmatprep.subr.bf16.mxu1 %v5811_v58  ;;  %6985 = vst [vmem:[#allocation61_spill] sm:$0xff] %v5820_v59  ;;  %6986 = vst [vmem:[#allocation66_spill] sm:$0xff] %v5823_v4  ;;  %v5826_v61 = vld [vmem:[#allocation5 + $0x40] ss:$16 sps:$4 sm:$0xff]   ;;  %v5829_v58 = vld [vmem:[#allocation5 + $0x48] ss:$16 sps:$4 sm:$0xff]  }
 0x5f7   :  { %6987 = vst [vmem:[#allocation70_spill] sm:$0xff] %v5826_v61  ;;  %6988 = vst [vmem:[#allocation71_spill] sm:$0xff] %v5829_v58 }
 0x5f9   :  { %2575 = vmatpush1.bf16.msra.mxu0 %v5814_v3  ;;  %2616 = vmatpush1.bf16.msra.mxu1 %v5817_v11  ;;  %v5832_v3 = vld [vmem:[#allocation5 + $0x24] ss:$16 sps:$4 sm:$0xff]   ;;  %v5835_v11 = vld [vmem:[#allocation5 + $0x2c] ss:$16 sps:$4 sm:$0xff]  }
 0x5fa   :  { %2576 = vmatprep.subr.bf16.mxu0 %v5820_v59  ;;  %2617 = vmatprep.subr.bf16.mxu1 %v5823_v4  ;;  %6989 = vst [vmem:[#allocation73_spill] sm:$0xff] %v5832_v3  ;;  %6990 = vst [vmem:[#allocation65_spill] sm:$0xff] %v5835_v11 }
 0x5fd   :  { %2577 = vmatpush1.bf16.msra.mxu0 %v5826_v61  ;;  %2618 = vmatpush1.bf16.msra.mxu1 %v5829_v58 }
 0x5fe   :  { %2578 = vmatprep.subr.bf16.mxu0 %v5832_v3  ;;  %2619 = vmatprep.subr.bf16.mxu1 %v5835_v11 }
 0x601   :  { %2579 = vmatpush1.bf16.msra.mxu0 %v5406_v22  ;;  %2620 = vmatpush1.bf16.msra.mxu1 %v5409_v7  ;;  %v6991_v22 = vld [vmem:[#allocation67_spill] sm:$0xff]  ;;  %v6992_v7 = vld [vmem:[#allocation68_spill] sm:$0xff] }
 0x602   :  { %2580 = vmatprep.subr.bf16.mxu0 %v5412_v45  ;;  %2621 = vmatprep.subr.bf16.mxu1 %v5415_v41  ;;  %v6993_v45 = vld [vmem:[#allocation31_spill] sm:$0xff] }
 0x603   :  { %v6994_v41 = vld [vmem:[#allocation35_spill] sm:$0xff] }
 0x605   :  { %2581 = vmatpush1.bf16.msra.mxu0 %v5418_v6  ;;  %2622 = vmatpush1.bf16.msra.mxu1 %v6919_v26  ;;  %v6995_v6 = vld [vmem:[#allocation32_spill] sm:$0xff] }
 0x606   :  { %2693 = vmatprep.subr.bf16.mxu0 %v6920_v24  ;;  %2734 = vmatprep.subr.bf16.mxu1 %v6921_v38  ;;  %v6996_v26 = vld [vmem:[#allocation36_spill] sm:$0xff]  ;;  %v6997_v24 = vld [vmem:[#allocation37_spill] sm:$0xff]  ;;  %v6998_v38 = vld [vmem:[#allocation38_spill] sm:$0xff] }
 0x608   :  { %2599 = vmatmul.mubr.bf16.vlgmr.msra.gmra.mxu0 %v5754_v2  ;;  %2640 = vmatmul.mubr.bf16.vlgmr.msra.gmra.mxu1 %v5754_v2  ;;  %v7005_v2 = vld [vmem:[#allocation52_spill] sm:$0xff] }
 0x609   :  { %2694 = vmatpush1.bf16.msra.mxu0 %v6922_v40  ;;  %2735 = vmatpush1.bf16.msra.mxu1 %v6923_v30  ;;  %v6999_v40 = vld [vmem:[#allocation15_spill] sm:$0xff]  ;;  %v7000_v30 = vld [vmem:[#allocation44_spill] sm:$0xff] }
 0x60a   :  { %2695 = vmatprep.subr.bf16.mxu0 %v6924_v18  ;;  %2736 = vmatprep.subr.bf16.mxu1 %v6925_v29  ;;  %v7001_v18 = vld [vmem:[#allocation45_spill] sm:$0xff]  ;;  %v7002_v29 = vld [vmem:[#allocation46_spill] sm:$0xff] }
 0x60b   :  { %2725 = vmatprep.mubr.bf16.mxu0 %v6751_v21  ;;  %2766 = vmatprep.mubr.bf16.mxu1 %v6751_v21 }
 0x60d   :  { %2696 = vmatpush1.bf16.msra.mxu0 %v6926_v55  ;;  %2737 = vmatpush1.bf16.msra.mxu1 %v6927_v57  ;;  %v7003_v55 = vld [vmem:[#allocation48_spill] sm:$0xff]  ;;  %v7004_v57 = vld [vmem:[#allocation51_spill] sm:$0xff] }
 0x60e   :  { %2697 = vmatprep.subr.bf16.mxu0 %v6991_v22  ;;  %2738 = vmatprep.subr.bf16.mxu1 %v6992_v7  ;;  %v7006_v22 = vld [vmem:[#allocation53_spill] sm:$0xff]  ;;  %v7007_v7 = vld [vmem:[#allocation54_spill] sm:$0xff] }
 0x611   :  { %2698 = vmatpush1.bf16.msra.mxu0 %v6993_v45  ;;  %2739 = vmatpush1.bf16.msra.mxu1 %v6994_v41  ;;  %v7008_v45 = vld [vmem:[#allocation55_spill] sm:$0xff]  ;;  %v7009_v41 = vld [vmem:[#allocation56_spill] sm:$0xff] }
 0x612   :  { %2699 = vmatprep.subr.bf16.mxu0 %v6995_v6  ;;  %2740 = vmatprep.subr.bf16.mxu1 %v6996_v26  ;;  %v7010_v6 = vld [vmem:[#allocation57_spill] sm:$0xff]  ;;  %v7011_v26 = vld [vmem:[#allocation58_spill] sm:$0xff] }
 0x615   :  { %2700 = vmatpush1.bf16.msra.mxu0 %v6997_v24  ;;  %2741 = vmatpush1.bf16.msra.mxu1 %v6998_v38  ;;  %v7012_v24 = vld [vmem:[#allocation59_spill] sm:$0xff]  ;;  %v7013_v38 = vld [vmem:[#allocation60_spill] sm:$0xff] }
 0x616   :  { %2701 = vmatprep.subr.bf16.mxu0 %v6999_v40  ;;  %2742 = vmatprep.subr.bf16.mxu1 %v7000_v30  ;;  %v7014_v40 = vld [vmem:[#allocation62_spill] sm:$0xff]  ;;  %v7015_v30 = vld [vmem:[#allocation63_spill] sm:$0xff] }
 0x619   :  { %2702 = vmatpush1.bf16.msra.mxu0 %v7001_v18  ;;  %2743 = vmatpush1.bf16.msra.mxu1 %v7002_v29  ;;  %v7016_v18 = vld [vmem:[#allocation64_spill] sm:$0xff] }
 0x61a   :  { %2703 = vmatprep.subr.bf16.mxu0 %v7003_v55  ;;  %2744 = vmatprep.subr.bf16.mxu1 %v7004_v57 }
 0x61d   :  { %2704 = vmatpush1.bf16.msra.mxu0 %v7005_v2  ;;  %2745 = vmatpush1.bf16.msra.mxu1 %v7006_v22 }
 0x61e   :  { %2705 = vmatprep.subr.bf16.mxu0 %v7007_v7  ;;  %2746 = vmatprep.subr.bf16.mxu1 %v7008_v45 }
 0x621   :  { %2706 = vmatpush1.bf16.msra.mxu0 %v7009_v41  ;;  %2747 = vmatpush1.bf16.msra.mxu1 %v7010_v6 }
 0x622   :  { %2707 = vmatprep.subr.bf16.mxu0 %v7011_v26  ;;  %2748 = vmatprep.subr.bf16.mxu1 %v7012_v24 }
 0x625   :  { %2708 = vmatpush1.bf16.msra.mxu0 %v7013_v38  ;;  %2749 = vmatpush1.bf16.msra.mxu1 %v7014_v40 }
 0x626   :  { %2778 = vmatprep.subr.bf16.mxu0 %v7015_v30  ;;  %2819 = vmatprep.subr.bf16.mxu1 %v7016_v18 }
 0x688   :  { %v2408_v29 = vpop.f32.mrf.mxu0  ;;  %v2449_v55 = vpop.f32.mrf.mxu1 }
 0x68a   :  { %v2410_v57 = vpop.f32.mrf.mxu0  ;;  %v2451_v2 = vpop.f32.mrf.mxu1 }
 0x68c   :  { %v2412_v22 = vpop.f32.mrf.mxu0  ;;  %v2453_v7 = vpop.f32.mrf.mxu1 }
 0x68e   :  { %v2413_v45 = vpop.f32.mrf.mxu0  ;;  %v2454_v41 = vpop.f32.mrf.mxu1 }
 0x6a8   :  { %v2490_v6 = vpop.f32.mrf.mxu0  ;;  %v2531_v26 = vpop.f32.mrf.mxu1 }
 0x6a9   :  { %v2491_v11 = vadd.f32 %v2490_v6, %v2408_v29  ;;  %v2532_v7 = vadd.f32 %v2531_v26, %v2449_v55 }
 0x6aa   :  { %v2492_v24 = vpop.f32.mrf.mxu0  ;;  %v2533_v3 = vpop.f32.mrf.mxu1 }
 0x6ab   :  { %v2538_v38 = vadd.f32 %v2491_v11, %v5147_v35  ;;  %v2493_v40 = vadd.f32 %v2492_v24, %v2410_v57  ;;  %v2540_v45 = vadd.f32 %v2532_v7, %v5157_v37  ;;  %v2534_v41 = vadd.f32 %v2533_v3, %v2451_v2  ;;  %v7017_v7 = vld [vmem:[#allocation72_spill] sm:$0xff] }
 0x6ac   :  { %v2494_v58 = vpop.f32.mrf.mxu0  ;;  %v2535_v30 = vpop.f32.mrf.mxu1 }
 0x6ad   :  { %v3817_v61 = vmul.f32 -1.442695, %v2538_v38  ;;  %v2539_v18 = vadd.f32 %v2493_v40, %v5151_v33  ;;  %v3819_v29 = vmul.f32 -1.442695, %v2540_v45  ;;  %v2541_v25 = vadd.f32 %v2534_v41, %v6837_v16 }
 0x6ae   :  { %v2495_v4 = vpop.f32.mrf.mxu0  ;;  %v2536_v59 = vpop.f32.mrf.mxu1 }
 0x6af   :  { %4230 = vpow2.f32 %v3817_v61  ;;  %v3818_v22 = vmul.f32 -1.442695, %v2539_v18 }
 0x6b1   :  { %4232 = vpow2.f32 %v3818_v22 }
 0x6b2   :  { %4234 = vpow2.f32 %v3819_v29 }
 0x6bc   :  { %v4231_v6 = vpop.eup %4230 }
 0x6bd   :  { %v2551_v11 = vadd.f32 1.0, %v4231_v6 }
 0x6be   :  { %v4233_v57 = vpop.eup %4232 }
 0x6bf   :  { %4236 = vrcp.f32 %v2551_v11  ;;  %v2552_v58 = vadd.f32 1.0, %v4233_v57  ;;  %v4235_v55 = vpop.eup %4234 }
 0x6c0   :  { %4238 = vtanh.f32 %v2541_v25  ;;  %v2553_v29 = vadd.f32 1.0, %v4235_v55 }
 0x6c1   :  { %4240 = vrcp.f32 %v2552_v58 }
 0x6c8   :  { %v2600_v4 = vpop.f32.mrf.mxu0  ;;  %v2641_v59 = vpop.f32.mrf.mxu1 }
 0x6c9   :  { %v2652_v61 = vrot.slane %v2600_v4, 6 }
 0x6ca   :  { %v2602_v24 = vpop.f32.mrf.mxu0  ;;  %v2643_v38 = vpop.f32.mrf.mxu1 }
 0x6cb   :  { %v2660_v26 = vadd.f32 %v2652_v61, %v6954_v43  ;;  %v2653_v3 = vrot.slane %v2602_v24, 6  ;;  %v2654_v61 = vrot.slane %v2641_v59, 6 }
 0x6cc   :  { %v4237_v2 = vpop.eup %4236  ;;  %v2604_v40 = vpop.f32.mrf.mxu0 }
 0x6cd   :  { %v2645_v30 = vpop.f32.mrf.mxu1  ;;  %v4239_v18 = vpop.eup %4238  ;;  %v3820_v22 = vmul.f32 -1.442695, %v2660_v26  ;;  %v2661_v45 = vadd.f32 %v2653_v3, %v7017_v7  ;;  %v2662_v24 = vadd.f32 %v2654_v61, %v6956_v32  ;;  %v2655_v26 = vrot.slane %v2643_v38, 6  ;;  %v5961_v61 = vld [vmem:[#allocation5 + $0x28] ss:$16 sps:$4 sm:$0xff]  }
 0x6ce   :  { %v4241_v41 = vpop.eup %4240  ;;  %v2605_v25 = vpop.f32.mrf.mxu0  ;;  %v2562_v57 = vmul.f32 %v4239_v18, %v4237_v2 }
 0x6cf   :  { %v2646_v6 = vpop.f32.mrf.mxu1  ;;  %v2561_v11 = vmul.f32 %v4241_v41, %v5713_v34  ;;  %4242 = vpow2.f32 %v3820_v22  ;;  %v3821_v58 = vmul.f32 -1.442695, %v2661_v45  ;;  %v3822_v3 = vmul.f32 -1.442695, %v2662_v24  ;;  %v5964_v24 = vld [vmem:[#allocation5 + $0x4] ss:$16 sps:$4 sm:$0xff]  }
 0x6d0   :  { %v2663_v55 = vadd.f32 %v2655_v26, %v6957_v14  ;;  %v7039_v6 = vld [vmem:[#allocation71_spill] sm:$0xff]  ;;  %v5967_v26 = vld [vmem:[#allocation5 + $0xc] ss:$16 sps:$4 sm:$0xff]  }
 0x6d1   :  { %v5889_v4 = vadd.f32 %v2562_v57, %v2561_v11  ;;  %4244 = vpow2.f32 %v3821_v58  ;;  %v7040_v11 = vld [vmem:[#allocation73_spill] sm:$0xff] }
 0x6d2   :  { %4246 = vrcp.f32 %v2553_v29  ;;  %v7041_v57 = vld [vmem:[#allocation65_spill] sm:$0xff] }
 0x6d3   :  { %4248 = vtanh.f32 %v5889_v4  ;;  %v5958_v58 = vld [vmem:[#allocation5 + $0x20] ss:$16 sps:$4 sm:$0xff]  }
 0x6d4   :  { %4250 = vpow2.f32 %v3822_v3  ;;  %v5970_v3 = vld [vmem:[#allocation5] ss:$16 sps:$4 sm:$0xff]  }
 0x6dc   :  { %v4243_v40 = vpop.eup %4242 }
 0x6dd   :  { %v2673_v30 = vadd.f32 1.0, %v4243_v40  ;;  %v5973_v40 = vld [vmem:[#allocation5 + $0x8] ss:$16 sps:$4 sm:$0xff]  }
 0x6de   :  { %v4245_v25 = vpop.eup %4244  ;;  %7042 = vst [vmem:[#allocation18_spill] sm:$0xff] %v5973_v40 }
 0x6df   :  { %v4247_v34 = vpop.eup %4246  ;;  %4252 = vrcp.f32 %v2673_v30  ;;  %v2674_v2 = vadd.f32 1.0, %v4245_v25  ;;  %v5979_v30 = vld [vmem:[#allocation8 + $0xec] ss:$16 sps:$4 sm:$0xff]   ;;  %v5982_v25 = vld [vmem:[#allocation8 + $0xe0] ss:$16 sps:$4 sm:$0xff]  }
 0x6e0   :  { %v4249_v18 = vpop.eup %4248  ;;  %4254 = vtanh.f32 %v2663_v55  ;;  %v5976_v55 = vld [vmem:[#allocation8 + $0xe4] ss:$16 sps:$4 sm:$0xff]   ;;  %7044 = vst [vmem:[#allocation21_spill] sm:$0xff] %v5979_v30  ;;  %7045 = vst [vmem:[#allocation17_spill] sm:$0xff] %v5982_v25 }
 0x6e1   :  { %4256 = vrcp.f32 %v2674_v2  ;;  %v2565_v22 = vmul.f32 %v4249_v18, %v4247_v34  ;;  %v4251_v38 = vpop.eup %4250  ;;  %7043 = vst [vmem:[#allocation16_spill] sm:$0xff] %v5976_v55  ;;  %v5985_v34 = vld [vmem:[#allocation8 + $0xe8] ss:$16 sps:$4 sm:$0xff]   ;;  %v5988_v2 = vld [vmem:[#allocation8 + $0xc4] ss:$16 sps:$4 sm:$0xff]  }
 0x6e2   :  { %v2675_v41 = vadd.f32 1.0, %v4251_v38  ;;  %7046 = vst [vmem:[#allocation22_spill] sm:$0xff] %v5985_v34  ;;  %7047 = vst [vmem:[#allocation19_spill] sm:$0xff] %v5988_v2  ;;  %v5991_v18 = vld [vmem:[#allocation8 + $0xcc] ss:$16 sps:$4 sm:$0xff]  }
 0x6e3   :  { %v2692_v59 = vpack.c.bf16 %v2565_v22, %v2565_v22  ;;  %7048 = vst [vmem:[#allocation25_spill] sm:$0xff] %v5991_v18  ;;  %v5996_v22 = vld [vmem:[#allocation8 + $0xc0] ss:$16 sps:$4 sm:$0xff]   ;;  %v6002_v38 = vld [vmem:[#allocation8 + $0xa4] ss:$16 sps:$4 sm:$0xff]  }
 0x6e4   :  { %4258 = vrcp.f32 %v2675_v41  ;;  %7049 = vst [vmem:[#allocation20_spill] sm:$0xff] %v5996_v22  ;;  %7051 = vst [vmem:[#allocation68_spill] sm:$0xff] %v6002_v38  ;;  %v6017_v41 = vld [vmem:[#allocation8 + $0x8c] ss:$16 sps:$4 sm:$0xff]  }
 0x6e5   :  { %2726 = vmatmul.mubr.bf16.vlgmr.msra.gmra.mxu0 %v2692_v59  ;;  %2767 = vmatmul.mubr.bf16.vlgmr.msra.gmra.mxu1 %v2692_v59  ;;  %v5999_v59 = vld [vmem:[#allocation8 + $0xc8] ss:$16 sps:$4 sm:$0xff]   ;;  %7056 = vst [vmem:[#allocation37_spill] sm:$0xff] %v6017_v41 }
 0x6e6   :  { %2779 = vmatpush1.bf16.msra.mxu0 %v5540_v56  ;;  %2820 = vmatpush1.bf16.msra.mxu1 %v5543_v0  ;;  %v2684_v0 = vrot.slane %v5731_v62, 6  ;;  %v7029_v62 = vld [vmem:[#allocation40_spill] sm:$0xff]  ;;  %7050 = vst [vmem:[#allocation67_spill] sm:$0xff] %v5999_v59 }
 0x6e7   :  { %2780 = vmatprep.subr.bf16.mxu0 %v5546_v20  ;;  %2821 = vmatprep.subr.bf16.mxu1 %v5549_v27 }
 0x6e8   :  { %2810 = vmatprep.mubr.bf16.mxu0 %v6751_v21  ;;  %2851 = vmatprep.mubr.bf16.mxu1 %v6751_v21 }
 0x6ea   :  { %2781 = vmatpush1.bf16.msra.mxu0 %v5554_v47  ;;  %2822 = vmatpush1.bf16.msra.mxu1 %v5557_v17 }
 0x6eb   :  { %2782 = vmatprep.subr.bf16.mxu0 %v5560_v53  ;;  %2823 = vmatprep.subr.bf16.mxu1 %v5563_v44 }
 0x6ec   :  { %v4253_v56 = vpop.eup %4252 }
 0x6ed   :  { %v4255_v45 = vpop.eup %4254 }
 0x6ee   :  { %v4257_v20 = vpop.eup %4256  ;;  %2783 = vmatpush1.bf16.msra.mxu0 %v5567_v8  ;;  %2824 = vmatpush1.bf16.msra.mxu1 %v5570_v10  ;;  %v2687_v29 = vmul.f32 %v4255_v45, %v4253_v56  ;;  %v6005_v56 = vld [vmem:[#allocation8 + $0xac] ss:$16 sps:$4 sm:$0xff]   ;;  %v6008_v45 = vld [vmem:[#allocation8 + $0xa0] ss:$16 sps:$4 sm:$0xff]  }
 0x6ef   :  { %v2686_v27 = vmul.f32 %v4257_v20, %v2684_v0  ;;  %2784 = vmatprep.subr.bf16.mxu0 %v5573_v28  ;;  %2825 = vmatprep.subr.bf16.mxu1 %v5576_v49  ;;  %v7018_v28 = vld [vmem:[#allocation26_spill] sm:$0xff]  ;;  %v7019_v49 = vld [vmem:[#allocation23_spill] sm:$0xff]  ;;  %7052 = vst [vmem:[#allocation31_spill] sm:$0xff] %v6005_v56  ;;  %7053 = vst [vmem:[#allocation35_spill] sm:$0xff] %v6008_v45 }
 0x6f0   :  { %v6011_v0 = vld [vmem:[#allocation8 + $0xa8] ss:$16 sps:$4 sm:$0xff]   ;;  %v6014_v20 = vld [vmem:[#allocation8 + $0x84] ss:$16 sps:$4 sm:$0xff]  }
 0x6f1   :  { %v5909_v47 = vadd.f32 %v2687_v29, %v2686_v27  ;;  %v4259_v17 = vpop.eup %4258  ;;  %7054 = vst [vmem:[#allocation32_spill] sm:$0xff] %v6011_v0  ;;  %7055 = vst [vmem:[#allocation36_spill] sm:$0xff] %v6014_v20  ;;  %v6020_v27 = vld [vmem:[#allocation8 + $0x80] ss:$16 sps:$4 sm:$0xff]   ;;  %v6023_v29 = vld [vmem:[#allocation8 + $0x88] ss:$16 sps:$4 sm:$0xff]  }
 0x6f2   :  { %2785 = vmatpush1.bf16.msra.mxu0 %v5581_v12  ;;  %2826 = vmatpush1.bf16.msra.mxu1 %v5584_v54  ;;  %v7020_v12 = vld [vmem:[#allocation29_spill] sm:$0xff]  ;;  %v7021_v54 = vld [vmem:[#allocation24_spill] sm:$0xff]  ;;  %7057 = vst [vmem:[#allocation38_spill] sm:$0xff] %v6020_v27  ;;  %7058 = vst [vmem:[#allocation15_spill] sm:$0xff] %v6023_v29 }
 0x6f3   :  { %4260 = vtanh.f32 %v5909_v47  ;;  %2786 = vmatprep.subr.bf16.mxu0 %v5588_v50  ;;  %2827 = vmatprep.subr.bf16.mxu1 %v5591_v52  ;;  %v7022_v50 = vld [vmem:[#allocation30_spill] sm:$0xff]  ;;  %v7023_v52 = vld [vmem:[#allocation27_spill] sm:$0xff] }
 0x6f6   :  { %2787 = vmatpush1.bf16.msra.mxu0 %v5594_v23  ;;  %2828 = vmatpush1.bf16.msra.mxu1 %v5597_v9  ;;  %v7024_v23 = vld [vmem:[#allocation33_spill] sm:$0xff]  ;;  %v7025_v9 = vld [vmem:[#allocation28_spill] sm:$0xff] }
 0x6f7   :  { %2788 = vmatprep.subr.bf16.mxu0 %v6958_v19  ;;  %2829 = vmatprep.subr.bf16.mxu1 %v6959_v63  ;;  %v7030_v19 = vld [vmem:[#allocation41_spill] sm:$0xff]  ;;  %v7031_v63 = vld [vmem:[#allocation42_spill] sm:$0xff] }
 0x6fa   :  { %2789 = vmatpush1.bf16.msra.mxu0 %v6960_v1  ;;  %2830 = vmatpush1.bf16.msra.mxu1 %v6961_v36  ;;  %v7032_v1 = vld [vmem:[#allocation43_spill] sm:$0xff] }
 0x6fb   :  { %2790 = vmatprep.subr.bf16.mxu0 %v6962_v5  ;;  %2831 = vmatprep.subr.bf16.mxu1 %v6963_v46  ;;  %v7033_v36 = vld [vmem:[#allocation47_spill] sm:$0xff]  ;;  %v7034_v5 = vld [vmem:[#allocation49_spill] sm:$0xff]  ;;  %v7035_v46 = vld [vmem:[#allocation50_spill] sm:$0xff] }
 0x6fe   :  { %2791 = vmatpush1.bf16.msra.mxu0 %v6964_v48  ;;  %2832 = vmatpush1.bf16.msra.mxu1 %v6965_v39  ;;  %v7036_v48 = vld [vmem:[#allocation61_spill] sm:$0xff]  ;;  %v7037_v39 = vld [vmem:[#allocation66_spill] sm:$0xff] }
 0x6ff   :  { %2792 = vmatprep.subr.bf16.mxu0 %v6966_v42  ;;  %2833 = vmatprep.subr.bf16.mxu1 %v5627_v13  ;;  %v7026_v13 = vld [vmem:[#allocation34_spill] sm:$0xff] }
 0x700   :  { %v4261_v53 = vpop.eup %4260  ;;  %v7038_v42 = vld [vmem:[#allocation70_spill] sm:$0xff] }
 0x701   :  { %v2690_v44 = vmul.f32 %v4261_v53, %v4259_v17  ;;  %v6026_v17 = vld [vmem:[#allocation8 + $0x64] ss:$16 sps:$4 sm:$0xff]   ;;  %v6029_v53 = vld [vmem:[#allocation8 + $0x6c] ss:$16 sps:$4 sm:$0xff]  }
 0x702   :  { %2793 = vmatpush1.bf16.msra.mxu0 %v5630_v15  ;;  %2834 = vmatpush1.bf16.msra.mxu1 %v5633_v31  ;;  %v7027_v15 = vld [vmem:[#allocation69_spill] sm:$0xff]  ;;  %v7028_v31 = vld [vmem:[#allocation39_spill] sm:$0xff]  ;;  %7059 = vst [vmem:[#allocation44_spill] sm:$0xff] %v6026_v17  ;;  %7060 = vst [vmem:[#allocation45_spill] sm:$0xff] %v6029_v53 }
 0x703   :  { %2888 = vmatprep.subr.bf16.mxu0 %v5756_v60  ;;  %2929 = vmatprep.subr.bf16.mxu1 %v5759_v51  ;;  %v2691_v8 = vpack.c.bf16 %v2690_v44, %v2690_v44  ;;  %v6032_v44 = vld [vmem:[#allocation8 + $0x60] ss:$16 sps:$4 sm:$0xff]  }
 0x704   :  { %7061 = vst [vmem:[#allocation46_spill] sm:$0xff] %v6032_v44 }
 0x705   :  { %v2776_v10 = vrot.slane %v2691_v8, 1  ;;  %v6035_v8 = vld [vmem:[#allocation8 + $0x68] ss:$16 sps:$4 sm:$0xff]  }
 0x706   :  { %7062 = vst [vmem:[#allocation48_spill] sm:$0xff] %v6035_v8 }
 0x707   :  { %2811 = vmatmul.mubr.bf16.vlgmr.msra.gmra.mxu0 %v2776_v10  ;;  %2852 = vmatmul.mubr.bf16.vlgmr.msra.gmra.mxu1 %v2776_v10 }
 0x708   :  { %2889 = vmatpush1.bf16.msra.mxu0 %v7018_v28  ;;  %2930 = vmatpush1.bf16.msra.mxu1 %v7019_v49 }
 0x709   :  { %2890 = vmatprep.subr.bf16.mxu0 %v7020_v12  ;;  %2931 = vmatprep.subr.bf16.mxu1 %v7021_v54 }
 0x70a   :  { %2920 = vmatprep.mubr.bf16.mxu0 %v6751_v21  ;;  %2961 = vmatprep.mubr.bf16.mxu1 %v6751_v21 }
 0x70c   :  { %2891 = vmatpush1.bf16.msra.mxu0 %v7022_v50  ;;  %2932 = vmatpush1.bf16.msra.mxu1 %v7023_v52 }
 0x70d   :  { %2892 = vmatprep.subr.bf16.mxu0 %v7024_v23  ;;  %2933 = vmatprep.subr.bf16.mxu1 %v7025_v9 }
 0x710   :  { %2893 = vmatpush1.bf16.msra.mxu0 %v7026_v13  ;;  %2934 = vmatpush1.bf16.msra.mxu1 %v7027_v15 }
 0x711   :  { %2894 = vmatprep.subr.bf16.mxu0 %v7028_v31  ;;  %2935 = vmatprep.subr.bf16.mxu1 %v7029_v62 }
 0x714   :  { %2895 = vmatpush1.bf16.msra.mxu0 %v7030_v19  ;;  %2936 = vmatpush1.bf16.msra.mxu1 %v7031_v63 }
 0x715   :  { %2896 = vmatprep.subr.bf16.mxu0 %v7032_v1  ;;  %2937 = vmatprep.subr.bf16.mxu1 %v7033_v36 }
 0x718   :  { %2897 = vmatpush1.bf16.msra.mxu0 %v7034_v5  ;;  %2938 = vmatpush1.bf16.msra.mxu1 %v7035_v46 }
 0x719   :  { %2898 = vmatprep.subr.bf16.mxu0 %v7036_v48  ;;  %2939 = vmatprep.subr.bf16.mxu1 %v7037_v39 }
 0x71c   :  { %2899 = vmatpush1.bf16.msra.mxu0 %v7038_v42  ;;  %2940 = vmatpush1.bf16.msra.mxu1 %v7039_v6 }
 0x71d   :  { %2900 = vmatprep.subr.bf16.mxu0 %v7040_v11  ;;  %2941 = vmatprep.subr.bf16.mxu1 %v7041_v57 }
 0x720   :  { %2901 = vmatpush1.bf16.msra.mxu0 %v5958_v58  ;;  %2942 = vmatpush1.bf16.msra.mxu1 %v5961_v61 }
 0x721   :  { %2902 = vmatprep.subr.bf16.mxu0 %v5964_v24  ;;  %2943 = vmatprep.subr.bf16.mxu1 %v5967_v26 }
 0x724   :  { %2903 = vmatpush1.bf16.msra.mxu0 %v5970_v3  ;;  %2944 = vmatpush1.bf16.msra.mxu1 %v5973_v40 }
 0x725   :  { %3015 = vmatprep.subr.bf16.mxu0 %v5976_v55  ;;  %3056 = vmatprep.subr.bf16.mxu1 %v5979_v30 }
 0x727   :  { %2921 = vmatmul.mubr.bf16.vlgmr.msra.gmra.mxu0 %v2776_v10  ;;  %2962 = vmatmul.mubr.bf16.vlgmr.msra.gmra.mxu1 %v2776_v10  ;;  %v6038_v10 = vld [vmem:[#allocation8 + $0x44] ss:$16 sps:$4 sm:$0xff]  }
 0x728   :  { %3016 = vmatpush1.bf16.msra.mxu0 %v5982_v25  ;;  %3057 = vmatpush1.bf16.msra.mxu1 %v5985_v34  ;;  %7063 = vst [vmem:[#allocation51_spill] sm:$0xff] %v6038_v10 }
 0x729   :  { %3017 = vmatprep.subr.bf16.mxu0 %v5988_v2  ;;  %3058 = vmatprep.subr.bf16.mxu1 %v5991_v18 }
 0x72a   :  { %3047 = vmatprep.mubr.bf16.mxu0 %v6751_v21  ;;  %3088 = vmatprep.mubr.bf16.mxu1 %v6751_v21 }
 0x72c   :  { %3018 = vmatpush1.bf16.msra.mxu0 %v5996_v22  ;;  %3059 = vmatpush1.bf16.msra.mxu1 %v5999_v59 }
 0x72d   :  { %3019 = vmatprep.subr.bf16.mxu0 %v6002_v38  ;;  %3060 = vmatprep.subr.bf16.mxu1 %v6005_v56 }
 0x730   :  { %3020 = vmatpush1.bf16.msra.mxu0 %v6008_v45  ;;  %3061 = vmatpush1.bf16.msra.mxu1 %v6011_v0 }
 0x731   :  { %3021 = vmatprep.subr.bf16.mxu0 %v6014_v20  ;;  %3062 = vmatprep.subr.bf16.mxu1 %v6017_v41 }
 0x734   :  { %3022 = vmatpush1.bf16.msra.mxu0 %v6020_v27  ;;  %3063 = vmatpush1.bf16.msra.mxu1 %v6023_v29  ;;  %v6041_v29 = vld [vmem:[#allocation8 + $0x4c] ss:$16 sps:$4 sm:$0xff]  }
 0x735   :  { %3023 = vmatprep.subr.bf16.mxu0 %v6026_v17  ;;  %3064 = vmatprep.subr.bf16.mxu1 %v6029_v53  ;;  %7064 = vst [vmem:[#allocation52_spill] sm:$0xff] %v6041_v29  ;;  %v6044_v17 = vld [vmem:[#allocation8 + $0x40] ss:$16 sps:$4 sm:$0xff]   ;;  %v6047_v53 = vld [vmem:[#allocation8 + $0x48] ss:$16 sps:$4 sm:$0xff]  }
 0x736   :  { %7065 = vst [vmem:[#allocation53_spill] sm:$0xff] %v6044_v17  ;;  %7066 = vst [vmem:[#allocation54_spill] sm:$0xff] %v6047_v53 }
 0x738   :  { %3024 = vmatpush1.bf16.msra.mxu0 %v6032_v44  ;;  %3065 = vmatpush1.bf16.msra.mxu1 %v6035_v8  ;;  %v6050_v44 = vld [vmem:[#allocation8 + $0x24] ss:$16 sps:$4 sm:$0xff]   ;;  %v6053_v8 = vld [vmem:[#allocation8 + $0x2c] ss:$16 sps:$4 sm:$0xff]  }
 0x739   :  { %3025 = vmatprep.subr.bf16.mxu0 %v6038_v10  ;;  %3066 = vmatprep.subr.bf16.mxu1 %v6041_v29  ;;  %7067 = vst [vmem:[#allocation55_spill] sm:$0xff] %v6050_v44  ;;  %7068 = vst [vmem:[#allocation56_spill] sm:$0xff] %v6053_v8  ;;  %v6056_v10 = vld [vmem:[#allocation8 + $0x20] ss:$16 sps:$4 sm:$0xff]   ;;  %v6059_v29 = vld [vmem:[#allocation8 + $0x28] ss:$16 sps:$4 sm:$0xff]  }
 0x73a   :  { %7069 = vst [vmem:[#allocation57_spill] sm:$0xff] %v6056_v10  ;;  %7070 = vst [vmem:[#allocation58_spill] sm:$0xff] %v6059_v29 }
 0x73c   :  { %3026 = vmatpush1.bf16.msra.mxu0 %v6044_v17  ;;  %3067 = vmatpush1.bf16.msra.mxu1 %v6047_v53  ;;  %v6062_v17 = vld [vmem:[#allocation8 + $0x4] ss:$16 sps:$4 sm:$0xff]   ;;  %v6065_v53 = vld [vmem:[#allocation8 + $0xc] ss:$16 sps:$4 sm:$0xff]  }
 0x73d   :  { %3027 = vmatprep.subr.bf16.mxu0 %v6050_v44  ;;  %3068 = vmatprep.subr.bf16.mxu1 %v6053_v8  ;;  %7071 = vst [vmem:[#allocation59_spill] sm:$0xff] %v6062_v17  ;;  %7072 = vst [vmem:[#allocation60_spill] sm:$0xff] %v6065_v53  ;;  %v6068_v44 = vld [vmem:[#allocation8] ss:$16 sps:$4 sm:$0xff]   ;;  %v6071_v8 = vld [vmem:[#allocation8 + $0x8] ss:$16 sps:$4 sm:$0xff]  }
 0x73e   :  { %7073 = vst [vmem:[#allocation62_spill] sm:$0xff] %v6068_v44  ;;  %7074 = vst [vmem:[#allocation63_spill] sm:$0xff] %v6071_v8 }
 0x740   :  { %3028 = vmatpush1.bf16.msra.mxu0 %v6056_v10  ;;  %3069 = vmatpush1.bf16.msra.mxu1 %v6059_v29  ;;  %v6074_v10 = vld [vmem:[#allocation7 + $0xe4] ss:$16 sps:$4 sm:$0xff]   ;;  %v6077_v29 = vld [vmem:[#allocation7 + $0xec] ss:$16 sps:$4 sm:$0xff]  }
 0x741   :  { %3029 = vmatprep.subr.bf16.mxu0 %v6062_v17  ;;  %3070 = vmatprep.subr.bf16.mxu1 %v6065_v53  ;;  %7075 = vst [vmem:[#allocation64_spill] sm:$0xff] %v6074_v10  ;;  %7076 = vst [vmem:[#allocation72_spill] sm:$0xff] %v6077_v29 }
 0x744   :  { %3030 = vmatpush1.bf16.msra.mxu0 %v6068_v44  ;;  %3071 = vmatpush1.bf16.msra.mxu1 %v6071_v8 }
 0x745   :  { %3100 = vmatprep.subr.bf16.mxu0 %v6074_v10  ;;  %3141 = vmatprep.subr.bf16.mxu1 %v6077_v29 }
 0x7a5   :  { %v2727_v17 = vpop.f32.mrf.mxu0  ;;  %v2768_v27 = vpop.f32.mrf.mxu1 }
 0x7a7   :  { %v2729_v41 = vpop.f32.mrf.mxu0  ;;  %v2770_v53 = vpop.f32.mrf.mxu1 }
 0x7a9   :  { %v2731_v20 = vpop.f32.mrf.mxu0  ;;  %v2772_v0 = vpop.f32.mrf.mxu1 }
 0x7ab   :  { %v2732_v45 = vpop.f32.mrf.mxu0  ;;  %v2773_v44 = vpop.f32.mrf.mxu1 }
 0x7c7   :  { %v2812_v56 = vpop.f32.mrf.mxu0  ;;  %v2853_v38 = vpop.f32.mrf.mxu1 }
 0x7c8   :  { %v2813_v59 = vadd.f32 %v2812_v56, %v2727_v17  ;;  %v2854_v45 = vadd.f32 %v2853_v38, %v2768_v27 }
 0x7c9   :  { %v2814_v8 = vpop.f32.mrf.mxu0  ;;  %v2855_v22 = vpop.f32.mrf.mxu1 }
 0x7ca   :  { %v2860_v18 = vadd.f32 %v2813_v59, %v5147_v35  ;;  %v2815_v10 = vadd.f32 %v2814_v8, %v2729_v41  ;;  %v2862_v0 = vadd.f32 %v2854_v45, %v5157_v37  ;;  %v2856_v44 = vadd.f32 %v2855_v22, %v2770_v53 }
 0x7cb   :  { %v2816_v2 = vpop.f32.mrf.mxu0  ;;  %v2857_v34 = vpop.f32.mrf.mxu1 }
 0x7cc   :  { %v3823_v25 = vmul.f32 -1.442695, %v2860_v18  ;;  %v2861_v29 = vadd.f32 %v2815_v10, %v5151_v33  ;;  %v3825_v56 = vmul.f32 -1.442695, %v2862_v0  ;;  %v2863_v40 = vadd.f32 %v2856_v44, %v6837_v16 }
 0x7cd   :  { %v2817_v30 = vpop.f32.mrf.mxu0  ;;  %v2858_v55 = vpop.f32.mrf.mxu1 }
 0x7ce   :  { %4262 = vpow2.f32 %v3823_v25  ;;  %v3824_v20 = vmul.f32 -1.442695, %v2861_v29 }
 0x7d0   :  { %4264 = vpow2.f32 %v3824_v20 }
 0x7d1   :  { %4266 = vpow2.f32 %v3825_v56 }
 0x7db   :  { %v4263_v17 = vpop.eup %4262 }
 0x7dc   :  { %v2873_v59 = vadd.f32 1.0, %v4263_v17 }
 0x7dd   :  { %v4265_v41 = vpop.eup %4264 }
 0x7de   :  { %4268 = vrcp.f32 %v2873_v59  ;;  %v2874_v34 = vadd.f32 1.0, %v4265_v41  ;;  %v4267_v38 = vpop.eup %4266 }
 0x7df   :  { %4270 = vtanh.f32 %v2863_v40  ;;  %v2875_v44 = vadd.f32 1.0, %v4267_v38 }
 0x7e0   :  { %4272 = vrcp.f32 %v2874_v34 }
 0x7e7   :  { %v2922_v30 = vpop.f32.mrf.mxu0  ;;  %v2963_v55 = vpop.f32.mrf.mxu1 }
 0x7e8   :  { %v2974_v25 = vrot.slane %v2922_v30, 4  ;;  %v2976_v30 = vrot.slane %v2963_v55, 4 }
 0x7e9   :  { %v2924_v2 = vpop.f32.mrf.mxu0  ;;  %v2965_v18 = vpop.f32.mrf.mxu1 }
 0x7ea   :  { %v2982_v27 = vadd.f32 %v2974_v25, %v6954_v43  ;;  %v2975_v22 = vrot.slane %v2924_v2, 4  ;;  %v2984_v25 = vadd.f32 %v2976_v30, %v6956_v32  ;;  %v2977_v2 = vrot.slane %v2965_v18, 4  ;;  %v6095_v18 = vld [vmem:[#allocation7 + $0xe8] ss:$16 sps:$4 sm:$0xff]  }
 0x7eb   :  { %v4269_v29 = vpop.eup %4268  ;;  %v2926_v53 = vpop.f32.mrf.mxu0 }
 0x7ec   :  { %v2967_v8 = vpop.f32.mrf.mxu1  ;;  %v4271_v10 = vpop.eup %4270  ;;  %v3826_v20 = vmul.f32 -1.442695, %v2982_v27  ;;  %v2983_v45 = vadd.f32 %v2975_v22, %v7017_v7  ;;  %v3828_v27 = vmul.f32 -1.442695, %v2984_v25  ;;  %v2985_v38 = vadd.f32 %v2977_v2, %v6957_v14 }
 0x7ed   :  { %v4273_v0 = vpop.eup %4272  ;;  %v2927_v40 = vpop.f32.mrf.mxu0  ;;  %v2884_v59 = vmul.f32 %v4271_v10, %v4269_v29  ;;  %v3006_v2 = vrot.slane %v5909_v47, 6 }
 0x7ee   :  { %v2968_v56 = vpop.f32.mrf.mxu1  ;;  %v2883_v17 = vmul.f32 %v4273_v0, %v5889_v4  ;;  %4274 = vpow2.f32 %v3826_v20  ;;  %v3827_v41 = vmul.f32 -1.442695, %v2983_v45  ;;  %v6092_v45 = vld [vmem:[#allocation7 + $0xe0] ss:$16 sps:$4 sm:$0xff]   ;;  %v6098_v0 = vld [vmem:[#allocation7 + $0xc4] ss:$16 sps:$4 sm:$0xff]  }
 0x7ef   :  { %v6106_v40 = vld [vmem:[#allocation7 + $0xc0] ss:$16 sps:$4 sm:$0xff]   ;;  %v6109_v56 = vld [vmem:[#allocation7 + $0xc8] ss:$16 sps:$4 sm:$0xff]  }
 0x7f0   :  { %v6087_v34 = vadd.f32 %v2884_v59, %v2883_v17  ;;  %4276 = vpow2.f32 %v3827_v41  ;;  %v6112_v59 = vld [vmem:[#allocation7 + $0xa4] ss:$16 sps:$4 sm:$0xff]   ;;  %v6115_v41 = vld [vmem:[#allocation7 + $0xac] ss:$16 sps:$4 sm:$0xff]  }
 0x7f1   :  { %4278 = vrcp.f32 %v2875_v44  ;;  %v6101_v44 = vld [vmem:[#allocation7 + $0xcc] ss:$16 sps:$4 sm:$0xff]  }
 0x7f2   :  { %4280 = vtanh.f32 %v6087_v34 }
 0x7f3   :  { %4282 = vpow2.f32 %v3828_v27 }
 0x7fb   :  { %v4275_v22 = vpop.eup %4274 }
 0x7fc   :  { %v2995_v53 = vadd.f32 1.0, %v4275_v22 }
 0x7fd   :  { %v4277_v8 = vpop.eup %4276 }
 0x7fe   :  { %v4279_v4 = vpop.eup %4278  ;;  %4284 = vrcp.f32 %v2995_v53  ;;  %v2996_v29 = vadd.f32 1.0, %v4277_v8  ;;  %v6122_v53 = vld [vmem:[#allocation7 + $0xa8] ss:$16 sps:$4 sm:$0xff]  }
 0x7ff   :  { %v4281_v10 = vpop.eup %4280  ;;  %4286 = vtanh.f32 %v2985_v38  ;;  %v6119_v38 = vld [vmem:[#allocation7 + $0xa0] ss:$16 sps:$4 sm:$0xff]  }
 0x800   :  { %4288 = vrcp.f32 %v2996_v29  ;;  %v2887_v20 = vmul.f32 %v4281_v10, %v4279_v4  ;;  %v4283_v17 = vpop.eup %4282  ;;  %v6125_v29 = vld [vmem:[#allocation7 + $0x84] ss:$16 sps:$4 sm:$0xff]   ;;  %v6128_v10 = vld [vmem:[#allocation7 + $0x8c] ss:$16 sps:$4 sm:$0xff]  }
 0x801   :  { %v2997_v22 = vadd.f32 1.0, %v4283_v17  ;;  %v6140_v17 = vld [vmem:[#allocation7 + $0x64] ss:$16 sps:$4 sm:$0xff]  }
 0x802   :  { %v3014_v55 = vpack.c.bf16 %v2887_v20, %v2887_v20  ;;  %v6133_v20 = vld [vmem:[#allocation7 + $0x80] ss:$16 sps:$4 sm:$0xff]   ;;  %7077 = vst [vmem:[#allocation26_spill] sm:$0xff] %v6140_v17 }
 0x803   :  { %4290 = vrcp.f32 %v2997_v22  ;;  %v6155_v22 = vld [vmem:[#allocation7 + $0x4c] ss:$16 sps:$4 sm:$0xff]  }
 0x804   :  { %3048 = vmatmul.mubr.bf16.vlgmr.msra.gmra.mxu0 %v3014_v55  ;;  %3089 = vmatmul.mubr.bf16.vlgmr.msra.gmra.mxu1 %v3014_v55  ;;  %v6136_v55 = vld [vmem:[#allocation7 + $0x88] ss:$16 sps:$4 sm:$0xff]   ;;  %7082 = vst [vmem:[#allocation27_spill] sm:$0xff] %v6155_v22 }
 0x805   :  { %3101 = vmatpush1.bf16.msra.mxu0 %v6092_v45  ;;  %3142 = vmatpush1.bf16.msra.mxu1 %v6095_v18 }
 0x806   :  { %3102 = vmatprep.subr.bf16.mxu0 %v6098_v0  ;;  %3143 = vmatprep.subr.bf16.mxu1 %v6101_v44 }
 0x807   :  { %3132 = vmatprep.mubr.bf16.mxu0 %v6751_v21  ;;  %3173 = vmatprep.mubr.bf16.mxu1 %v6751_v21 }
 0x809   :  { %3103 = vmatpush1.bf16.msra.mxu0 %v6106_v40  ;;  %3144 = vmatpush1.bf16.msra.mxu1 %v6109_v56 }
 0x80a   :  { %3104 = vmatprep.subr.bf16.mxu0 %v6112_v59  ;;  %3145 = vmatprep.subr.bf16.mxu1 %v6115_v41 }
 0x80b   :  { %v4285_v30 = vpop.eup %4284 }
 0x80c   :  { %v4287_v25 = vpop.eup %4286 }
 0x80d   :  { %v4289_v27 = vpop.eup %4288  ;;  %3105 = vmatpush1.bf16.msra.mxu0 %v6119_v38  ;;  %3146 = vmatpush1.bf16.msra.mxu1 %v6122_v53  ;;  %v3009_v4 = vmul.f32 %v4287_v25, %v4285_v30  ;;  %v6143_v30 = vld [vmem:[#allocation7 + $0x6c] ss:$16 sps:$4 sm:$0xff]   ;;  %v6146_v25 = vld [vmem:[#allocation7 + $0x60] ss:$16 sps:$4 sm:$0xff]  }
 0x80e   :  { %v3008_v8 = vmul.f32 %v4289_v27, %v3006_v2  ;;  %3106 = vmatprep.subr.bf16.mxu0 %v6125_v29  ;;  %3147 = vmatprep.subr.bf16.mxu1 %v6128_v10  ;;  %7078 = vst [vmem:[#allocation23_spill] sm:$0xff] %v6143_v30  ;;  %7079 = vst [vmem:[#allocation29_spill] sm:$0xff] %v6146_v25  ;;  %v6149_v2 = vld [vmem:[#allocation7 + $0x68] ss:$16 sps:$4 sm:$0xff]   ;;  %v6152_v27 = vld [vmem:[#allocation7 + $0x44] ss:$16 sps:$4 sm:$0xff]  }
 0x80f   :  { %7080 = vst [vmem:[#allocation24_spill] sm:$0xff] %v6149_v2  ;;  %7081 = vst [vmem:[#allocation30_spill] sm:$0xff] %v6152_v27 }
 0x810   :  { %v6131_v47 = vadd.f32 %v3009_v4, %v3008_v8  ;;  %v6158_v8 = vld [vmem:[#allocation7 + $0x40] ss:$16 sps:$4 sm:$0xff]   ;;  %v6161_v4 = vld [vmem:[#allocation7 + $0x48] ss:$16 sps:$4 sm:$0xff]  }
 0x811   :  { %3107 = vmatpush1.bf16.msra.mxu0 %v6133_v20  ;;  %3148 = vmatpush1.bf16.msra.mxu1 %v6136_v55  ;;  %7083 = vst [vmem:[#allocation33_spill] sm:$0xff] %v6158_v8  ;;  %7084 = vst [vmem:[#allocation28_spill] sm:$0xff] %v6161_v4 }
 0x812   :  { %4292 = vtanh.f32 %v6131_v47  ;;  %3108 = vmatprep.subr.bf16.mxu0 %v6140_v17  ;;  %3149 = vmatprep.subr.bf16.mxu1 %v6143_v30  ;;  %v6176_v30 = vld [vmem:[#allocation7 + $0x4] ss:$16 sps:$4 sm:$0xff]  }
 0x813   :  { %7089 = vst [vmem:[#allocation41_spill] sm:$0xff] %v6176_v30 }
 0x815   :  { %3109 = vmatpush1.bf16.msra.mxu0 %v6146_v25  ;;  %3150 = vmatpush1.bf16.msra.mxu1 %v6149_v2  ;;  %v6164_v25 = vld [vmem:[#allocation7 + $0x24] ss:$16 sps:$4 sm:$0xff]   ;;  %v6167_v2 = vld [vmem:[#allocation7 + $0x2c] ss:$16 sps:$4 sm:$0xff]  }
 0x816   :  { %3110 = vmatprep.subr.bf16.mxu0 %v6152_v27  ;;  %3151 = vmatprep.subr.bf16.mxu1 %v6155_v22  ;;  %7085 = vst [vmem:[#allocation34_spill] sm:$0xff] %v6164_v25  ;;  %7086 = vst [vmem:[#allocation69_spill] sm:$0xff] %v6167_v2  ;;  %v6170_v27 = vld [vmem:[#allocation7 + $0x20] ss:$16 sps:$4 sm:$0xff]   ;;  %v6173_v22 = vld [vmem:[#allocation7 + $0x28] ss:$16 sps:$4 sm:$0xff]  }
 0x817   :  { %7087 = vst [vmem:[#allocation39_spill] sm:$0xff] %v6170_v27  ;;  %7088 = vst [vmem:[#allocation40_spill] sm:$0xff] %v6173_v22 }
 0x819   :  { %3111 = vmatpush1.bf16.msra.mxu0 %v6158_v8  ;;  %3152 = vmatpush1.bf16.msra.mxu1 %v6161_v4  ;;  %v4291_v8 = vpop.eup %4290  ;;  %v6179_v4 = vld [vmem:[#allocation7 + $0xc] ss:$16 sps:$4 sm:$0xff]  }
 0x81a   :  { %3112 = vmatprep.subr.bf16.mxu0 %v6164_v25  ;;  %3153 = vmatprep.subr.bf16.mxu1 %v6167_v2  ;;  %v6182_v2 = vld [vmem:[#allocation7] ss:$16 sps:$4 sm:$0xff]  }
 0x81d   :  { %3113 = vmatpush1.bf16.msra.mxu0 %v6170_v27  ;;  %3154 = vmatpush1.bf16.msra.mxu1 %v6173_v22  ;;  %v6185_v27 = vld [vmem:[#allocation7 + $0x8] ss:$16 sps:$4 sm:$0xff]  }
 0x81e   :  { %3114 = vmatprep.subr.bf16.mxu0 %v6176_v30  ;;  %3155 = vmatprep.subr.bf16.mxu1 %v6179_v4 }
 0x81f   :  { %v4293_v25 = vpop.eup %4292 }
 0x820   :  { %v3012_v17 = vmul.f32 %v4293_v25, %v4291_v8  ;;  %v7123_v25 = vld [vmem:[#allocation64_spill] sm:$0xff] }
 0x821   :  { %3115 = vmatpush1.bf16.msra.mxu0 %v6182_v2  ;;  %3156 = vmatpush1.bf16.msra.mxu1 %v6185_v27 }
 0x822   :  { %3210 = vmatprep.subr.bf16.mxu0 %v5756_v60  ;;  %3251 = vmatprep.subr.bf16.mxu1 %v5759_v51  ;;  %v3013_v22 = vpack.c.bf16 %v3012_v17, %v3012_v17  ;;  %v7090_v60 = vld [vmem:[#allocation18_spill] sm:$0xff]  ;;  %v7091_v51 = vld [vmem:[#allocation16_spill] sm:$0xff] }
 0x823   :  { %v7121_v17 = vld [vmem:[#allocation62_spill] sm:$0xff] }
 0x824   :  { %v3098_v30 = vrot.slane %v3013_v22, 2  ;;  %v7124_v22 = vld [vmem:[#allocation72_spill] sm:$0xff] }
 0x826   :  { %3133 = vmatmul.mubr.bf16.vlgmr.msra.gmra.mxu0 %v3098_v30  ;;  %3174 = vmatmul.mubr.bf16.vlgmr.msra.gmra.mxu1 %v3098_v30 }
 0x827   :  { %3211 = vmatpush1.bf16.msra.mxu0 %v7018_v28  ;;  %3252 = vmatpush1.bf16.msra.mxu1 %v7019_v49  ;;  %v7092_v28 = vld [vmem:[#allocation21_spill] sm:$0xff] }
 0x828   :  { %3212 = vmatprep.subr.bf16.mxu0 %v7020_v12  ;;  %3253 = vmatprep.subr.bf16.mxu1 %v7021_v54  ;;  %v7093_v49 = vld [vmem:[#allocation17_spill] sm:$0xff]  ;;  %v7094_v12 = vld [vmem:[#allocation22_spill] sm:$0xff]  ;;  %v7095_v54 = vld [vmem:[#allocation19_spill] sm:$0xff] }
 0x829   :  { %3242 = vmatprep.mubr.bf16.mxu0 %v6751_v21  ;;  %3283 = vmatprep.mubr.bf16.mxu1 %v6751_v21 }
 0x82b   :  { %3213 = vmatpush1.bf16.msra.mxu0 %v7022_v50  ;;  %3254 = vmatpush1.bf16.msra.mxu1 %v7023_v52  ;;  %v7096_v50 = vld [vmem:[#allocation25_spill] sm:$0xff]  ;;  %v7097_v52 = vld [vmem:[#allocation20_spill] sm:$0xff] }
 0x82c   :  { %3214 = vmatprep.subr.bf16.mxu0 %v7024_v23  ;;  %3255 = vmatprep.subr.bf16.mxu1 %v7025_v9  ;;  %v7098_v23 = vld [vmem:[#allocation67_spill] sm:$0xff]  ;;  %v7099_v9 = vld [vmem:[#allocation68_spill] sm:$0xff] }
 0x82f   :  { %3215 = vmatpush1.bf16.msra.mxu0 %v7026_v13  ;;  %3256 = vmatpush1.bf16.msra.mxu1 %v7027_v15  ;;  %v7100_v13 = vld [vmem:[#allocation31_spill] sm:$0xff] }
 0x830   :  { %3216 = vmatprep.subr.bf16.mxu0 %v7028_v31  ;;  %3257 = vmatprep.subr.bf16.mxu1 %v7029_v62  ;;  %v7101_v15 = vld [vmem:[#allocation35_spill] sm:$0xff]  ;;  %v7102_v31 = vld [vmem:[#allocation32_spill] sm:$0xff] }
 0x831   :  { %v7103_v62 = vld [vmem:[#allocation36_spill] sm:$0xff] }
 0x833   :  { %3217 = vmatpush1.bf16.msra.mxu0 %v7030_v19  ;;  %3258 = vmatpush1.bf16.msra.mxu1 %v7031_v63  ;;  %v7104_v19 = vld [vmem:[#allocation37_spill] sm:$0xff]  ;;  %v7105_v63 = vld [vmem:[#allocation38_spill] sm:$0xff] }
 0x834   :  { %3218 = vmatprep.subr.bf16.mxu0 %v7032_v1  ;;  %3259 = vmatprep.subr.bf16.mxu1 %v7033_v36  ;;  %v7106_v1 = vld [vmem:[#allocation15_spill] sm:$0xff]  ;;  %v7107_v36 = vld [vmem:[#allocation44_spill] sm:$0xff] }
 0x837   :  { %3219 = vmatpush1.bf16.msra.mxu0 %v7034_v5  ;;  %3260 = vmatpush1.bf16.msra.mxu1 %v7035_v46  ;;  %v7108_v5 = vld [vmem:[#allocation45_spill] sm:$0xff]  ;;  %v7109_v46 = vld [vmem:[#allocation46_spill] sm:$0xff] }
 0x838   :  { %3220 = vmatprep.subr.bf16.mxu0 %v7036_v48  ;;  %3261 = vmatprep.subr.bf16.mxu1 %v7037_v39  ;;  %v7110_v48 = vld [vmem:[#allocation48_spill] sm:$0xff]  ;;  %v7111_v39 = vld [vmem:[#allocation51_spill] sm:$0xff] }
 0x83b   :  { %3221 = vmatpush1.bf16.msra.mxu0 %v7038_v42  ;;  %3262 = vmatpush1.bf16.msra.mxu1 %v7039_v6  ;;  %v7112_v42 = vld [vmem:[#allocation52_spill] sm:$0xff]  ;;  %v7113_v6 = vld [vmem:[#allocation53_spill] sm:$0xff] }
 0x83c   :  { %3222 = vmatprep.subr.bf16.mxu0 %v7040_v11  ;;  %3263 = vmatprep.subr.bf16.mxu1 %v7041_v57  ;;  %v7114_v11 = vld [vmem:[#allocation54_spill] sm:$0xff]  ;;  %v7115_v57 = vld [vmem:[#allocation55_spill] sm:$0xff] }
 0x83f   :  { %3223 = vmatpush1.bf16.msra.mxu0 %v5958_v58  ;;  %3264 = vmatpush1.bf16.msra.mxu1 %v5961_v61  ;;  %v7116_v58 = vld [vmem:[#allocation56_spill] sm:$0xff]  ;;  %v7117_v61 = vld [vmem:[#allocation57_spill] sm:$0xff] }
 0x840   :  { %3224 = vmatprep.subr.bf16.mxu0 %v5964_v24  ;;  %3265 = vmatprep.subr.bf16.mxu1 %v5967_v26  ;;  %v7118_v24 = vld [vmem:[#allocation58_spill] sm:$0xff]  ;;  %v7119_v26 = vld [vmem:[#allocation59_spill] sm:$0xff] }
 0x843   :  { %3225 = vmatpush1.bf16.msra.mxu0 %v5970_v3  ;;  %3266 = vmatpush1.bf16.msra.mxu1 %v7090_v60  ;;  %v7120_v3 = vld [vmem:[#allocation60_spill] sm:$0xff] }
 0x844   :  { %3337 = vmatprep.subr.bf16.mxu0 %v7091_v51  ;;  %3378 = vmatprep.subr.bf16.mxu1 %v7092_v28 }
 0x846   :  { %3243 = vmatmul.mubr.bf16.vlgmr.msra.gmra.mxu0 %v3098_v30  ;;  %3284 = vmatmul.mubr.bf16.vlgmr.msra.gmra.mxu1 %v3098_v30  ;;  %v7122_v30 = vld [vmem:[#allocation63_spill] sm:$0xff] }
 0x847   :  { %3338 = vmatpush1.bf16.msra.mxu0 %v7093_v49  ;;  %3379 = vmatpush1.bf16.msra.mxu1 %v7094_v12 }
 0x848   :  { %3339 = vmatprep.subr.bf16.mxu0 %v7095_v54  ;;  %3380 = vmatprep.subr.bf16.mxu1 %v7096_v50 }
 0x849   :  { %3369 = vmatprep.mubr.bf16.mxu0 %v6751_v21  ;;  %3410 = vmatprep.mubr.bf16.mxu1 %v6751_v21 }
 0x84b   :  { %3340 = vmatpush1.bf16.msra.mxu0 %v7097_v52  ;;  %3381 = vmatpush1.bf16.msra.mxu1 %v7098_v23 }
 0x84c   :  { %3341 = vmatprep.subr.bf16.mxu0 %v7099_v9  ;;  %3382 = vmatprep.subr.bf16.mxu1 %v7100_v13 }
 0x84f   :  { %3342 = vmatpush1.bf16.msra.mxu0 %v7101_v15  ;;  %3383 = vmatpush1.bf16.msra.mxu1 %v7102_v31 }
 0x850   :  { %3343 = vmatprep.subr.bf16.mxu0 %v7103_v62  ;;  %3384 = vmatprep.subr.bf16.mxu1 %v7104_v19 }
 0x853   :  { %3344 = vmatpush1.bf16.msra.mxu0 %v7105_v63  ;;  %3385 = vmatpush1.bf16.msra.mxu1 %v7106_v1 }
 0x854   :  { %3345 = vmatprep.subr.bf16.mxu0 %v7107_v36  ;;  %3386 = vmatprep.subr.bf16.mxu1 %v7108_v5 }
 0x857   :  { %3346 = vmatpush1.bf16.msra.mxu0 %v7109_v46  ;;  %3387 = vmatpush1.bf16.msra.mxu1 %v7110_v48 }
 0x858   :  { %3347 = vmatprep.subr.bf16.mxu0 %v7111_v39  ;;  %3388 = vmatprep.subr.bf16.mxu1 %v7112_v42 }
 0x85b   :  { %3348 = vmatpush1.bf16.msra.mxu0 %v7113_v6  ;;  %3389 = vmatpush1.bf16.msra.mxu1 %v7114_v11 }
 0x85c   :  { %3349 = vmatprep.subr.bf16.mxu0 %v7115_v57  ;;  %3390 = vmatprep.subr.bf16.mxu1 %v7116_v58 }
 0x85f   :  { %3350 = vmatpush1.bf16.msra.mxu0 %v7117_v61  ;;  %3391 = vmatpush1.bf16.msra.mxu1 %v7118_v24 }
 0x860   :  { %3351 = vmatprep.subr.bf16.mxu0 %v7119_v26  ;;  %3392 = vmatprep.subr.bf16.mxu1 %v7120_v3 }
 0x863   :  { %3352 = vmatpush1.bf16.msra.mxu0 %v7121_v17  ;;  %3393 = vmatpush1.bf16.msra.mxu1 %v7122_v30 }
 0x864   :  { %3422 = vmatprep.subr.bf16.mxu0 %v7123_v25  ;;  %3463 = vmatprep.subr.bf16.mxu1 %v7124_v22 }
 0x8c4   :  { %v3049_v8 = vpop.f32.mrf.mxu0  ;;  %v3090_v60 = vpop.f32.mrf.mxu1 }
 0x8c6   :  { %v3051_v51 = vpop.f32.mrf.mxu0  ;;  %v3092_v28 = vpop.f32.mrf.mxu1 }
 0x8c8   :  { %v3053_v49 = vpop.f32.mrf.mxu0  ;;  %v3094_v12 = vpop.f32.mrf.mxu1 }
 0x8ca   :  { %v3054_v54 = vpop.f32.mrf.mxu0  ;;  %v3095_v50 = vpop.f32.mrf.mxu1 }
 0x8e6   :  { %v3134_v52 = vpop.f32.mrf.mxu0  ;;  %v3175_v23 = vpop.f32.mrf.mxu1 }
 0x8e7   :  { %v3135_v9 = vadd.f32 %v3134_v52, %v3049_v8  ;;  %v3176_v39 = vadd.f32 %v3175_v23, %v3090_v60 }
 0x8e8   :  { %v3136_v13 = vpop.f32.mrf.mxu0  ;;  %v3177_v15 = vpop.f32.mrf.mxu1 }
 0x8e9   :  { %v3182_v31 = vadd.f32 %v3135_v9, %v5147_v35  ;;  %v3137_v62 = vadd.f32 %v3136_v13, %v3051_v51  ;;  %v3184_v42 = vadd.f32 %v3176_v39, %v5157_v37  ;;  %v3178_v6 = vadd.f32 %v3177_v15, %v3092_v28 }
 0x8ea   :  { %v3138_v19 = vpop.f32.mrf.mxu0  ;;  %v3179_v63 = vpop.f32.mrf.mxu1 }
 0x8eb   :  { %v3829_v1 = vmul.f32 -1.442695, %v3182_v31  ;;  %v3183_v36 = vadd.f32 %v3137_v62, %v5151_v33  ;;  %v3831_v11 = vmul.f32 -1.442695, %v3184_v42  ;;  %v3185_v58 = vadd.f32 %v3178_v6, %v6837_v16 }
 0x8ec   :  { %v3139_v5 = vpop.f32.mrf.mxu0  ;;  %v3180_v46 = vpop.f32.mrf.mxu1 }
 0x8ed   :  { %4294 = vpow2.f32 %v3829_v1  ;;  %v3830_v48 = vmul.f32 -1.442695, %v3183_v36 }
 0x8ef   :  { %4296 = vpow2.f32 %v3830_v48 }
 0x8f0   :  { %4298 = vpow2.f32 %v3831_v11 }
 0x8fa   :  { %v4295_v57 = vpop.eup %4294 }
 0x8fb   :  { %v3195_v61 = vadd.f32 1.0, %v4295_v57 }
 0x8fc   :  { %v4297_v24 = vpop.eup %4296 }
 0x8fd   :  { %4300 = vrcp.f32 %v3195_v61  ;;  %v3196_v26 = vadd.f32 1.0, %v4297_v24  ;;  %v4299_v8 = vpop.eup %4298  ;;  %v7135_v61 = vld [vmem:[#allocation39_spill] sm:$0xff]  ;;  %v7136_v24 = vld [vmem:[#allocation40_spill] sm:$0xff] }
 0x8fe   :  { %4302 = vtanh.f32 %v3185_v58  ;;  %v3197_v9 = vadd.f32 1.0, %v4299_v8  ;;  %v4078_v8 = vld [vmem:[%s6345_s7 + $0x38] sm:$0xff]  }
 0x8ff   :  { %4304 = vrcp.f32 %v3196_v26 }
 0x906   :  { %v3244_v3 = vpop.f32.mrf.mxu0  ;;  %v3285_v17 = vpop.f32.mrf.mxu1 }
 0x907   :  { %v3296_v30 = vrot.slane %v3244_v3, 2  ;;  %v7137_v3 = vld [vmem:[#allocation41_spill] sm:$0xff] }
 0x908   :  { %v3246_v25 = vpop.f32.mrf.mxu0  ;;  %v3287_v22 = vpop.f32.mrf.mxu1 }
 0x909   :  { %v3304_v60 = vadd.f32 %v3296_v30, %v6954_v43  ;;  %v3297_v51 = vrot.slane %v3246_v25, 2  ;;  %v3298_v43 = vrot.slane %v3285_v17, 2  ;;  %v3299_v36 = vrot.slane %v3287_v22, 2 }
 0x90a   :  { %v4301_v28 = vpop.eup %4300  ;;  %v3248_v49 = vpop.f32.mrf.mxu0 }
 0x90b   :  { %v3289_v12 = vpop.f32.mrf.mxu1  ;;  %v4303_v54 = vpop.eup %4302  ;;  %v3832_v50 = vmul.f32 -1.442695, %v3304_v60  ;;  %v3305_v52 = vadd.f32 %v3297_v51, %v7017_v7  ;;  %v3306_v1 = vadd.f32 %v3298_v43, %v6956_v32  ;;  %v3307_v46 = vadd.f32 %v3299_v36, %v6957_v14  ;;  %v4082_v51 = vld [vmem:[%s6345_s7 + $0x18] sm:$0xff]   ;;  %v4084_v49 = vld [vmem:[%s6345_s7 + $0x8] sm:$0xff]  }
 0x90c   :  { %v4305_v23 = vpop.eup %4304  ;;  %v3249_v13 = vpop.f32.mrf.mxu0  ;;  %v3206_v62 = vmul.f32 %v4303_v54, %v4301_v28  ;;  %v4649_v60 = vmov 0.0   ;;  %v4083_v28 = vld [vmem:[%s6345_s7 + $0x10] sm:$0xff]   ;;  %v4085_v12 = vld [vmem:[%s6345_s7] sm:$0xff]  }
 0x90d   :  { %v3290_v15 = vpop.f32.mrf.mxu1  ;;  %v3205_v31 = vmul.f32 %v4305_v23, %v6087_v34  ;;  %4306 = vpow2.f32 %v3832_v50  ;;  %v3833_v19 = vmul.f32 -1.442695, %v3305_v52  ;;  %v3834_v7 = vmul.f32 -1.442695, %v3306_v1 }
 0x90f   :  { %v6265_v63 = vadd.f32 %v3206_v62, %v3205_v31  ;;  %4308 = vpow2.f32 %v3833_v19 }
 0x910   :  { %4310 = vrcp.f32 %v3197_v9 }
 0x911   :  { %4312 = vtanh.f32 %v6265_v63 }
 0x912   :  { %4314 = vpow2.f32 %v3834_v7 }
 0x91a   :  { %v4307_v5 = vpop.eup %4306 }
 0x91b   :  { %v3317_v48 = vadd.f32 1.0, %v4307_v5 }
 0x91c   :  { %v4309_v39 = vpop.eup %4308 }
 0x91d   :  { %v4311_v34 = vpop.eup %4310  ;;  %4316 = vrcp.f32 %v3317_v48  ;;  %v3318_v42 = vadd.f32 1.0, %v4309_v39 }
 0x91e   :  { %v4313_v6 = vpop.eup %4312  ;;  %4318 = vtanh.f32 %v3307_v46 }
 0x91f   :  { %4320 = vrcp.f32 %v3318_v42  ;;  %v3209_v11 = vmul.f32 %v4313_v6, %v4311_v34  ;;  %v4315_v32 = vpop.eup %4314 }
 0x920   :  { %v3319_v58 = vadd.f32 1.0, %v4315_v32 }
 0x921   :  { %v3336_v57 = vpack.c.bf16 %v3209_v11, %v3209_v11 }
 0x922   :  { %4322 = vrcp.f32 %v3319_v58 }
 0x923   :  { %3370 = vmatmul.mubr.bf16.vlgmr.msra.gmra.mxu0 %v3336_v57  ;;  %3411 = vmatmul.mubr.bf16.vlgmr.msra.gmra.mxu1 %v3336_v57 }
 0x924   :  { %3423 = vmatpush1.bf16.msra.mxu0 %v6092_v45  ;;  %3464 = vmatpush1.bf16.msra.mxu1 %v6095_v18  ;;  %v3328_v18 = vrot.slane %v6131_v47, 6  ;;  %v7132_v47 = vld [vmem:[#allocation28_spill] sm:$0xff] }
 0x925   :  { %3424 = vmatprep.subr.bf16.mxu0 %v6098_v0  ;;  %3465 = vmatprep.subr.bf16.mxu1 %v6101_v44 }
 0x926   :  { %3454 = vmatprep.mubr.bf16.mxu0 %v6751_v21  ;;  %3495 = vmatprep.mubr.bf16.mxu1 %v6751_v21 }
 0x928   :  { %3425 = vmatpush1.bf16.msra.mxu0 %v6106_v40  ;;  %3466 = vmatpush1.bf16.msra.mxu1 %v6109_v56  ;;  %v7125_v56 = vld [vmem:[#allocation26_spill] sm:$0xff] }
 0x929   :  { %3426 = vmatprep.subr.bf16.mxu0 %v6112_v59  ;;  %3467 = vmatprep.subr.bf16.mxu1 %v6115_v41  ;;  %v7126_v59 = vld [vmem:[#allocation23_spill] sm:$0xff]  ;;  %v7127_v41 = vld [vmem:[#allocation29_spill] sm:$0xff] }
 0x92a   :  { %v4317_v14 = vpop.eup %4316 }
 0x92b   :  { %v4319_v45 = vpop.eup %4318 }
 0x92c   :  { %v4321_v0 = vpop.eup %4320  ;;  %3427 = vmatpush1.bf16.msra.mxu0 %v6119_v38  ;;  %3468 = vmatpush1.bf16.msra.mxu1 %v6122_v53  ;;  %v3331_v44 = vmul.f32 %v4319_v45, %v4317_v14  ;;  %v7128_v38 = vld [vmem:[#allocation24_spill] sm:$0xff]  ;;  %v7129_v53 = vld [vmem:[#allocation30_spill] sm:$0xff] }
 0x92d   :  { %v3330_v21 = vmul.f32 %v4321_v0, %v3328_v18  ;;  %3428 = vmatprep.subr.bf16.mxu0 %v6125_v29  ;;  %3469 = vmatprep.subr.bf16.mxu1 %v6128_v10  ;;  %v7130_v29 = vld [vmem:[#allocation27_spill] sm:$0xff]  ;;  %v7131_v10 = vld [vmem:[#allocation33_spill] sm:$0xff] }
 0x92f   :  { %v3332_v40 = vadd.f32 %v3331_v44, %v3330_v21  ;;  %v4323_v26 = vpop.eup %4322 }
 0x930   :  { %3429 = vmatpush1.bf16.msra.mxu0 %v6133_v20  ;;  %3470 = vmatpush1.bf16.msra.mxu1 %v6136_v55  ;;  %v7133_v20 = vld [vmem:[#allocation34_spill] sm:$0xff]  ;;  %v7134_v55 = vld [vmem:[#allocation69_spill] sm:$0xff] }
 0x931   :  { %4324 = vtanh.f32 %v3332_v40  ;;  %3430 = vmatprep.subr.bf16.mxu0 %v7125_v56  ;;  %3471 = vmatprep.subr.bf16.mxu1 %v7126_v59 }
 0x934   :  { %3431 = vmatpush1.bf16.msra.mxu0 %v7127_v41  ;;  %3472 = vmatpush1.bf16.msra.mxu1 %v7128_v38 }
 0x935   :  { %3432 = vmatprep.subr.bf16.mxu0 %v7129_v53  ;;  %3473 = vmatprep.subr.bf16.mxu1 %v7130_v29 }
 0x938   :  { %3433 = vmatpush1.bf16.msra.mxu0 %v7131_v10  ;;  %3474 = vmatpush1.bf16.msra.mxu1 %v7132_v47  ;;  %v3838_v47 = vld [vmem:[%s6346_s8] ss:$0 sm:$0xff] }
 0x939   :  { %3434 = vmatprep.subr.bf16.mxu0 %v7133_v20  ;;  %3475 = vmatprep.subr.bf16.mxu1 %v7134_v55 }
 0x93c   :  { %3435 = vmatpush1.bf16.msra.mxu0 %v7135_v61  ;;  %3476 = vmatpush1.bf16.msra.mxu1 %v7136_v24 }
 0x93d   :  { %3436 = vmatprep.subr.bf16.mxu0 %v7137_v3  ;;  %3477 = vmatprep.subr.bf16.mxu1 %v6179_v4  ;;  %v4079_v4 = vld [vmem:[%s6345_s7 + $0x30] sm:$0xff]  }
 0x93e   :  { %v4325_v17 = vpop.eup %4324 }
 0x93f   :  { %v3334_v30 = vmul.f32 %v4325_v17, %v4323_v26 }
 0x940   :  { %3437 = vmatpush1.bf16.msra.mxu0 %v6182_v2  ;;  %3478 = vmatpush1.bf16.msra.mxu1 %v6185_v27  ;;  %v4080_v2 = vld [vmem:[%s6345_s7 + $0x28] sm:$0xff]   ;;  %v4081_v27 = vld [vmem:[%s6345_s7 + $0x20] sm:$0xff]  }
 0x941   :  { %v3335_v25 = vpack.c.bf16 %v3334_v30, %v3334_v30  ;;  %3856 = vmatprep.subr.bf16.mxu0 %v4649_v60 }
 0x943   :  { %v3420_v22 = vrot.slane %v3335_v25, 3 }
 0x945   :  { %3455 = vmatmul.mubr.bf16.vlgmr.msra.gmra.mxu0 %v3420_v22  ;;  %3496 = vmatmul.mubr.bf16.vlgmr.msra.gmra.mxu1 %v3420_v22 }
 0x946   :  { %3857 = vmatpush3.bf16.msra.mxu0 %v4078_v8  ;;  %3872 = vmatprep.mubr.msk.bf16.mxu0 %vm4650_vm0, %v4649_v60 }
 0x947   :  { %3858 = vmatprep.subr.bf16.mxu0 %v4649_v60 }
 0x94a   :  { %3859 = vmatpush3.bf16.msra.mxu0 %v4079_v4 }
 0x94b   :  { %3860 = vmatprep.subr.bf16.mxu0 %v4649_v60 }
 0x94e   :  { %3861 = vmatpush3.bf16.msra.mxu0 %v4080_v2 }
 0x94f   :  { %3862 = vmatprep.subr.bf16.mxu0 %v4649_v60 }
 0x952   :  { %3863 = vmatpush3.bf16.msra.mxu0 %v4081_v27 }
 0x953   :  { %3864 = vmatprep.subr.bf16.mxu0 %v4649_v60 }
 0x956   :  { %3865 = vmatpush3.bf16.msra.mxu0 %v4082_v51 }
 0x957   :  { %3866 = vmatprep.subr.bf16.mxu0 %v4649_v60 }
 0x95a   :  { %3867 = vmatpush3.bf16.msra.mxu0 %v4083_v28 }
 0x95b   :  { %3868 = vmatprep.subr.bf16.mxu0 %v4649_v60 }
 0x95e   :  { %3869 = vmatpush3.bf16.msra.mxu0 %v4084_v49 }
 0x95f   :  { %3870 = vmatprep.subr.bf16.mxu0 %v4649_v60 }
 0x962   :  { %3871 = vmatpush3.bf16.msra.mxu0 %v4085_v12 }
 0x9e3   :  { %v3371_v54 = vpop.f32.mrf.mxu0  ;;  %v3412_v50 = vpop.f32.mrf.mxu1 }
 0x9e5   :  { %v3373_v52 = vpop.f32.mrf.mxu0  ;;  %v3414_v23 = vpop.f32.mrf.mxu1 }
 0x9e7   :  { %v3375_v9 = vpop.f32.mrf.mxu0  ;;  %v3416_v13 = vpop.f32.mrf.mxu1 }
 0x9e9   :  { %v3376_v15 = vpop.f32.mrf.mxu0  ;;  %v3417_v31 = vpop.f32.mrf.mxu1 }
 0xa05   :  { %v3456_v62 = vpop.f32.mrf.mxu0  ;;  %v3497_v19 = vpop.f32.mrf.mxu1 }
 0xa06   :  { %v3457_v43 = vadd.f32 %v3456_v62, %v3371_v54  ;;  %v3498_v57 = vadd.f32 %v3497_v19, %v3412_v50 }
 0xa07   :  { %v3458_v1 = vpop.f32.mrf.mxu0  ;;  %v3499_v36 = vpop.f32.mrf.mxu1 }
 0xa08   :  { %v3504_v7 = vadd.f32 %v3457_v43, %v5147_v35  ;;  %v3459_v5 = vadd.f32 %v3458_v1, %v3373_v52  ;;  %v3506_v32 = vadd.f32 %v3498_v57, %v5157_v37  ;;  %v3500_v14 = vadd.f32 %v3499_v36, %v3414_v23 }
 0xa09   :  { %v3460_v46 = vpop.f32.mrf.mxu0  ;;  %v3501_v48 = vpop.f32.mrf.mxu1 }
 0xa0a   :  { %v3835_v39 = vmul.f32 -1.442695, %v3504_v7  ;;  %v3505_v34 = vadd.f32 %v3459_v5, %v5151_v33  ;;  %v3837_v45 = vmul.f32 -1.442695, %v3506_v32  ;;  %v3507_v0 = vadd.f32 %v3500_v14, %v6837_v16 }
 0xa0b   :  { %v3461_v42 = vpop.f32.mrf.mxu0  ;;  %v3502_v6 = vpop.f32.mrf.mxu1 }
 0xa0c   :  { %4326 = vpow2.f32 %v3835_v39  ;;  %v3836_v11 = vmul.f32 -1.442695, %v3505_v34 }
 0xa0e   :  { %4328 = vpow2.f32 %v3836_v11 }
 0xa0f   :  { %4330 = vpow2.f32 %v3837_v45 }
 0xa19   :  { %v4327_v18 = vpop.eup %4326 }
 0xa1a   :  { %v3517_v35 = vadd.f32 1.0, %v4327_v18 }
 0xa1b   :  { %v4329_v58 = vpop.eup %4328 }
 0xa1c   :  { %4332 = vrcp.f32 %v3517_v35  ;;  %v3518_v21 = vadd.f32 1.0, %v4329_v58  ;;  %v4331_v33 = vpop.eup %4330 }
 0xa1d   :  { %4334 = vtanh.f32 %v3507_v0  ;;  %v3519_v59 = vadd.f32 1.0, %v4331_v33 }
 0xa1e   :  { %4336 = vrcp.f32 %v3518_v21 }
 0xa1f   :  { %4338 = vrcp.f32 %v3519_v59 }
 0xa29   :  { %v4333_v44 = vpop.eup %4332 }
 0xa2a   :  { %v4335_v40 = vpop.eup %4334 }
 0xa2b   :  { %v4337_v56 = vpop.eup %4336  ;;  %v3528_v37 = vmul.f32 %v4335_v40, %v4333_v44 }
 0xa2c   :  { %v3527_v41 = vmul.f32 %v4337_v56, %v6265_v63  ;;  %v4339_v53 = vpop.eup %4338 }
 0xa2e   :  { %v3529_v38 = vadd.f32 %v3528_v37, %v3527_v41 }
 0xa30   :  { %4340 = vtanh.f32 %v3529_v38 }
 0xa3d   :  { %v4341_v16 = vpop.eup %4340 }
 0xa3e   :  { %v3531_v29 = vmul.f32 %v4341_v16, %v4339_v53 }
 0xa40   :  { %v3532_v10 = vpack.c.bf16 %v3531_v29, %v3531_v29 }
 0xa42   :  { %3873 = vmatmul.mubr.bf16.vlgmr.msra.gmra.mxu0 %v3532_v10 }
 0xb02   :  { %v3638_v20 = vpop.f32.mrf.mxu0 }
 0xb03   :  { %v3639_v55 = vadd.f32 %v3838_v47, %v3638_v20 }
 0xb04   :  { %v3874_v61 = vpop.f32.mrf.mxu0 }
 0xb05   :  { %3644 = vst [vmem:[#allocation10] sm:$0x3] %v3639_v55 }
 0xb06   :  { %v3641_v63 = vpop.f32.mrf.mxu0 }
 0xb07   :  { %4625 = shalt.err (!%p4622_p10)
}
 0xb08   :  { %3654 = dma.vmem_to_hbm [thread:$0]  %s3652_s27, 32, %s6347_s9, [#allocation4]   ;;  %v3875_v24 = vpop.f32.mrf.mxu0 }
 0xb09   :  { %4640 = dma.done.wait [#allocation4], 32  }
 0xb0a   :  { %4641 = vsyncadd [#allocation4], 4294967264 }
 0xb0b   :  { %3658 = vsyncpa [#allocation3], 1 }
 0xb0c   :  { %3659 = vsyncpa [#allocation6], 1 }
 0xb0d   :  { %3660 = vsyncpa [#allocation9], 1 }
 0xb0e   :  { %3661 = vsyncpa [#allocation4], 1 }

</bundles_post_ra>
